<compile_context>
chip_gen: v7x
topology: tpu7x:2x2x1
jax: 0.10.0
libtpu: 0.0.40
codegen_flags: <defaults>
</compile_context>

<pallas_src>
import jax
import jax.numpy as jnp
import numpy as np
from jax.experimental import pallas as pl
from jax.experimental.pallas import tpu as pltpu

EPS = 1e-5  # torch.nn.InstanceNorm2d default


def _round_up(x, m):
    return (x + m - 1) // m * m


def _nearest_up2_matrix(H, W):
    """0/1 expansion matrix E (H*W, 4*H*W): x_flat @ E == nearest-2x upsample."""
    H2, W2 = 2 * H, 2 * W
    q = np.arange(H2 * W2)
    src = (q // W2 // 2) * W + (q % W2) // 2
    e = np.zeros((H * W, H2 * W2), np.float32)
    e[src, q] = 1.0
    return jnp.asarray(e)


# --------------------------- parameter packing ------------------------------ #
def _pack_kernel_params(p, k1p, k2p):
    """Re-pack reference-layout params into the fused-kernel layout."""
    kh, kw, cin, cout = p["w1"].shape                  # HWIO
    w1 = jnp.transpose(p["w1"], (3, 0, 1, 2)).reshape(cout, kh * kw * cin)
    w2 = jnp.transpose(p["w2"], (3, 0, 1, 2)).reshape(cout, kh * kw * cout)
    wl = p["wl"].T                                     # (Cout, Cin)
    # Zero-pad the K dims to sublane multiples; pad columns stay zero.
    w1p = jnp.zeros((cout, k1p), jnp.float32).at[:, :kh * kw * cin].set(w1)
    w2p = jnp.zeros((cout, k2p), jnp.float32)
    w2p = w2p.at[:, :kh * kw * cout].set(w2)
    w2p = w2p.at[:, kh * kw * cout:kh * kw * cout + cin].set(wl)  # fused 1x1 conv
    return dict(
        g1=p["g1"].reshape(cin, 1), b1=p["b1"].reshape(cin, 1),
        w1=w1p, cb1=p["cb1"].reshape(cout, 1),
        g2=p["g2"].reshape(cout, 1), b2=p["b2"].reshape(cout, 1),
        w2=w2p, cb2=(p["cb2"] + p["cbl"]).reshape(cout, 1),
    )


# ------------------------------- wrapper ------------------------------------ #
def resblock_up(x_nchw, params):
    """x_nchw: (N, Cin, H, W) float32 -> (N, Cout, 2H, 2W) float32."""
    N, Cin, H, W = x_nchw.shape
    H2, W2 = 2 * H, 2 * W
    HW, HW2 = H * W, H2 * W2
    assert H2 >= 2 and W2 >= 2, "reflection pad of 1 needs H2,W2 >= 2"
    Cout = params["cb1"].shape[-1]

    K1, K2 = 9 * Cin, 9 * Cout + Cin
    K1P, K2P = _round_up(K1, 8), _round_up(K2, 8)

    kp = _pack_kernel_params(params, K1P, K2P)
    e_mat = _nearest_up2_matrix(H, W)                  # (HW, HW2) 0/1

    def kernel(x_ref, e_ref, g1_ref, b1_ref, w1_ref, cb1_ref,
               g2_ref, b2_ref, w2_ref, cb2_ref, o_ref, p1_ref, p2_ref):
        x = x_ref[0].astype(jnp.float32)               # (Cin, H*W), lane-dense

        # ---- IN1 stats on the PRE-upsample tile (exact for nearest 2x) ---- #
        mu1 = jnp.mean(x, axis=1, keepdims=True)
        var1 = jnp.mean((x - mu1) ** 2, axis=1, keepdims=True)
        s1 = g1_ref[...] * jax.lax.rsqrt(var1 + EPS)
        t1 = b1_ref[...] - mu1 * s1

        # ---- 2x nearest upsample == ONE matmul with the expansion matrix -- #
        xu = jnp.dot(x, e_ref[...],
                     preferred_element_type=jnp.float32)           # (Cin, HW2)
        hu = jnp.maximum(xu * s1 + t1, 0.0)                        # IN1 + ReLU

        # ---- boundary masks for reflection padding (once per step) -------- #
        pos = jax.lax.broadcasted_iota(jnp.int32, (1, HW2), 1)
        col = pos % W2
        first_row = pos < W2
        last_row = pos >= HW2 - W2
        first_col = col == 0
        last_col = col == W2 - 1

        def im2col_into(a, C, dst_ref):
            # 9 reflection-padded shifted views of a flattened (C, HW2) image,
            # streamed straight into dst_ref rows, (kh, kw) row-major to match
            # the packed weight columns.  pltpu.roll == jnp.roll (XLU rotate),
            # shifts given as non-negative amounts.
            up = pltpu.roll(a, HW2 - W2, axis=1)       # row r+1 (wrapped)
            dn = pltpu.roll(a, W2, axis=1)             # row r-1 (wrapped)
            rows = (jnp.where(first_row, up, dn),      # kh=0: row r-1, reflect top
                    a,                                 # kh=1
                    jnp.where(last_row, dn, up))       # kh=2: row r+1, reflect bot
            for kh, b in enumerate(rows):
                le = pltpu.roll(b, HW2 - 1, axis=1)    # col c+1 (wrapped)
                ri = pltpu.roll(b, 1, axis=1)          # col c-1 (wrapped)
                r0 = 3 * kh * C
                dst_ref[r0:r0 + C, :] = jnp.where(first_col, le, ri)          # kw=0
                dst_ref[r0 + C:r0 + 2 * C, :] = b                             # kw=1
                dst_ref[r0 + 2 * C:r0 + 3 * C, :] = jnp.where(last_col, ri, le)  # kw=2

        # ---- conv_r1: reflection-pad 3x3 as a single im2col matmul -------- #
        im2col_into(hu, Cin, p1_ref)
        if K1P > K1:                                   # keep pad rows clean
            p1_ref[K1:K1P, :] = jnp.zeros((K1P - K1, HW2), jnp.float32)
        y1 = jnp.dot(w1_ref[...], p1_ref[...],
                     preferred_element_type=jnp.float32) + cb1_ref[...]

        # ---- IN2 + ReLU (two-pass variance for numerical safety) ---------- #
        mu2 = jnp.mean(y1, axis=1, keepdims=True)
        var2 = jnp.mean((y1 - mu2) ** 2, axis=1, keepdims=True)
        s2 = g2_ref[...] * jax.lax.rsqrt(var2 + EPS)
        t2 = b2_ref[...] - mu2 * s2
        h2 = jnp.maximum(y1 * s2 + t2, 0.0)                        # (Cout, HW2)

        # ---- conv_r2 + fused 1x1 residual conv: one matmul over [views|xu] - #
        im2col_into(h2, Cout, p2_ref)
        p2_ref[9 * Cout:9 * Cout + Cin, :] = xu
        if K2P > K2:
            p2_ref[K2:K2P, :] = jnp.zeros((K2P - K2, HW2), jnp.float32)
        y = jnp.dot(w2_ref[...], p2_ref[...],
                    preferred_element_type=jnp.float32) + cb2_ref[...]

        o_ref[0] = y.astype(o_ref.dtype)

    x_flat = x_nchw.reshape(N, Cin, HW)                # free relayout in HBM
    in_arrays = [x_flat, e_mat, kp["g1"], kp["b1"], kp["w1"], kp["cb1"],
                 kp["g2"], kp["b2"], kp["w2"], kp["cb2"]]

    def _const_spec(a):
        nd = a.ndim
        return pl.BlockSpec(a.shape, lambda n, nd=nd: (0,) * nd)

    in_specs = [pl.BlockSpec((1, Cin, HW), lambda n: (n, 0, 0))]
    in_specs += [_const_spec(a) for a in in_arrays[1:]]

    # Derive the VMEM budget from actual buffer sizes (clamped for headroom).
    itm = 4  # f32
    step_bytes = (Cin * HW + Cout * HW2) * itm                 # per-step blocks
    const_bytes = sum(int(np.prod(a.shape)) * itm for a in in_arrays[1:])
    scratch_bytes = (K1P + K2P) * HW2 * itm
    vmem_limit = int(min(64 << 20,
                         max(16 << 20,
                             4 * step_bytes + 2 * const_bytes
                             + scratch_bytes + (4 << 20))))

    out = pl.pallas_call(
        kernel,
        out_shape=jax.ShapeDtypeStruct((N, Cout, HW2), jnp.float32),
        grid=(N,),                        # one sample per TensorCore on v7x
        in_specs=in_specs,
        out_specs=pl.BlockSpec((1, Cout, HW2), lambda n: (n, 0, 0)),
        scratch_shapes=[pltpu.VMEM((K1P, HW2), jnp.float32),
                        pltpu.VMEM((K2P, HW2), jnp.float32)],
        compiler_params=pltpu.CompilerParams(
            dimension_semantics=("parallel",),
            vmem_limit_bytes=vmem_limit),
    )(*in_arrays)

    return out.reshape(N, Cout, H2, W2)                # contiguous, free


# --------------------------- parameter init --------------------------------- #
def init_params(key, cin, cout, k=3):
    keys = jax.random.split(key, 10)

    def spectral_normalize(w):
        # spectral_norm(W) = W / sigma_max(W.reshape(Cout, -1))
        w2d = w.reshape(w.shape[0], -1)
        sigma = jnp.linalg.svd(w2d, compute_uv=False)[0]
        return w / sigma

    # conv weights created in PyTorch layout (Cout, Cin, KH, KW), then HWIO.
    w1 = spectral_normalize(0.3 * jax.random.normal(keys[0], (cout, cin, k, k)))
    w2 = spectral_normalize(0.3 * jax.random.normal(keys[1], (cout, cout, k, k)))
    wl = spectral_normalize(0.3 * jax.random.normal(keys[2], (cout, cin, 1, 1)))

    return dict(
        g1=0.5 + jax.random.uniform(keys[3], (1, cin)),
        b1=0.1 * jax.random.normal(keys[4], (1, cin)),
        w1=jnp.transpose(w1, (2, 3, 1, 0)),            # (KH, KW, Cin, Cout)
        cb1=0.1 * jax.random.normal(keys[5], (1, cout)),
        g2=0.5 + jax.random.uniform(keys[6], (1, cout)),
        b2=0.1 * jax.random.normal(keys[7], (1, cout)),
        w2=jnp.transpose(w2, (2, 3, 1, 0)),
        cb2=0.1 * jax.random.normal(keys[8], (1, cout)),
        wl=jnp.transpose(wl, (2, 3, 1, 0))[0, 0],      # (Cin, Cout)
        cbl=0.1 * jax.random.normal(keys[9], (1, cout)),
    )


# ------------------------- pure-JAX reference -------------------------------- #
def reference(x_nchw, params):
    x = jnp.transpose(x_nchw, (0, 2, 3, 1))            # NHWC

    def inorm(a, g, b):
        mean = jnp.mean(a, axis=(1, 2), keepdims=True)
        var = jnp.mean((a - mean) ** 2, axis=(1, 2), keepdims=True)
        return (a - mean) / jnp.sqrt(var + EPS) * g + b

    def up2(a):
        return jnp.repeat(jnp.repeat(a, 2, axis=1), 2, axis=2)

    def conv(a, w, b, pad):
        if pad:
            a = jnp.pad(a, ((0, 0), (pad, pad), (pad, pad), (0, 0)),
                        mode="reflect")
        y = jax.lax.conv_general_dilated(
            a, w, (1, 1), "VALID",
            dimension_numbers=("NHWC", "HWIO", "NHWC"))
        return y + b

    out = jax.nn.relu(inorm(x, params["g1"], params["b1"]))
    out = up2(out)
    out = conv(out, params["w1"], params["cb1"], 1)
    out = jax.nn.relu(inorm(out, params["g2"], params["b2"]))
    out = conv(out, params["w2"], params["cb2"], 1)
    res = conv(up2(x), params["wl"][None, None], params["cbl"], 0)
    return jnp.transpose(out + res, (0, 3, 1, 2))      # NCHW


# --------------------------------- main -------------------------------------- #
if __name__ == "__main__":
    key = jax.random.PRNGKey(0)
    kx, kp = jax.random.split(key)

    N, Cin, H, W = 2, 4, 16, 16
    Cout = 8

    x = jax.random.normal(kx, (N, Cin, H, W), jnp.float32)
    params = init_params(kp, Cin, Cout)

    out = jax.block_until_ready(resblock_up(x, params))
    assert out.shape == (N, Cout, 2 * H, 2 * W), out.shape

    ref = reference(x, params)
    np.testing.assert_allclose(np.asarray(out), np.asarray(ref),
                               rtol=2e-3, atol=2e-3)
    print("KERNEL_OK")
</pallas_src>

<mosaic_0001>
module attributes {stable_mosaic.version = 11 : i64} {
  func.func @kernel(%arg0: i32, %arg1: memref<1x4x256xf32, #tpu.memory_space<vmem>>, %arg2: memref<256x1024xf32, #tpu.memory_space<vmem>>, %arg3: memref<4x1xf32, #tpu.memory_space<vmem>>, %arg4: memref<4x1xf32, #tpu.memory_space<vmem>>, %arg5: memref<8x40xf32, #tpu.memory_space<vmem>>, %arg6: memref<8x1xf32, #tpu.memory_space<vmem>>, %arg7: memref<8x1xf32, #tpu.memory_space<vmem>>, %arg8: memref<8x1xf32, #tpu.memory_space<vmem>>, %arg9: memref<8x80xf32, #tpu.memory_space<vmem>>, %arg10: memref<8x1xf32, #tpu.memory_space<vmem>>, %arg11: memref<1x8x1024xf32, #tpu.memory_space<vmem>>, %arg12: memref<40x1024xf32, #tpu.memory_space<vmem>>, %arg13: memref<80x1024xf32, #tpu.memory_space<vmem>>) attributes {dimension_semantics = [#tpu.dimension_semantics<parallel>], iteration_bounds = array<i64: 2>, scalar_prefetch = 0 : i64, scratch_operands = 2 : i64, tpu.core_type = #tpu.core_type<tc>, window_params = [{transform_indices = @transform_0, window_bounds = array<i64: 1, 4, 256>}, {pipeline_mode = #tpu.pipeline_mode<synchronous>, transform_indices = @transform_1, window_bounds = array<i64: 256, 1024>}, {pipeline_mode = #tpu.pipeline_mode<synchronous>, transform_indices = @transform_2, window_bounds = array<i64: 4, 1>}, {pipeline_mode = #tpu.pipeline_mode<synchronous>, transform_indices = @transform_3, window_bounds = array<i64: 4, 1>}, {pipeline_mode = #tpu.pipeline_mode<synchronous>, transform_indices = @transform_4, window_bounds = array<i64: 8, 40>}, {pipeline_mode = #tpu.pipeline_mode<synchronous>, transform_indices = @transform_5, window_bounds = array<i64: 8, 1>}, {pipeline_mode = #tpu.pipeline_mode<synchronous>, transform_indices = @transform_6, window_bounds = array<i64: 8, 1>}, {pipeline_mode = #tpu.pipeline_mode<synchronous>, transform_indices = @transform_7, window_bounds = array<i64: 8, 1>}, {pipeline_mode = #tpu.pipeline_mode<synchronous>, transform_indices = @transform_8, window_bounds = array<i64: 8, 80>}, {pipeline_mode = #tpu.pipeline_mode<synchronous>, transform_indices = @transform_9, window_bounds = array<i64: 8, 1>}, {transform_indices = @transform_10, window_bounds = array<i64: 1, 8, 1024>}]} {
    %c0 = arith.constant 0 : index
    %c0_0 = arith.constant 0 : index
    %c0_1 = arith.constant 0 : index
    %0 = vector.load %arg1[%c0, %c0_0, %c0_1] : memref<1x4x256xf32, #tpu.memory_space<vmem>>, vector<1x4x256xf32>
    %1 = vector.shape_cast %0 : vector<1x4x256xf32> to vector<4x256xf32>
    %cst = arith.constant dense<0.000000e+00> : vector<4xf32>
    %2 = vector.multi_reduction <add>, %1, %cst [1] : vector<4x256xf32> to vector<4xf32>
    %3 = vector.shape_cast %2 : vector<4xf32> to vector<4x1xf32>
    %cst_2 = arith.constant 2.560000e+02 : f32
    %4 = vector.broadcast %cst_2 : f32 to vector<4x1xf32>
    %5 = arith.divf %3, %4 : vector<4x1xf32>
    %6 = vector.broadcast %5 : vector<4x1xf32> to vector<4x256xf32>
    %7 = arith.subf %1, %6 : vector<4x256xf32>
    %8 = arith.mulf %7, %7 : vector<4x256xf32>
    %cst_3 = arith.constant dense<0.000000e+00> : vector<4xf32>
    %9 = vector.multi_reduction <add>, %8, %cst_3 [1] : vector<4x256xf32> to vector<4xf32>
    %10 = vector.shape_cast %9 : vector<4xf32> to vector<4x1xf32>
    %cst_4 = arith.constant 2.560000e+02 : f32
    %11 = vector.broadcast %cst_4 : f32 to vector<4x1xf32>
    %12 = arith.divf %10, %11 : vector<4x1xf32>
    %c0_5 = arith.constant 0 : index
    %c0_6 = arith.constant 0 : index
    %13 = vector.load %arg3[%c0_5, %c0_6] : memref<4x1xf32, #tpu.memory_space<vmem>>, vector<4x1xf32>
    %cst_7 = arith.constant 9.99999974E-6 : f32
    %14 = vector.broadcast %cst_7 : f32 to vector<4x1xf32>
    %15 = arith.addf %12, %14 : vector<4x1xf32>
    %16 = math.rsqrt %15 : vector<4x1xf32>
    %17 = arith.mulf %13, %16 : vector<4x1xf32>
    %c0_8 = arith.constant 0 : index
    %c0_9 = arith.constant 0 : index
    %18 = vector.load %arg4[%c0_8, %c0_9] : memref<4x1xf32, #tpu.memory_space<vmem>>, vector<4x1xf32>
    %19 = arith.mulf %5, %17 : vector<4x1xf32>
    %20 = arith.subf %18, %19 : vector<4x1xf32>
    %c0_10 = arith.constant 0 : index
    %c0_11 = arith.constant 0 : index
    %21 = vector.load %arg2[%c0_10, %c0_11] : memref<256x1024xf32, #tpu.memory_space<vmem>>, vector<256x1024xf32>
    %cst_12 = arith.constant dense<0.000000e+00> : vector<4x1024xf32>
    %22 = tpu.matmul %1, %21, %cst_12 {dimension_numbers = #tpu.dot_dimension_numbers<[1], [0], [0], [1], [0, 0, 1, 1], [], []>} : vector<4x256xf32>, vector<256x1024xf32>, vector<4x1024xf32> -> vector<4x1024xf32>
    %23 = vector.broadcast %17 : vector<4x1xf32> to vector<4x1024xf32>
    %24 = arith.mulf %22, %23 : vector<4x1024xf32>
    %25 = vector.broadcast %20 : vector<4x1xf32> to vector<4x1024xf32>
    %26 = arith.addf %24, %25 : vector<4x1024xf32>
    %cst_13 = arith.constant 0.000000e+00 : f32
    %27 = vector.broadcast %cst_13 : f32 to vector<4x1024xf32>
    %28 = arith.maximumf %26, %27 : vector<4x1024xf32>
    %29 = tpu.iota {dimensions = array<i32: 1>} : vector<1x1024xi32>
    %c32_i32 = arith.constant 32 : i32
    %c0_i32 = arith.constant 0 : i32
    %30 = arith.cmpi eq, %c32_i32, %c0_i32 : i32
    %c1_i32 = arith.constant 1 : i32
    %31 = arith.select %30, %c1_i32, %c32_i32 : i32
    %32 = vector.broadcast %31 : i32 to vector<1x1024xi32>
    %33 = arith.remsi %29, %32 : vector<1x1024xi32>
    %c0_i32_14 = arith.constant 0 : i32
    %34 = vector.broadcast %c0_i32_14 : i32 to vector<1x1024xi32>
    %35 = arith.cmpi ne, %33, %34 : vector<1x1024xi32>
    %c0_i32_15 = arith.constant 0 : i32
    %36 = vector.broadcast %c0_i32_15 : i32 to vector<1x1024xi32>
    %37 = arith.cmpi slt, %33, %36 : vector<1x1024xi32>
    %c0_i32_16 = arith.constant 0 : i32
    %38 = arith.cmpi slt, %31, %c0_i32_16 : i32
    %39 = vector.broadcast %38 : i1 to vector<1x1024xi1>
    %40 = vector.broadcast %39 : vector<1x1024xi1> to vector<1x1024xi1>
    %41 = arith.xori %37, %40 : vector<1x1024xi1>
    %42 = arith.andi %41, %35 : vector<1x1024xi1>
    %43 = vector.broadcast %31 : i32 to vector<1x1024xi32>
    %44 = arith.addi %33, %43 : vector<1x1024xi32>
    %45 = arith.select %42, %44, %33 : vector<1x1024xi1>, vector<1x1024xi32>
    %c32_i32_17 = arith.constant 32 : i32
    %46 = vector.broadcast %c32_i32_17 : i32 to vector<1x1024xi32>
    %47 = arith.cmpi slt, %29, %46 : vector<1x1024xi32>
    %c992_i32 = arith.constant 992 : i32
    %48 = vector.broadcast %c992_i32 : i32 to vector<1x1024xi32>
    %49 = arith.cmpi sge, %29, %48 : vector<1x1024xi32>
    %c0_i32_18 = arith.constant 0 : i32
    %50 = vector.broadcast %c0_i32_18 : i32 to vector<1x1024xi32>
    %51 = arith.cmpi eq, %45, %50 : vector<1x1024xi32>
    %c31_i32 = arith.constant 31 : i32
    %52 = vector.broadcast %c31_i32 : i32 to vector<1x1024xi32>
    %53 = arith.cmpi eq, %45, %52 : vector<1x1024xi32>
    %c992_i32_19 = arith.constant 992 : i32
    %54 = tpu.dynamic_rotate %28 by %c992_i32_19 dim 1 : vector<4x1024xf32>, i32 -> vector<4x1024xf32>
    %c32_i32_20 = arith.constant 32 : i32
    %55 = tpu.dynamic_rotate %28 by %c32_i32_20 dim 1 : vector<4x1024xf32>, i32 -> vector<4x1024xf32>
    %56 = vector.shape_cast %47 : vector<1x1024xi1> to vector<1x1024xi1>
    %57 = vector.broadcast %56 : vector<1x1024xi1> to vector<4x1024xi1>
    %58 = arith.select %57, %54, %55 : vector<4x1024xi1>, vector<4x1024xf32>
    %59 = vector.shape_cast %49 : vector<1x1024xi1> to vector<1x1024xi1>
    %60 = vector.broadcast %59 : vector<1x1024xi1> to vector<4x1024xi1>
    %61 = arith.select %60, %55, %54 : vector<4x1024xi1>, vector<4x1024xf32>
    %c1023_i32 = arith.constant 1023 : i32
    %62 = tpu.dynamic_rotate %58 by %c1023_i32 dim 1 : vector<4x1024xf32>, i32 -> vector<4x1024xf32>
    %c1_i32_21 = arith.constant 1 : i32
    %63 = tpu.dynamic_rotate %58 by %c1_i32_21 dim 1 : vector<4x1024xf32>, i32 -> vector<4x1024xf32>
    %64 = vector.shape_cast %51 : vector<1x1024xi1> to vector<1x1024xi1>
    %65 = vector.broadcast %64 : vector<1x1024xi1> to vector<4x1024xi1>
    %66 = arith.select %65, %62, %63 : vector<4x1024xi1>, vector<4x1024xf32>
    %c0_22 = arith.constant 0 : index
    %c0_23 = arith.constant 0 : index
    %67 = vector.load %arg12[%c0_22, %c0_23] : memref<40x1024xf32, #tpu.memory_space<vmem>>, vector<4x1024xf32>
    tpu.vector_store %arg12[%c0_22, %c0_23], %66 {strides = array<i32>} : memref<40x1024xf32, #tpu.memory_space<vmem>>, vector<4x1024xf32>,
    %c4 = arith.constant 4 : index
    %c0_24 = arith.constant 0 : index
    %68 = vector.load %arg12[%c4, %c0_24] : memref<40x1024xf32, #tpu.memory_space<vmem>>, vector<4x1024xf32>
    tpu.vector_store %arg12[%c4, %c0_24], %58 {strides = array<i32>} : memref<40x1024xf32, #tpu.memory_space<vmem>>, vector<4x1024xf32>,
    %69 = vector.shape_cast %53 : vector<1x1024xi1> to vector<1x1024xi1>
    %70 = vector.broadcast %69 : vector<1x1024xi1> to vector<4x1024xi1>
    %71 = arith.select %70, %63, %62 : vector<4x1024xi1>, vector<4x1024xf32>
    %c8 = arith.constant 8 : index
    %c0_25 = arith.constant 0 : index
    %72 = vector.load %arg12[%c8, %c0_25] : memref<40x1024xf32, #tpu.memory_space<vmem>>, vector<4x1024xf32>
    tpu.vector_store %arg12[%c8, %c0_25], %71 {strides = array<i32>} : memref<40x1024xf32, #tpu.memory_space<vmem>>, vector<4x1024xf32>,
    %c1023_i32_26 = arith.constant 1023 : i32
    %73 = tpu.dynamic_rotate %28 by %c1023_i32_26 dim 1 : vector<4x1024xf32>, i32 -> vector<4x1024xf32>
    %c1_i32_27 = arith.constant 1 : i32
    %74 = tpu.dynamic_rotate %28 by %c1_i32_27 dim 1 : vector<4x1024xf32>, i32 -> vector<4x1024xf32>
    %75 = vector.shape_cast %51 : vector<1x1024xi1> to vector<1x1024xi1>
    %76 = vector.broadcast %75 : vector<1x1024xi1> to vector<4x1024xi1>
    %77 = arith.select %76, %73, %74 : vector<4x1024xi1>, vector<4x1024xf32>
    %c12 = arith.constant 12 : index
    %c0_28 = arith.constant 0 : index
    %78 = vector.load %arg12[%c12, %c0_28] : memref<40x1024xf32, #tpu.memory_space<vmem>>, vector<4x1024xf32>
    tpu.vector_store %arg12[%c12, %c0_28], %77 {strides = array<i32>} : memref<40x1024xf32, #tpu.memory_space<vmem>>, vector<4x1024xf32>,
    %c16 = arith.constant 16 : index
    %c0_29 = arith.constant 0 : index
    %79 = vector.load %arg12[%c16, %c0_29] : memref<40x1024xf32, #tpu.memory_space<vmem>>, vector<4x1024xf32>
    tpu.vector_store %arg12[%c16, %c0_29], %28 {strides = array<i32>} : memref<40x1024xf32, #tpu.memory_space<vmem>>, vector<4x1024xf32>,
    %80 = vector.shape_cast %53 : vector<1x1024xi1> to vector<1x1024xi1>
    %81 = vector.broadcast %80 : vector<1x1024xi1> to vector<4x1024xi1>
    %82 = arith.select %81, %74, %73 : vector<4x1024xi1>, vector<4x1024xf32>
    %c20 = arith.constant 20 : index
    %c0_30 = arith.constant 0 : index
    %83 = vector.load %arg12[%c20, %c0_30] : memref<40x1024xf32, #tpu.memory_space<vmem>>, vector<4x1024xf32>
    tpu.vector_store %arg12[%c20, %c0_30], %82 {strides = array<i32>} : memref<40x1024xf32, #tpu.memory_space<vmem>>, vector<4x1024xf32>,
    %c1023_i32_31 = arith.constant 1023 : i32
    %84 = tpu.dynamic_rotate %61 by %c1023_i32_31 dim 1 : vector<4x1024xf32>, i32 -> vector<4x1024xf32>
    %c1_i32_32 = arith.constant 1 : i32
    %85 = tpu.dynamic_rotate %61 by %c1_i32_32 dim 1 : vector<4x1024xf32>, i32 -> vector<4x1024xf32>
    %86 = vector.shape_cast %51 : vector<1x1024xi1> to vector<1x1024xi1>
    %87 = vector.broadcast %86 : vector<1x1024xi1> to vector<4x1024xi1>
    %88 = arith.select %87, %84, %85 : vector<4x1024xi1>, vector<4x1024xf32>
    %c24 = arith.constant 24 : index
    %c0_33 = arith.constant 0 : index
    %89 = vector.load %arg12[%c24, %c0_33] : memref<40x1024xf32, #tpu.memory_space<vmem>>, vector<4x1024xf32>
    tpu.vector_store %arg12[%c24, %c0_33], %88 {strides = array<i32>} : memref<40x1024xf32, #tpu.memory_space<vmem>>, vector<4x1024xf32>,
    %c28 = arith.constant 28 : index
    %c0_34 = arith.constant 0 : index
    %90 = vector.load %arg12[%c28, %c0_34] : memref<40x1024xf32, #tpu.memory_space<vmem>>, vector<4x1024xf32>
    tpu.vector_store %arg12[%c28, %c0_34], %61 {strides = array<i32>} : memref<40x1024xf32, #tpu.memory_space<vmem>>, vector<4x1024xf32>,
    %91 = vector.shape_cast %53 : vector<1x1024xi1> to vector<1x1024xi1>
    %92 = vector.broadcast %91 : vector<1x1024xi1> to vector<4x1024xi1>
    %93 = arith.select %92, %85, %84 : vector<4x1024xi1>, vector<4x1024xf32>
    %c32 = arith.constant 32 : index
    %c0_35 = arith.constant 0 : index
    %94 = vector.load %arg12[%c32, %c0_35] : memref<40x1024xf32, #tpu.memory_space<vmem>>, vector<4x1024xf32>
    tpu.vector_store %arg12[%c32, %c0_35], %93 {strides = array<i32>} : memref<40x1024xf32, #tpu.memory_space<vmem>>, vector<4x1024xf32>,
    %cst_36 = arith.constant 0.000000e+00 : f32
    %95 = vector.broadcast %cst_36 : f32 to vector<4x1024xf32>
    %c36 = arith.constant 36 : index
    %c0_37 = arith.constant 0 : index
    %96 = vector.load %arg12[%c36, %c0_37] : memref<40x1024xf32, #tpu.memory_space<vmem>>, vector<4x1024xf32>
    tpu.vector_store %arg12[%c36, %c0_37], %95 {strides = array<i32>} : memref<40x1024xf32, #tpu.memory_space<vmem>>, vector<4x1024xf32>,
    %c0_38 = arith.constant 0 : index
    %c0_39 = arith.constant 0 : index
    %97 = vector.load %arg5[%c0_38, %c0_39] : memref<8x40xf32, #tpu.memory_space<vmem>>, vector<8x40xf32>
    %c0_40 = arith.constant 0 : index
    %c0_41 = arith.constant 0 : index
    %98 = vector.load %arg12[%c0_40, %c0_41] : memref<40x1024xf32, #tpu.memory_space<vmem>>, vector<40x1024xf32>
    %cst_42 = arith.constant dense<0.000000e+00> : vector<8x1024xf32>
    %99 = tpu.matmul %97, %98, %cst_42 {dimension_numbers = #tpu.dot_dimension_numbers<[1], [0], [0], [1], [0, 0, 1, 1], [], []>} : vector<8x40xf32>, vector<40x1024xf32>, vector<8x1024xf32> -> vector<8x1024xf32>
    %c0_43 = arith.constant 0 : index
    %c0_44 = arith.constant 0 : index
    %100 = vector.load %arg6[%c0_43, %c0_44] : memref<8x1xf32, #tpu.memory_space<vmem>>, vector<8x1xf32>
    %101 = vector.broadcast %100 : vector<8x1xf32> to vector<8x1024xf32>
    %102 = arith.addf %99, %101 : vector<8x1024xf32>
    %cst_45 = arith.constant dense<0.000000e+00> : vector<8xf32>
    %103 = vector.multi_reduction <add>, %102, %cst_45 [1] : vector<8x1024xf32> to vector<8xf32>
    %104 = vector.shape_cast %103 : vector<8xf32> to vector<8x1xf32>
    %cst_46 = arith.constant 1.024000e+03 : f32
    %105 = vector.broadcast %cst_46 : f32 to vector<8x1xf32>
    %106 = arith.divf %104, %105 : vector<8x1xf32>
    %107 = vector.broadcast %106 : vector<8x1xf32> to vector<8x1024xf32>
    %108 = arith.subf %102, %107 : vector<8x1024xf32>
    %109 = arith.mulf %108, %108 : vector<8x1024xf32>
    %cst_47 = arith.constant dense<0.000000e+00> : vector<8xf32>
    %110 = vector.multi_reduction <add>, %109, %cst_47 [1] : vector<8x1024xf32> to vector<8xf32>
    %111 = vector.shape_cast %110 : vector<8xf32> to vector<8x1xf32>
    %cst_48 = arith.constant 1.024000e+03 : f32
    %112 = vector.broadcast %cst_48 : f32 to vector<8x1xf32>
    %113 = arith.divf %111, %112 : vector<8x1xf32>
    %c0_49 = arith.constant 0 : index
    %c0_50 = arith.constant 0 : index
    %114 = vector.load %arg7[%c0_49, %c0_50] : memref<8x1xf32, #tpu.memory_space<vmem>>, vector<8x1xf32>
    %cst_51 = arith.constant 9.99999974E-6 : f32
    %115 = vector.broadcast %cst_51 : f32 to vector<8x1xf32>
    %116 = arith.addf %113, %115 : vector<8x1xf32>
    %117 = math.rsqrt %116 : vector<8x1xf32>
    %118 = arith.mulf %114, %117 : vector<8x1xf32>
    %c0_52 = arith.constant 0 : index
    %c0_53 = arith.constant 0 : index
    %119 = vector.load %arg8[%c0_52, %c0_53] : memref<8x1xf32, #tpu.memory_space<vmem>>, vector<8x1xf32>
    %120 = arith.mulf %106, %118 : vector<8x1xf32>
    %121 = arith.subf %119, %120 : vector<8x1xf32>
    %122 = vector.broadcast %118 : vector<8x1xf32> to vector<8x1024xf32>
    %123 = arith.mulf %102, %122 : vector<8x1024xf32>
    %124 = vector.broadcast %121 : vector<8x1xf32> to vector<8x1024xf32>
    %125 = arith.addf %123, %124 : vector<8x1024xf32>
    %cst_54 = arith.constant 0.000000e+00 : f32
    %126 = vector.broadcast %cst_54 : f32 to vector<8x1024xf32>
    %127 = arith.maximumf %125, %126 : vector<8x1024xf32>
    %c992_i32_55 = arith.constant 992 : i32
    %128 = tpu.dynamic_rotate %127 by %c992_i32_55 dim 1 : vector<8x1024xf32>, i32 -> vector<8x1024xf32>
    %c32_i32_56 = arith.constant 32 : i32
    %129 = tpu.dynamic_rotate %127 by %c32_i32_56 dim 1 : vector<8x1024xf32>, i32 -> vector<8x1024xf32>
    %130 = vector.shape_cast %47 : vector<1x1024xi1> to vector<1x1024xi1>
    %131 = vector.broadcast %130 : vector<1x1024xi1> to vector<8x1024xi1>
    %132 = arith.select %131, %128, %129 : vector<8x1024xi1>, vector<8x1024xf32>
    %133 = vector.shape_cast %49 : vector<1x1024xi1> to vector<1x1024xi1>
    %134 = vector.broadcast %133 : vector<1x1024xi1> to vector<8x1024xi1>
    %135 = arith.select %134, %129, %128 : vector<8x1024xi1>, vector<8x1024xf32>
    %c1023_i32_57 = arith.constant 1023 : i32
    %136 = tpu.dynamic_rotate %132 by %c1023_i32_57 dim 1 : vector<8x1024xf32>, i32 -> vector<8x1024xf32>
    %c1_i32_58 = arith.constant 1 : i32
    %137 = tpu.dynamic_rotate %132 by %c1_i32_58 dim 1 : vector<8x1024xf32>, i32 -> vector<8x1024xf32>
    %138 = vector.shape_cast %51 : vector<1x1024xi1> to vector<1x1024xi1>
    %139 = vector.broadcast %138 : vector<1x1024xi1> to vector<8x1024xi1>
    %140 = arith.select %139, %136, %137 : vector<8x1024xi1>, vector<8x1024xf32>
    %c0_59 = arith.constant 0 : index
    %c0_60 = arith.constant 0 : index
    %141 = vector.load %arg13[%c0_59, %c0_60] : memref<80x1024xf32, #tpu.memory_space<vmem>>, vector<8x1024xf32>
    tpu.vector_store %arg13[%c0_59, %c0_60], %140 {strides = array<i32>} : memref<80x1024xf32, #tpu.memory_space<vmem>>, vector<8x1024xf32>,
    %c8_61 = arith.constant 8 : index
    %c0_62 = arith.constant 0 : index
    %142 = vector.load %arg13[%c8_61, %c0_62] : memref<80x1024xf32, #tpu.memory_space<vmem>>, vector<8x1024xf32>
    tpu.vector_store %arg13[%c8_61, %c0_62], %132 {strides = array<i32>} : memref<80x1024xf32, #tpu.memory_space<vmem>>, vector<8x1024xf32>,
    %143 = vector.shape_cast %53 : vector<1x1024xi1> to vector<1x1024xi1>
    %144 = vector.broadcast %143 : vector<1x1024xi1> to vector<8x1024xi1>
    %145 = arith.select %144, %137, %136 : vector<8x1024xi1>, vector<8x1024xf32>
    %c16_63 = arith.constant 16 : index
    %c0_64 = arith.constant 0 : index
    %146 = vector.load %arg13[%c16_63, %c0_64] : memref<80x1024xf32, #tpu.memory_space<vmem>>, vector<8x1024xf32>
    tpu.vector_store %arg13[%c16_63, %c0_64], %145 {strides = array<i32>} : memref<80x1024xf32, #tpu.memory_space<vmem>>, vector<8x1024xf32>,
    %c1023_i32_65 = arith.constant 1023 : i32
    %147 = tpu.dynamic_rotate %127 by %c1023_i32_65 dim 1 : vector<8x1024xf32>, i32 -> vector<8x1024xf32>
    %c1_i32_66 = arith.constant 1 : i32
    %148 = tpu.dynamic_rotate %127 by %c1_i32_66 dim 1 : vector<8x1024xf32>, i32 -> vector<8x1024xf32>
    %149 = vector.shape_cast %51 : vector<1x1024xi1> to vector<1x1024xi1>
    %150 = vector.broadcast %149 : vector<1x1024xi1> to vector<8x1024xi1>
    %151 = arith.select %150, %147, %148 : vector<8x1024xi1>, vector<8x1024xf32>
    %c24_67 = arith.constant 24 : index
    %c0_68 = arith.constant 0 : index
    %152 = vector.load %arg13[%c24_67, %c0_68] : memref<80x1024xf32, #tpu.memory_space<vmem>>, vector<8x1024xf32>
    tpu.vector_store %arg13[%c24_67, %c0_68], %151 {strides = array<i32>} : memref<80x1024xf32, #tpu.memory_space<vmem>>, vector<8x1024xf32>,
    %c32_69 = arith.constant 32 : index
    %c0_70 = arith.constant 0 : index
    %153 = vector.load %arg13[%c32_69, %c0_70] : memref<80x1024xf32, #tpu.memory_space<vmem>>, vector<8x1024xf32>
    tpu.vector_store %arg13[%c32_69, %c0_70], %127 {strides = array<i32>} : memref<80x1024xf32, #tpu.memory_space<vmem>>, vector<8x1024xf32>,
    %154 = vector.shape_cast %53 : vector<1x1024xi1> to vector<1x1024xi1>
    %155 = vector.broadcast %154 : vector<1x1024xi1> to vector<8x1024xi1>
    %156 = arith.select %155, %148, %147 : vector<8x1024xi1>, vector<8x1024xf32>
    %c40 = arith.constant 40 : index
    %c0_71 = arith.constant 0 : index
    %157 = vector.load %arg13[%c40, %c0_71] : memref<80x1024xf32, #tpu.memory_space<vmem>>, vector<8x1024xf32>
    tpu.vector_store %arg13[%c40, %c0_71], %156 {strides = array<i32>} : memref<80x1024xf32, #tpu.memory_space<vmem>>, vector<8x1024xf32>,
    %c1023_i32_72 = arith.constant 1023 : i32
    %158 = tpu.dynamic_rotate %135 by %c1023_i32_72 dim 1 : vector<8x1024xf32>, i32 -> vector<8x1024xf32>
    %c1_i32_73 = arith.constant 1 : i32
    %159 = tpu.dynamic_rotate %135 by %c1_i32_73 dim 1 : vector<8x1024xf32>, i32 -> vector<8x1024xf32>
    %160 = vector.shape_cast %51 : vector<1x1024xi1> to vector<1x1024xi1>
    %161 = vector.broadcast %160 : vector<1x1024xi1> to vector<8x1024xi1>
    %162 = arith.select %161, %158, %159 : vector<8x1024xi1>, vector<8x1024xf32>
    %c48 = arith.constant 48 : index
    %c0_74 = arith.constant 0 : index
    %163 = vector.load %arg13[%c48, %c0_74] : memref<80x1024xf32, #tpu.memory_space<vmem>>, vector<8x1024xf32>
    tpu.vector_store %arg13[%c48, %c0_74], %162 {strides = array<i32>} : memref<80x1024xf32, #tpu.memory_space<vmem>>, vector<8x1024xf32>,
    %c56 = arith.constant 56 : index
    %c0_75 = arith.constant 0 : index
    %164 = vector.load %arg13[%c56, %c0_75] : memref<80x1024xf32, #tpu.memory_space<vmem>>, vector<8x1024xf32>
    tpu.vector_store %arg13[%c56, %c0_75], %135 {strides = array<i32>} : memref<80x1024xf32, #tpu.memory_space<vmem>>, vector<8x1024xf32>,
    %165 = vector.shape_cast %53 : vector<1x1024xi1> to vector<1x1024xi1>
    %166 = vector.broadcast %165 : vector<1x1024xi1> to vector<8x1024xi1>
    %167 = arith.select %166, %159, %158 : vector<8x1024xi1>, vector<8x1024xf32>
    %c64 = arith.constant 64 : index
    %c0_76 = arith.constant 0 : index
    %168 = vector.load %arg13[%c64, %c0_76] : memref<80x1024xf32, #tpu.memory_space<vmem>>, vector<8x1024xf32>
    tpu.vector_store %arg13[%c64, %c0_76], %167 {strides = array<i32>} : memref<80x1024xf32, #tpu.memory_space<vmem>>, vector<8x1024xf32>,
    %c72 = arith.constant 72 : index
    %c0_77 = arith.constant 0 : index
    %169 = vector.load %arg13[%c72, %c0_77] : memref<80x1024xf32, #tpu.memory_space<vmem>>, vector<4x1024xf32>
    tpu.vector_store %arg13[%c72, %c0_77], %22 {strides = array<i32>} : memref<80x1024xf32, #tpu.memory_space<vmem>>, vector<4x1024xf32>,
    %cst_78 = arith.constant 0.000000e+00 : f32
    %170 = vector.broadcast %cst_78 : f32 to vector<4x1024xf32>
    %c76 = arith.constant 76 : index
    %c0_79 = arith.constant 0 : index
    %171 = vector.load %arg13[%c76, %c0_79] : memref<80x1024xf32, #tpu.memory_space<vmem>>, vector<4x1024xf32>
    tpu.vector_store %arg13[%c76, %c0_79], %170 {strides = array<i32>} : memref<80x1024xf32, #tpu.memory_space<vmem>>, vector<4x1024xf32>,
    %c0_80 = arith.constant 0 : index
    %c0_81 = arith.constant 0 : index
    %172 = vector.load %arg9[%c0_80, %c0_81] : memref<8x80xf32, #tpu.memory_space<vmem>>, vector<8x80xf32>
    %c0_82 = arith.constant 0 : index
    %c0_83 = arith.constant 0 : index
    %173 = vector.load %arg13[%c0_82, %c0_83] : memref<80x1024xf32, #tpu.memory_space<vmem>>, vector<80x1024xf32>
    %cst_84 = arith.constant dense<0.000000e+00> : vector<8x1024xf32>
    %174 = tpu.matmul %172, %173, %cst_84 {dimension_numbers = #tpu.dot_dimension_numbers<[1], [0], [0], [1], [0, 0, 1, 1], [], []>} : vector<8x80xf32>, vector<80x1024xf32>, vector<8x1024xf32> -> vector<8x1024xf32>
    %c0_85 = arith.constant 0 : index
    %c0_86 = arith.constant 0 : index
    %175 = vector.load %arg10[%c0_85, %c0_86] : memref<8x1xf32, #tpu.memory_space<vmem>>, vector<8x1xf32>
    %176 = vector.broadcast %175 : vector<8x1xf32> to vector<8x1024xf32>
    %177 = arith.addf %174, %176 : vector<8x1024xf32>
    %c0_87 = arith.constant 0 : index
    %c0_88 = arith.constant 0 : index
    %c0_89 = arith.constant 0 : index
    %178 = vector.load %arg11[%c0_87, %c0_88, %c0_89] : memref<1x8x1024xf32, #tpu.memory_space<vmem>>, vector<1x8x1024xf32>
    %179 = vector.shape_cast %178 : vector<1x8x1024xf32> to vector<8x1024xf32>
    %180 = vector.shape_cast %177 : vector<8x1024xf32> to vector<1x8x1024xf32>
    tpu.vector_store %arg11[%c0_87, %c0_88, %c0_89], %180 {strides = array<i32>} : memref<1x8x1024xf32, #tpu.memory_space<vmem>>, vector<1x8x1024xf32>,
    return
  }
  func.func @transform_0(%arg0: i32) -> (i32, i32, i32) {
    %c0_i32 = arith.constant 0 : i32
    %c0_i32_0 = arith.constant 0 : i32
    %c0_i32_1 = arith.constant 0 : i32
    return %arg0, %c0_i32, %c0_i32_0 : i32, i32, i32
  }
  func.func @transform_1(%arg0: i32) -> (i32, i32) {
    %c0_i32 = arith.constant 0 : i32
    %c0_i32_0 = arith.constant 0 : i32
    %c0_i32_1 = arith.constant 0 : i32
    return %c0_i32, %c0_i32_0 : i32, i32
  }
  func.func @transform_2(%arg0: i32) -> (i32, i32) {
    %c0_i32 = arith.constant 0 : i32
    %c0_i32_0 = arith.constant 0 : i32
    %c0_i32_1 = arith.constant 0 : i32
    return %c0_i32, %c0_i32_0 : i32, i32
  }
  func.func @transform_3(%arg0: i32) -> (i32, i32) {
    %c0_i32 = arith.constant 0 : i32
    %c0_i32_0 = arith.constant 0 : i32
    %c0_i32_1 = arith.constant 0 : i32
    return %c0_i32, %c0_i32_0 : i32, i32
  }
  func.func @transform_4(%arg0: i32) -> (i32, i32) {
    %c0_i32 = arith.constant 0 : i32
    %c0_i32_0 = arith.constant 0 : i32
    %c0_i32_1 = arith.constant 0 : i32
    return %c0_i32, %c0_i32_0 : i32, i32
  }
  func.func @transform_5(%arg0: i32) -> (i32, i32) {
    %c0_i32 = arith.constant 0 : i32
    %c0_i32_0 = arith.constant 0 : i32
    %c0_i32_1 = arith.constant 0 : i32
    return %c0_i32, %c0_i32_0 : i32, i32
  }
  func.func @transform_6(%arg0: i32) -> (i32, i32) {
    %c0_i32 = arith.constant 0 : i32
    %c0_i32_0 = arith.constant 0 : i32
    %c0_i32_1 = arith.constant 0 : i32
    return %c0_i32, %c0_i32_0 : i32, i32
  }
  func.func @transform_7(%arg0: i32) -> (i32, i32) {
    %c0_i32 = arith.constant 0 : i32
    %c0_i32_0 = arith.constant 0 : i32
    %c0_i32_1 = arith.constant 0 : i32
    return %c0_i32, %c0_i32_0 : i32, i32
  }
  func.func @transform_8(%arg0: i32) -> (i32, i32) {
    %c0_i32 = arith.constant 0 : i32
    %c0_i32_0 = arith.constant 0 : i32
    %c0_i32_1 = arith.constant 0 : i32
    return %c0_i32, %c0_i32_0 : i32, i32
  }
  func.func @transform_9(%arg0: i32) -> (i32, i32) {
    %c0_i32 = arith.constant 0 : i32
    %c0_i32_0 = arith.constant 0 : i32
    %c0_i32_1 = arith.constant 0 : i32
    return %c0_i32, %c0_i32_0 : i32, i32
  }
  func.func @transform_10(%arg0: i32) -> (i32, i32, i32) {
    %c0_i32 = arith.constant 0 : i32
    %c0_i32_0 = arith.constant 0 : i32
    %c0_i32_1 = arith.constant 0 : i32
    return %arg0, %c0_i32, %c0_i32_0 : i32, i32, i32
  }
}

</mosaic_0001>

<bundles_post_ra>
// kernel: tpu_custom_call.1
= control target key start
LH: loop header
LB: loop body
LE: loop exit
PB: predicated region body
PF: predicated region fallthrough
CT: control target
= control target key end

     0   :  { %15 = vsyncpa [#allocation5], 0  ;;  %s4808_s0 = inlined_call_operand.vmem [shape: f32[2,4,256], index: 0, kind: input, shape index: {}]   ;;  %s4809_s1 = inlined_call_operand.hbm [shape: f32[256,1024], index: 1, kind: input, shape index: {}]   ;;  %s4810_s2 = inlined_call_operand.vmem [shape: f32[4,1], index: 2, kind: input, shape index: {}]   ;;  %s4811_s3 = inlined_call_operand.vmem [shape: f32[4,1], index: 3, kind: input, shape index: {}]   ;;  %s4812_s4 = inlined_call_operand.vmem [shape: f32[8,40], index: 4, kind: input, shape index: {}]   ;;  %s4813_s5 = inlined_call_operand.vmem [shape: f32[8,1], index: 5, kind: input, shape index: {}]   ;;  %s4814_s6 = inlined_call_operand.vmem [shape: f32[8,1], index: 6, kind: input, shape index: {}]   ;;  %s4815_s7 = inlined_call_operand.vmem [shape: f32[8,1], index: 7, kind: input, shape index: {}]   ;;  %s4816_s8 = inlined_call_operand.vmem [shape: f32[8,80], index: 8, kind: input, shape index: {}]   ;;  %s4817_s9 = inlined_call_operand.vmem [shape: f32[8,1], index: 9, kind: input, shape index: {}]   ;;  %s4818_s10 = inlined_call_operand.hbm [shape: f32[2,8,1024], index: 10, kind: output, shape index: {}]  }
   0x1   :  { %16 = vsyncpa [#allocation6], 0 }
   0x2   :  { %18 = vsyncpa [#allocation6 + $0x1], 0  ;;  %s3469_s13 = smov 0   ;;  %s3471_s14 = smov 0  }
   0x3   :  { %s3473_s15 = smov 0   ;;  %s3475_s16 = smov 0  }
   0x4 LB: > { %s3490_s17 = sadd.s32 4294967295, %s3401_s16   ;;  %s2848_s18 = sadd.s32 4294967294, %s3401_s16   ;;  %s3401_s16 = sphi %s3475_s16, %s5007_s16   ;;  %s3397_s15 = sphi %s3473_s15, %s5006_s15   ;;  %s3393_s14 = sphi %s3471_s14, %s5005_s14   ;;  %s3389_s13 = sphi %s3469_s13, %s5004_s13  }
   0x5   : > { %s3494_s19 = sadd.s32 1, %s3401_s16   ;;  %s246_s20 = sadd.s32 1, %s3397_s15 }
   0x6   : > { %s243_s21 = ssub.s32 %s3401_s16, %s3494_s19  ;;  %p256_p0 = scmp.ne.s32.totalorder %s3397_s15, %s3393_s14 }
   0x7   : > { %p244_p1 = scmp.eq.s32.totalorder %s243_s21, 0  ;;  %p257_p2 = scmp.eq.s32.totalorder %s3490_s17, 1 }
   0x8   : > { %p262_p3 = scmp.ne.s32.totalorder %s3393_s14, %s3389_s13  ;;  %p263_p4 = scmp.eq.s32.totalorder %s2848_s18, 1 }
   0x9   : > { %s3505_s22 = scalar_select %p244_p1, %s3397_s15, %s246_s20  }
   0xa   : > { %p3507_p5 = por %p257_p2, %p256_p0  ;;  %p3511_p6 = por %p263_p4, %p262_p3 }
   0xb   : > { %p2849_p7 = scmp.ge.s32.totalorder %s3401_s16, 1  ;;  %p270_p8 = scmp.lt.s32.totalorder %s3401_s16, 3 }
   0xc   : > { %s4855_s23 = scalar_select %p3507_p5, 1, 0 }
   0xd   : > { %s4856_s24 = scalar_select %p3511_p6, 1, 0 }
   0xe   : > { %p4819_p9 = scmp.eq.s32.totalorder %s3490_s17, 0  ;;  %p3518_p10 = pnand %p2849_p7, %p270_p8 }
   0xf   : > { %s3403_s26 = smov [#allocation4]   ;;  %s3307_s11 = scalar_lea.hbm %s4809_s1, 32768 }
  0x10   : > { %s4857_s25 = scalar_select %p3518_p10, 1, 0 }
  0x11   : > { %s282_s27 = sshll.u32 %s3403_s26, 4  ;;  %p3246_p11 = pneg %p3518_p10  ;;  %s283_s27 = int_to_ptr.vmem [resolvable:$true] %s282_s27 }
  0x12   : > { %p3308_p13 = scmp.ne.s32.totalorder %s4809_s1, %s3307_s11  ;;  %p3314_p3 = scmp.lt.u32.totalorder %s3307_s11, %s4809_s1 }
  0x13   : > { %p3526_p12 = pnand %p4819_p9, %p3246_p11 }
  0x15   : > { %p3309_p0 = pneg %p3526_p12 }
  0x17   : > { %p3310_p1 = pnand %p3309_p0, %p3308_p13 }
  0x19   : > { %p3311_p2 = pneg %p3310_p1 }
  0x1b   : > { %p3316_p4 = pnand %p3314_p3, %p3311_p2 }
  0x1d   : > { %3319 = shalt.err (!%p3316_p4)
}
  0x1e   : > { %s3320_s26 = scalar_lea.vmem %s283_s27, 32768  ;;  %p3328_p9 = scmp.lt.s32.totalorder %s283_s27, %s283_s27 }
  0x1f   : > { %p3321_p7 = scmp.ne.s32.totalorder %s283_s27, %s3320_s26  ;;  %p3329_p6 = scmp.lt.s32.totalorder %s3320_s26, %s3320_s26 }
  0x21   : > { %p3323_p8 = pnand %p3321_p7, %p3309_p0  ;;  %p3330_p5 = por %p3329_p6, %p3328_p9 }
  0x23   : > { %p3324_p11 = pneg %p3323_p8 }
  0x25   : > { %p3331_p10 = pnand %p3330_p5, %p3324_p11 }
  0x27   : > { %3334 = shalt.err (!%p3331_p10)
}
  0x28   : > { %s3404_s29 = smov 1024   ;;  %s3405_s30 = smov 64  }
  0x29   : > { %3249 = dma.hbm_to_vmem [thread:$0]  (!%p3526_p12), %s4809_s1, 32768, %s283_s27, [#allocation5], %s3404_s29, %s3404_s29, %s3405_s30  }
  0x2a   : > { %p4859_p13 = scmp.ne.s32.totalorder %s4857_s25, 0 }
  0x2c   : > { %330 = sbr.rel (%p4859_p13) target bundleno = 2089 (0x829), region = 60 }
  0x33   : > { %p4860_p1 = scmp.eq.s32.totalorder %s3490_s17, 0 }
  0x35   : > { %3380 = dma.done.wait (%p4860_p1), [#allocation5], 32768   ;;  %p4861_p0 = pmov %p4860_p1 }
  0x36   : > { %p368_p5 = scmp.lt.s32.totalorder %s3490_s17, 1  ;;  %vm377_vm0 = vcmask 1043456   ;;  %v413_v1 = vld [vmem:[#allocation4 + $0x8] sm:$0xff]  ;;  %v415_v6 = vld [vmem:[#allocation4 + $0x18] sm:$0xff]  ;;  %v412_v8 = vld [vmem:[#allocation4] sm:$0xff]  ;;  %s3409_s12 = smov 96  }
  0x37   : > { %3382 = vsyncadd (%p4861_p0), [#allocation5], 4294934528  ;;  %v421_v2 = vld [vmem:[#allocation4 + $0x48] sm:$0xff]  ;;  %v423_v7 = vld [vmem:[#allocation4 + $0x58] sm:$0xff]  ;;  %s3410_s18 = smov 32   ;;  %s365_s28 = sand.u32 1, %s3393_s14  }
  0x38   : > { %s369_s11 = scalar_select %p368_p5, %s3490_s17, 1  ;;  %v2872_v5 = vpack.c.bf16 %v421_v2, %v413_v1  ;;  %v2936_v9 = vpack.c.bf16 %v423_v7, %v415_v6  ;;  %v420_v10 = vld [vmem:[#allocation4 + $0x40] sm:$0xff]  ;;  %v414_v11 = vld [vmem:[#allocation4 + $0x10] sm:$0xff]  ;;  %v429_v16 = vld [vmem:[#allocation4 + $0x88] sm:$0xff] }
  0x39   : > { %v422_v12 = vld [vmem:[#allocation4 + $0x50] sm:$0xff]  ;;  %v2874_v14 = vpack.c.bf16 %v420_v10, %v412_v8  ;;  %v437_v17 = vld [vmem:[#allocation4 + $0xc8] sm:$0xff]  ;;  %v431_v18 = vld [vmem:[#allocation4 + $0x98] sm:$0xff]  ;;  %s2871_s27 = sshll.u32 %s3490_s17, 10  ;;  %s2763_s17 = scalar_lea.sflag [#allocation6], %s365_s28 }
  0x3a   : > { %s2870_s20 = sshll.u32 %s369_s11, 3  ;;  %2873 = vmatprep.subr.bf16.mxu0 %v2872_v5  ;;  %v2938_v15 = vpack.c.bf16 %v422_v12, %v414_v11  ;;  %2937 = vmatprep.subr.bf16.mxu1 %v2936_v9  ;;  %v2876_v20 = vpack.c.bf16 %v437_v17, %v429_v16  ;;  %v439_v21 = vld [vmem:[#allocation4 + $0xd8] sm:$0xff]  ;;  %v428_v22 = vld [vmem:[#allocation4 + $0x80] sm:$0xff]  ;;  %v430_v26 = vld [vmem:[#allocation4 + $0x90] sm:$0xff]  ;;  %s3411_s11 = smov 127  }
  0x3b   : > { %s3557_s26 = scalar_lea.vmem %s4808_s0, %s2870_s20  ;;  %v436_v23 = vld [vmem:[#allocation4 + $0xc0] sm:$0xff]  ;;  %2875 = vmatpush1.bf16.msra.mxu0 %v2874_v14  ;;  %v2940_v24 = vpack.c.bf16 %v439_v21, %v431_v18  ;;  %v438_v27 = vld [vmem:[#allocation4 + $0xd0] sm:$0xff]  ;;  %v445_v28 = vld [vmem:[#allocation4 + $0x108] sm:$0xff]  ;;  %s3412_s20 = smov 1  }
  0x3c   : > { %v3560_v0 = vld [vmem:[%s3557_s26] sm:$0xff]  ;;  %2939 = vmatpush1.bf16.msra.mxu1 %v2938_v15  ;;  %v2878_v25 = vpack.c.bf16 %v436_v23, %v428_v22  ;;  %2877 = vmatprep.subr.bf16.mxu0 %v2876_v20  ;;  %v2942_v29 = vpack.c.bf16 %v438_v27, %v430_v26  ;;  %v453_v30 = vld [vmem:[#allocation4 + $0x148] sm:$0xff]  ;;  %v447_v31 = vld [vmem:[#allocation4 + $0x118] sm:$0xff]  ;;  %p5002_p9 = scmp.ne.s32.totalorder %s4855_s23, 0 }
  0x3d   : > { %v3564_v3 = vcombine.high %v3560_v0, %v3560_v0  ;;  %v378_v4 = vsel %vm377_vm0, %v3560_v0, 0.0  ;;  %v455_v32 = vld [vmem:[#allocation4 + $0x158] sm:$0xff]  ;;  %2941 = vmatprep.subr.bf16.mxu1 %v2940_v24  ;;  %v2880_v33 = vpack.c.bf16 %v453_v30, %v445_v28  ;;  %v444_v35 = vld [vmem:[#allocation4 + $0x100] sm:$0xff]  ;;  %v446_v37 = vld [vmem:[#allocation4 + $0x110] sm:$0xff] }
  0x3e   : > { %v2944_v34 = vpack.c.bf16 %v455_v32, %v447_v31  ;;  %v452_v36 = vld [vmem:[#allocation4 + $0x140] sm:$0xff]  ;;  %v454_v38 = vld [vmem:[#allocation4 + $0x150] sm:$0xff]  ;;  %v461_v39 = vld [vmem:[#allocation4 + $0x188] sm:$0xff] }
  0x3f   : > { %v379_v13 = vsel %vm377_vm0, %v3564_v3, 0.0  ;;  %732 = vmatprep.mubr.f32.mxu0 %v3564_v3  ;;  %803 = vmatprep.mubr.f32.mxu1 %v3564_v3  ;;  %v469_v40 = vld [vmem:[#allocation4 + $0x1c8] sm:$0xff]  ;;  %v2882_v41 = vpack.c.bf16 %v452_v36, %v444_v35  ;;  %v2946_v42 = vpack.c.bf16 %v454_v38, %v446_v37  ;;  %v463_v43 = vld [vmem:[#allocation4 + $0x198] sm:$0xff]  ;;  %v460_v45 = vld [vmem:[#allocation4 + $0x180] sm:$0xff] }
  0x40   : > { %v380_v19 = vadd.f32 %v379_v13, %v378_v4  ;;  %2879 = vmatpush1.bf16.msra.mxu0 %v2878_v25  ;;  %2943 = vmatpush1.bf16.msra.mxu1 %v2942_v29  ;;  %v471_v44 = vld [vmem:[#allocation4 + $0x1d8] sm:$0xff]  ;;  %v2884_v46 = vpack.c.bf16 %v469_v40, %v461_v39  ;;  %v468_v48 = vld [vmem:[#allocation4 + $0x1c0] sm:$0xff]  ;;  %v462_v49 = vld [vmem:[#allocation4 + $0x190] sm:$0xff] }
  0x41   : > { %2881 = vmatprep.subr.bf16.mxu0 %v2880_v33  ;;  %2945 = vmatprep.subr.bf16.mxu1 %v2944_v34  ;;  %v2948_v47 = vpack.c.bf16 %v471_v44, %v463_v43  ;;  %v470_v50 = vld [vmem:[#allocation4 + $0x1d0] sm:$0xff]  ;;  %v477_v51 = vld [vmem:[#allocation4 + $0x208] sm:$0xff]  ;;  %v479_v53 = vld [vmem:[#allocation4 + $0x218] sm:$0xff]  ;;  %v2886_v55 = vpack.c.bf16 %v468_v48, %v460_v45 }
  0x42   : > { %381 = vadd.xlane.f32.xlu0 %v380_v19  ;;  %v485_v52 = vld [vmem:[#allocation4 + $0x248] sm:$0xff]  ;;  %v487_v54 = vld [vmem:[#allocation4 + $0x258] sm:$0xff]  ;;  %v2950_v56 = vpack.c.bf16 %v470_v50, %v462_v49  ;;  %v476_v57 = vld [vmem:[#allocation4 + $0x200] sm:$0xff] }
  0x43   : > { %v484_v58 = vld [vmem:[#allocation4 + $0x240] sm:$0xff]  ;;  %v2888_v59 = vpack.c.bf16 %v485_v52, %v477_v51  ;;  %v2952_v60 = vpack.c.bf16 %v487_v54, %v479_v53  ;;  %v478_v61 = vld [vmem:[#allocation4 + $0x210] sm:$0xff]  ;;  %v493_v63 = vld [vmem:[#allocation4 + $0x288] sm:$0xff] }
  0x44   : > { %2883 = vmatpush1.bf16.msra.mxu0 %v2882_v41  ;;  %2947 = vmatpush1.bf16.msra.mxu1 %v2946_v42  ;;  %v486_v62 = vld [vmem:[#allocation4 + $0x250] sm:$0xff]  ;;  %v501_v1 = vld [vmem:[#allocation4 + $0x2c8] sm:$0xff]  ;;  %v495_v2 = vld [vmem:[#allocation4 + $0x298] sm:$0xff]  ;;  %v2890_v5 = vpack.c.bf16 %v484_v58, %v476_v57 }
  0x45   : > { %2885 = vmatprep.subr.bf16.mxu0 %v2884_v46  ;;  %2949 = vmatprep.subr.bf16.mxu1 %v2948_v47  ;;  %v503_v4 = vld [vmem:[#allocation4 + $0x2d8] sm:$0xff]  ;;  %v2954_v6 = vpack.c.bf16 %v486_v62, %v478_v61  ;;  %v492_v7 = vld [vmem:[#allocation4 + $0x280] sm:$0xff]  ;;  %v2892_v9 = vpack.c.bf16 %v501_v1, %v493_v63  ;;  %v494_v11 = vld [vmem:[#allocation4 + $0x290] sm:$0xff] }
  0x46   : > { %v500_v8 = vld [vmem:[#allocation4 + $0x2c0] sm:$0xff]  ;;  %v2956_v10 = vpack.c.bf16 %v503_v4, %v495_v2  ;;  %v502_v12 = vld [vmem:[#allocation4 + $0x2d0] sm:$0xff]  ;;  %v509_v13 = vld [vmem:[#allocation4 + $0x308] sm:$0xff] }
  0x47   : > { %v517_v14 = vld [vmem:[#allocation4 + $0x348] sm:$0xff]  ;;  %v511_v15 = vld [vmem:[#allocation4 + $0x318] sm:$0xff]  ;;  %v2894_v17 = vpack.c.bf16 %v500_v8, %v492_v7  ;;  %v2958_v18 = vpack.c.bf16 %v502_v12, %v494_v11  ;;  %v508_v19 = vld [vmem:[#allocation4 + $0x300] sm:$0xff] }
  0x48   : > { %2887 = vmatpush1.bf16.msra.mxu0 %v2886_v55  ;;  %2951 = vmatpush1.bf16.msra.mxu1 %v2950_v56  ;;  %v519_v16 = vld [vmem:[#allocation4 + $0x358] sm:$0xff]  ;;  %v516_v20 = vld [vmem:[#allocation4 + $0x340] sm:$0xff]  ;;  %v2896_v21 = vpack.c.bf16 %v517_v14, %v509_v13  ;;  %v510_v23 = vld [vmem:[#allocation4 + $0x310] sm:$0xff] }
  0x49   : > { %2889 = vmatprep.subr.bf16.mxu0 %v2888_v59  ;;  %2953 = vmatprep.subr.bf16.mxu1 %v2952_v60  ;;  %v2960_v22 = vpack.c.bf16 %v519_v16, %v511_v15  ;;  %v518_v24 = vld [vmem:[#allocation4 + $0x350] sm:$0xff]  ;;  %v525_v25 = vld [vmem:[#allocation4 + $0x388] sm:$0xff]  ;;  %v527_v27 = vld [vmem:[#allocation4 + $0x398] sm:$0xff]  ;;  %v2898_v29 = vpack.c.bf16 %v516_v20, %v508_v19 }
  0x4a   : > { %v533_v26 = vld [vmem:[#allocation4 + $0x3c8] sm:$0xff]  ;;  %v535_v28 = vld [vmem:[#allocation4 + $0x3d8] sm:$0xff]  ;;  %v2962_v30 = vpack.c.bf16 %v518_v24, %v510_v23  ;;  %v524_v31 = vld [vmem:[#allocation4 + $0x380] sm:$0xff] }
  0x4b   : > { %v532_v32 = vld [vmem:[#allocation4 + $0x3c0] sm:$0xff]  ;;  %v2900_v33 = vpack.c.bf16 %v533_v26, %v525_v25  ;;  %v2964_v34 = vpack.c.bf16 %v535_v28, %v527_v27  ;;  %v526_v35 = vld [vmem:[#allocation4 + $0x390] sm:$0xff]  ;;  %v541_v37 = vld [vmem:[#allocation4 + $0x408] sm:$0xff] }
  0x4c   : > { %2891 = vmatpush1.bf16.msra.mxu0 %v2890_v5  ;;  %2955 = vmatpush1.bf16.msra.mxu1 %v2954_v6  ;;  %v534_v36 = vld [vmem:[#allocation4 + $0x3d0] sm:$0xff]  ;;  %v549_v38 = vld [vmem:[#allocation4 + $0x448] sm:$0xff]  ;;  %v543_v39 = vld [vmem:[#allocation4 + $0x418] sm:$0xff]  ;;  %v2902_v41 = vpack.c.bf16 %v532_v32, %v524_v31 }
  0x4d   : > { %2893 = vmatprep.subr.bf16.mxu0 %v2892_v9  ;;  %2957 = vmatprep.subr.bf16.mxu1 %v2956_v10  ;;  %v551_v40 = vld [vmem:[#allocation4 + $0x458] sm:$0xff]  ;;  %v2966_v42 = vpack.c.bf16 %v534_v36, %v526_v35  ;;  %v540_v43 = vld [vmem:[#allocation4 + $0x400] sm:$0xff]  ;;  %v2904_v45 = vpack.c.bf16 %v549_v38, %v541_v37  ;;  %v542_v47 = vld [vmem:[#allocation4 + $0x410] sm:$0xff] }
  0x4e   : > { %v548_v44 = vld [vmem:[#allocation4 + $0x440] sm:$0xff]  ;;  %v2968_v46 = vpack.c.bf16 %v551_v40, %v543_v39  ;;  %v550_v48 = vld [vmem:[#allocation4 + $0x450] sm:$0xff]  ;;  %v557_v49 = vld [vmem:[#allocation4 + $0x488] sm:$0xff] }
  0x4f   : > { %v565_v50 = vld [vmem:[#allocation4 + $0x4c8] sm:$0xff]  ;;  %v559_v51 = vld [vmem:[#allocation4 + $0x498] sm:$0xff]  ;;  %v2906_v53 = vpack.c.bf16 %v548_v44, %v540_v43  ;;  %v2970_v54 = vpack.c.bf16 %v550_v48, %v542_v47  ;;  %v556_v55 = vld [vmem:[#allocation4 + $0x480] sm:$0xff] }
  0x50   : > { %2895 = vmatpush1.bf16.msra.mxu0 %v2894_v17  ;;  %2959 = vmatpush1.bf16.msra.mxu1 %v2958_v18  ;;  %v567_v52 = vld [vmem:[#allocation4 + $0x4d8] sm:$0xff]  ;;  %v564_v56 = vld [vmem:[#allocation4 + $0x4c0] sm:$0xff]  ;;  %v2908_v57 = vpack.c.bf16 %v565_v50, %v557_v49  ;;  %v558_v59 = vld [vmem:[#allocation4 + $0x490] sm:$0xff] }
  0x51   : > { %2897 = vmatprep.subr.bf16.mxu0 %v2896_v21  ;;  %2961 = vmatprep.subr.bf16.mxu1 %v2960_v22  ;;  %v2972_v58 = vpack.c.bf16 %v567_v52, %v559_v51  ;;  %v566_v60 = vld [vmem:[#allocation4 + $0x4d0] sm:$0xff]  ;;  %v573_v61 = vld [vmem:[#allocation4 + $0x508] sm:$0xff]  ;;  %v575_v63 = vld [vmem:[#allocation4 + $0x518] sm:$0xff]  ;;  %v2910_v2 = vpack.c.bf16 %v564_v56, %v556_v55 }
  0x52   : > { %v581_v62 = vld [vmem:[#allocation4 + $0x548] sm:$0xff]  ;;  %v583_v1 = vld [vmem:[#allocation4 + $0x558] sm:$0xff]  ;;  %v2974_v4 = vpack.c.bf16 %v566_v60, %v558_v59  ;;  %v572_v5 = vld [vmem:[#allocation4 + $0x500] sm:$0xff] }
  0x53   : > { %v580_v6 = vld [vmem:[#allocation4 + $0x540] sm:$0xff]  ;;  %v2912_v7 = vpack.c.bf16 %v581_v62, %v573_v61  ;;  %v2976_v8 = vpack.c.bf16 %v583_v1, %v575_v63  ;;  %v574_v9 = vld [vmem:[#allocation4 + $0x510] sm:$0xff]  ;;  %v589_v11 = vld [vmem:[#allocation4 + $0x588] sm:$0xff] }
  0x54   : > { %2899 = vmatpush1.bf16.msra.mxu0 %v2898_v29  ;;  %2963 = vmatpush1.bf16.msra.mxu1 %v2962_v30  ;;  %v582_v10 = vld [vmem:[#allocation4 + $0x550] sm:$0xff]  ;;  %v597_v12 = vld [vmem:[#allocation4 + $0x5c8] sm:$0xff]  ;;  %v591_v13 = vld [vmem:[#allocation4 + $0x598] sm:$0xff]  ;;  %v2914_v15 = vpack.c.bf16 %v580_v6, %v572_v5 }
  0x55   : > { %2901 = vmatprep.subr.bf16.mxu0 %v2900_v33  ;;  %2965 = vmatprep.subr.bf16.mxu1 %v2964_v34  ;;  %v599_v14 = vld [vmem:[#allocation4 + $0x5d8] sm:$0xff]  ;;  %v2978_v16 = vpack.c.bf16 %v582_v10, %v574_v9  ;;  %v588_v17 = vld [vmem:[#allocation4 + $0x580] sm:$0xff]  ;;  %v2916_v19 = vpack.c.bf16 %v597_v12, %v589_v11  ;;  %v590_v21 = vld [vmem:[#allocation4 + $0x590] sm:$0xff] }
  0x56   : > { %v596_v18 = vld [vmem:[#allocation4 + $0x5c0] sm:$0xff]  ;;  %v2980_v20 = vpack.c.bf16 %v599_v14, %v591_v13  ;;  %v598_v22 = vld [vmem:[#allocation4 + $0x5d0] sm:$0xff]  ;;  %v605_v23 = vld [vmem:[#allocation4 + $0x608] sm:$0xff] }
  0x57   : > { %v613_v24 = vld [vmem:[#allocation4 + $0x648] sm:$0xff]  ;;  %v607_v25 = vld [vmem:[#allocation4 + $0x618] sm:$0xff]  ;;  %v2918_v27 = vpack.c.bf16 %v596_v18, %v588_v17  ;;  %v2982_v28 = vpack.c.bf16 %v598_v22, %v590_v21  ;;  %v604_v29 = vld [vmem:[#allocation4 + $0x600] sm:$0xff] }
  0x58   : > { %2903 = vmatpush1.bf16.msra.mxu0 %v2902_v41  ;;  %2967 = vmatpush1.bf16.msra.mxu1 %v2966_v42  ;;  %v615_v26 = vld [vmem:[#allocation4 + $0x658] sm:$0xff]  ;;  %v612_v30 = vld [vmem:[#allocation4 + $0x640] sm:$0xff]  ;;  %v2920_v31 = vpack.c.bf16 %v613_v24, %v605_v23  ;;  %v606_v33 = vld [vmem:[#allocation4 + $0x610] sm:$0xff] }
  0x59   : > { %2905 = vmatprep.subr.bf16.mxu0 %v2904_v45  ;;  %2969 = vmatprep.subr.bf16.mxu1 %v2968_v46  ;;  %v2984_v32 = vpack.c.bf16 %v615_v26, %v607_v25  ;;  %v614_v34 = vld [vmem:[#allocation4 + $0x650] sm:$0xff]  ;;  %v621_v35 = vld [vmem:[#allocation4 + $0x688] sm:$0xff]  ;;  %v623_v37 = vld [vmem:[#allocation4 + $0x698] sm:$0xff]  ;;  %v2922_v39 = vpack.c.bf16 %v612_v30, %v604_v29 }
  0x5a   : > { %v629_v36 = vld [vmem:[#allocation4 + $0x6c8] sm:$0xff]  ;;  %v631_v38 = vld [vmem:[#allocation4 + $0x6d8] sm:$0xff]  ;;  %v2986_v40 = vpack.c.bf16 %v614_v34, %v606_v33  ;;  %v620_v41 = vld [vmem:[#allocation4 + $0x680] sm:$0xff] }
  0x5b   : > { %v628_v42 = vld [vmem:[#allocation4 + $0x6c0] sm:$0xff]  ;;  %v2924_v43 = vpack.c.bf16 %v629_v36, %v621_v35  ;;  %v2988_v44 = vpack.c.bf16 %v631_v38, %v623_v37  ;;  %v622_v45 = vld [vmem:[#allocation4 + $0x690] sm:$0xff]  ;;  %v637_v47 = vld [vmem:[#allocation4 + $0x708] sm:$0xff] }
  0x5c   : > { %2907 = vmatpush1.bf16.msra.mxu0 %v2906_v53  ;;  %2971 = vmatpush1.bf16.msra.mxu1 %v2970_v54  ;;  %v630_v46 = vld [vmem:[#allocation4 + $0x6d0] sm:$0xff]  ;;  %v645_v48 = vld [vmem:[#allocation4 + $0x748] sm:$0xff]  ;;  %v639_v49 = vld [vmem:[#allocation4 + $0x718] sm:$0xff]  ;;  %v2926_v51 = vpack.c.bf16 %v628_v42, %v620_v41 }
  0x5d   : > { %2909 = vmatprep.subr.bf16.mxu0 %v2908_v57  ;;  %2973 = vmatprep.subr.bf16.mxu1 %v2972_v58  ;;  %v647_v50 = vld [vmem:[#allocation4 + $0x758] sm:$0xff]  ;;  %v2990_v52 = vpack.c.bf16 %v630_v46, %v622_v45  ;;  %v636_v53 = vld [vmem:[#allocation4 + $0x700] sm:$0xff]  ;;  %v2928_v55 = vpack.c.bf16 %v645_v48, %v637_v47  ;;  %v638_v57 = vld [vmem:[#allocation4 + $0x710] sm:$0xff] }
  0x5e   : > { %v644_v54 = vld [vmem:[#allocation4 + $0x740] sm:$0xff]  ;;  %v2992_v56 = vpack.c.bf16 %v647_v50, %v639_v49  ;;  %v646_v58 = vld [vmem:[#allocation4 + $0x750] sm:$0xff]  ;;  %v653_v59 = vld [vmem:[#allocation4 + $0x788] sm:$0xff] }
  0x5f   : > { %v661_v60 = vld [vmem:[#allocation4 + $0x7c8] sm:$0xff]  ;;  %v655_v61 = vld [vmem:[#allocation4 + $0x798] sm:$0xff]  ;;  %v2930_v63 = vpack.c.bf16 %v644_v54, %v636_v53  ;;  %v2994_v1 = vpack.c.bf16 %v646_v58, %v638_v57  ;;  %v464_v50 = vld [vmem:[#allocation4 + $0x1a0] sm:$0xff] }
  0x60   : > { %2911 = vmatpush1.bf16.msra.mxu0 %v2910_v2  ;;  %2975 = vmatpush1.bf16.msra.mxu1 %v2974_v4  ;;  %v663_v62 = vld [vmem:[#allocation4 + $0x7d8] sm:$0xff]  ;;  %v652_v2 = vld [vmem:[#allocation4 + $0x780] sm:$0xff]  ;;  %v2932_v5 = vpack.c.bf16 %v661_v60, %v653_v59  ;;  %v417_v9 = vld [vmem:[#allocation4 + $0x28] sm:$0xff] }
  0x61   : > { %2913 = vmatprep.subr.bf16.mxu0 %v2912_v7  ;;  %2977 = vmatprep.subr.bf16.mxu1 %v2976_v8  ;;  %v660_v4 = vld [vmem:[#allocation4 + $0x7c0] sm:$0xff]  ;;  %v2996_v6 = vpack.c.bf16 %v663_v62, %v655_v61  ;;  %v654_v7 = vld [vmem:[#allocation4 + $0x790] sm:$0xff]  ;;  %v425_v10 = vld [vmem:[#allocation4 + $0x68] sm:$0xff] }
  0x62   : > { %v662_v8 = vld [vmem:[#allocation4 + $0x7d0] sm:$0xff]  ;;  %v419_v11 = vld [vmem:[#allocation4 + $0x38] sm:$0xff]  ;;  %v2934_v13 = vpack.c.bf16 %v660_v4, %v652_v2  ;;  %v3000_v17 = vpack.c.bf16 %v425_v10, %v417_v9  ;;  %v433_v21 = vld [vmem:[#allocation4 + $0xa8] sm:$0xff] }
  0x63   : > { %v427_v12 = vld [vmem:[#allocation4 + $0x78] sm:$0xff]  ;;  %v2998_v14 = vpack.c.bf16 %v662_v8, %v654_v7  ;;  %v441_v22 = vld [vmem:[#allocation4 + $0xe8] sm:$0xff]  ;;  %v466_v54 = vld [vmem:[#allocation4 + $0x1b0] sm:$0xff] }
  0x64   : > { %2915 = vmatpush1.bf16.msra.mxu0 %v2914_v15  ;;  %2979 = vmatpush1.bf16.msra.mxu1 %v2978_v16  ;;  %v416_v15 = vld [vmem:[#allocation4 + $0x20] sm:$0xff]  ;;  %v3064_v18 = vpack.c.bf16 %v427_v12, %v419_v11  ;;  %v435_v23 = vld [vmem:[#allocation4 + $0xb8] sm:$0xff]  ;;  %v3004_v29 = vpack.c.bf16 %v441_v22, %v433_v21  ;;  %v449_v33 = vld [vmem:[#allocation4 + $0x128] sm:$0xff] }
  0x65   : > { %2917 = vmatprep.subr.bf16.mxu0 %v2916_v19  ;;  %2981 = vmatprep.subr.bf16.mxu1 %v2980_v20  ;;  %v424_v16 = vld [vmem:[#allocation4 + $0x60] sm:$0xff]  ;;  %v418_v19 = vld [vmem:[#allocation4 + $0x30] sm:$0xff]  ;;  %v443_v24 = vld [vmem:[#allocation4 + $0xf8] sm:$0xff] }
  0x66   : > { %v426_v20 = vld [vmem:[#allocation4 + $0x70] sm:$0xff]  ;;  %v3002_v25 = vpack.c.bf16 %v424_v16, %v416_v15  ;;  %v3068_v30 = vpack.c.bf16 %v443_v24, %v435_v23  ;;  %v457_v34 = vld [vmem:[#allocation4 + $0x168] sm:$0xff]  ;;  %v451_v35 = vld [vmem:[#allocation4 + $0x138] sm:$0xff] }
  0x67   : > { %v3066_v26 = vpack.c.bf16 %v426_v20, %v418_v19  ;;  %v459_v36 = vld [vmem:[#allocation4 + $0x178] sm:$0xff]  ;;  %v3008_v41 = vpack.c.bf16 %v457_v34, %v449_v33  ;;  %v465_v45 = vld [vmem:[#allocation4 + $0x1a8] sm:$0xff]  ;;  %v480_v61 = vld [vmem:[#allocation4 + $0x220] sm:$0xff] }
  0x68   : > { %2919 = vmatpush1.bf16.msra.mxu0 %v2918_v27  ;;  %2983 = vmatpush1.bf16.msra.mxu1 %v2982_v28  ;;  %v432_v27 = vld [vmem:[#allocation4 + $0xa0] sm:$0xff]  ;;  %v3072_v42 = vpack.c.bf16 %v459_v36, %v451_v35  ;;  %v473_v46 = vld [vmem:[#allocation4 + $0x1e8] sm:$0xff]  ;;  %v467_v47 = vld [vmem:[#allocation4 + $0x1b8] sm:$0xff] }
  0x69   : > { %2921 = vmatprep.subr.bf16.mxu0 %v2920_v31  ;;  %2985 = vmatprep.subr.bf16.mxu1 %v2984_v32  ;;  %v440_v28 = vld [vmem:[#allocation4 + $0xe0] sm:$0xff]  ;;  %v434_v31 = vld [vmem:[#allocation4 + $0xb0] sm:$0xff]  ;;  %v475_v48 = vld [vmem:[#allocation4 + $0x1f8] sm:$0xff] }
  0x6a   : > { %v442_v32 = vld [vmem:[#allocation4 + $0xf0] sm:$0xff]  ;;  %v3006_v37 = vpack.c.bf16 %v440_v28, %v432_v27  ;;  %v3076_v53 = vpack.c.bf16 %v475_v48, %v467_v47  ;;  %v489_v57 = vld [vmem:[#allocation4 + $0x268] sm:$0xff]  ;;  %v483_v58 = vld [vmem:[#allocation4 + $0x238] sm:$0xff] }
  0x6b   : > { %v3070_v38 = vpack.c.bf16 %v442_v32, %v434_v31  ;;  %v491_v59 = vld [vmem:[#allocation4 + $0x278] sm:$0xff]  ;;  %v488_v62 = vld [vmem:[#allocation4 + $0x260] sm:$0xff]  ;;  %v482_v2 = vld [vmem:[#allocation4 + $0x230] sm:$0xff] }
  0x6c   : > { %2923 = vmatpush1.bf16.msra.mxu0 %v2922_v39  ;;  %2987 = vmatpush1.bf16.msra.mxu1 %v2986_v40  ;;  %v448_v39 = vld [vmem:[#allocation4 + $0x120] sm:$0xff]  ;;  %v490_v4 = vld [vmem:[#allocation4 + $0x270] sm:$0xff]  ;;  %v499_v7 = vld [vmem:[#allocation4 + $0x2b8] sm:$0xff]  ;;  %v3018_v9 = vpack.c.bf16 %v488_v62, %v480_v61 }
  0x6d   : > { %2925 = vmatprep.subr.bf16.mxu0 %v2924_v43  ;;  %2989 = vmatprep.subr.bf16.mxu1 %v2988_v44  ;;  %v456_v40 = vld [vmem:[#allocation4 + $0x160] sm:$0xff]  ;;  %v450_v43 = vld [vmem:[#allocation4 + $0x130] sm:$0xff]  ;;  %v507_v8 = vld [vmem:[#allocation4 + $0x2f8] sm:$0xff]  ;;  %v3082_v10 = vpack.c.bf16 %v490_v4, %v482_v2 }
  0x6e   : > { %v458_v44 = vld [vmem:[#allocation4 + $0x170] sm:$0xff]  ;;  %v496_v11 = vld [vmem:[#allocation4 + $0x2a0] sm:$0xff]  ;;  %v515_v19 = vld [vmem:[#allocation4 + $0x338] sm:$0xff] }
  0x6f   : > { %v3074_v49 = vpack.c.bf16 %v458_v44, %v450_v43  ;;  %v504_v12 = vld [vmem:[#allocation4 + $0x2e0] sm:$0xff]  ;;  %v498_v15 = vld [vmem:[#allocation4 + $0x2b0] sm:$0xff]  ;;  %v523_v20 = vld [vmem:[#allocation4 + $0x378] sm:$0xff] }
  0x70   : > { %2927 = vmatpush1.bf16.msra.mxu0 %v2926_v51  ;;  %2991 = vmatpush1.bf16.msra.mxu1 %v2990_v52  ;;  %v472_v51 = vld [vmem:[#allocation4 + $0x1e0] sm:$0xff]  ;;  %v3012_v52 = vpack.c.bf16 %v473_v46, %v465_v45  ;;  %v506_v16 = vld [vmem:[#allocation4 + $0x2f0] sm:$0xff]  ;;  %v3022_v21 = vpack.c.bf16 %v504_v12, %v496_v11  ;;  %v531_v31 = vld [vmem:[#allocation4 + $0x3b8] sm:$0xff] }
  0x71   : > { %2929 = vmatprep.subr.bf16.mxu0 %v2928_v55  ;;  %2993 = vmatprep.subr.bf16.mxu1 %v2992_v56  ;;  %v474_v55 = vld [vmem:[#allocation4 + $0x1f0] sm:$0xff]  ;;  %v481_v56 = vld [vmem:[#allocation4 + $0x228] sm:$0xff]  ;;  %v3014_v60 = vpack.c.bf16 %v472_v51, %v464_v50  ;;  %v3086_v22 = vpack.c.bf16 %v506_v16, %v498_v15  ;;  %v512_v23 = vld [vmem:[#allocation4 + $0x320] sm:$0xff] }
  0x72   : > { %v520_v24 = vld [vmem:[#allocation4 + $0x360] sm:$0xff]  ;;  %v514_v27 = vld [vmem:[#allocation4 + $0x330] sm:$0xff]  ;;  %v539_v32 = vld [vmem:[#allocation4 + $0x3f8] sm:$0xff] }
  0x73   : > { %v522_v28 = vld [vmem:[#allocation4 + $0x370] sm:$0xff]  ;;  %v3026_v33 = vpack.c.bf16 %v520_v24, %v512_v23  ;;  %v528_v35 = vld [vmem:[#allocation4 + $0x3a0] sm:$0xff]  ;;  %v547_v43 = vld [vmem:[#allocation4 + $0x438] sm:$0xff] }
  0x74   : > { %2931 = vmatpush1.bf16.msra.mxu0 %v2930_v63  ;;  %2995 = vmatpush1.bf16.msra.mxu1 %v2994_v1  ;;  %v3016_v63 = vpack.c.bf16 %v489_v57, %v481_v56  ;;  %v3080_v1 = vpack.c.bf16 %v491_v59, %v483_v58  ;;  %v3090_v34 = vpack.c.bf16 %v522_v28, %v514_v27  ;;  %v536_v36 = vld [vmem:[#allocation4 + $0x3e0] sm:$0xff]  ;;  %v555_v44 = vld [vmem:[#allocation4 + $0x478] sm:$0xff]  ;;  %v546_v50 = vld [vmem:[#allocation4 + $0x430] sm:$0xff] }
  0x75   : > { %2933 = vmatprep.subr.bf16.mxu0 %v2932_v5  ;;  %2997 = vmatprep.subr.bf16.mxu1 %v2996_v6  ;;  %v497_v5 = vld [vmem:[#allocation4 + $0x2a8] sm:$0xff]  ;;  %v3030_v45 = vpack.c.bf16 %v536_v36, %v528_v35  ;;  %v544_v47 = vld [vmem:[#allocation4 + $0x420] sm:$0xff]  ;;  %v554_v51 = vld [vmem:[#allocation4 + $0x470] sm:$0xff] }
  0x76   : > { %v505_v6 = vld [vmem:[#allocation4 + $0x2e8] sm:$0xff]  ;;  %v552_v48 = vld [vmem:[#allocation4 + $0x460] sm:$0xff]  ;;  %v3098_v57 = vpack.c.bf16 %v554_v51, %v546_v50  ;;  %v562_v61 = vld [vmem:[#allocation4 + $0x4b0] sm:$0xff] }
  0x77   : > { %v3034_v56 = vpack.c.bf16 %v552_v48, %v544_v47  ;;  %v560_v58 = vld [vmem:[#allocation4 + $0x4a0] sm:$0xff]  ;;  %v570_v62 = vld [vmem:[#allocation4 + $0x4f0] sm:$0xff]  ;;  %v579_v2 = vld [vmem:[#allocation4 + $0x538] sm:$0xff] }
  0x78   : > { %2935 = vmatpush1.bf16.msra.mxu0 %v2934_v13  ;;  %2999 = vmatpush1.bf16.msra.mxu1 %v2998_v14  ;;  %v3020_v13 = vpack.c.bf16 %v505_v6, %v497_v5  ;;  %v3084_v14 = vpack.c.bf16 %v507_v8, %v499_v7  ;;  %v568_v59 = vld [vmem:[#allocation4 + $0x4e0] sm:$0xff]  ;;  %v587_v4 = vld [vmem:[#allocation4 + $0x578] sm:$0xff]  ;;  %v3102_v6 = vpack.c.bf16 %v570_v62, %v562_v61  ;;  %v578_v11 = vld [vmem:[#allocation4 + $0x530] sm:$0xff] }
  0x79   : > { %3001 = vmatprep.subr.bf16.mxu0 %v3000_v17  ;;  %3065 = vmatprep.subr.bf16.mxu1 %v3064_v18  ;;  %v513_v17 = vld [vmem:[#allocation4 + $0x328] sm:$0xff]  ;;  %v3038_v5 = vpack.c.bf16 %v568_v59, %v560_v58  ;;  %v576_v7 = vld [vmem:[#allocation4 + $0x520] sm:$0xff]  ;;  %v586_v12 = vld [vmem:[#allocation4 + $0x570] sm:$0xff] }
  0x7a   : > { %v521_v18 = vld [vmem:[#allocation4 + $0x368] sm:$0xff]  ;;  %v584_v8 = vld [vmem:[#allocation4 + $0x560] sm:$0xff]  ;;  %v595_v15 = vld [vmem:[#allocation4 + $0x5b8] sm:$0xff] }
  0x7b   : > { %733 = vmatmul.mubr.f32.vlgmr.msra.gmra.mrb[0].mxu0 %v3560_v0  ;;  %804 = vmatmul.mubr.f32.vlgmr.msra.gmra.mrb[0].mxu1 %v3560_v0  ;;  %v3010_v0 = vpack.c.bf16 %v456_v40, %v448_v39  ;;  %v530_v39 = vld [vmem:[#allocation4 + $0x3b0] sm:$0xff]  ;;  %v603_v16 = vld [vmem:[#allocation4 + $0x5f8] sm:$0xff] }
  0x7c   : > { %3003 = vmatpush1.bf16.msra.mxu0 %v3002_v25  ;;  %3067 = vmatpush1.bf16.msra.mxu1 %v3066_v26  ;;  %v3024_v25 = vpack.c.bf16 %v521_v18, %v513_v17  ;;  %v3088_v26 = vpack.c.bf16 %v523_v20, %v515_v19  ;;  %v538_v40 = vld [vmem:[#allocation4 + $0x3f0] sm:$0xff]  ;;  %v3042_v17 = vpack.c.bf16 %v584_v8, %v576_v7  ;;  %v592_v19 = vld [vmem:[#allocation4 + $0x5a0] sm:$0xff]  ;;  %v611_v27 = vld [vmem:[#allocation4 + $0x638] sm:$0xff] }
  0x7d   : > { %3005 = vmatprep.subr.bf16.mxu0 %v3004_v29  ;;  %3069 = vmatprep.subr.bf16.mxu1 %v3068_v30  ;;  %v529_v29 = vld [vmem:[#allocation4 + $0x3a8] sm:$0xff]  ;;  %v3094_v46 = vpack.c.bf16 %v538_v40, %v530_v39  ;;  %v3106_v18 = vpack.c.bf16 %v586_v12, %v578_v11  ;;  %v600_v20 = vld [vmem:[#allocation4 + $0x5e0] sm:$0xff]  ;;  %v594_v23 = vld [vmem:[#allocation4 + $0x5b0] sm:$0xff]  ;;  %v3406_v12 = vmov 839922192  }
  0x7e   : > { %874 = vmatprep.mubr.f32.mxu0 %v3564_v3  ;;  %945 = vmatprep.mubr.f32.mxu1 %v3564_v3  ;;  %v3078_v3 = vpack.c.bf16 %v474_v55, %v466_v54  ;;  %v537_v30 = vld [vmem:[#allocation4 + $0x3e8] sm:$0xff]  ;;  %v563_v54 = vld [vmem:[#allocation4 + $0x4b8] sm:$0xff]  ;;  %v602_v24 = vld [vmem:[#allocation4 + $0x5f0] sm:$0xff] }
  0x7f   : > { %v571_v55 = vld [vmem:[#allocation4 + $0x4f8] sm:$0xff]  ;;  %v610_v35 = vld [vmem:[#allocation4 + $0x630] sm:$0xff]  ;;  %v3306_v11 = vld [vmem:[%s3557_s26] sm:$0xff]  ;;  %s2854_s26 = sshll.u32 %s365_s28, 6 }
  0x80   : > { %3007 = vmatpush1.bf16.msra.mxu0 %v3006_v37  ;;  %3071 = vmatpush1.bf16.msra.mxu1 %v3070_v38  ;;  %v3028_v37 = vpack.c.bf16 %v537_v30, %v529_v29  ;;  %v3092_v38 = vpack.c.bf16 %v539_v32, %v531_v31  ;;  %v619_v28 = vld [vmem:[#allocation4 + $0x678] sm:$0xff]  ;;  %v3046_v29 = vpack.c.bf16 %v600_v20, %v592_v19  ;;  %v608_v31 = vld [vmem:[#allocation4 + $0x620] sm:$0xff]  ;;  %v618_v36 = vld [vmem:[#allocation4 + $0x670] sm:$0xff]  ;;  %s367_s25 = scalar_lea.vmem [#allocation7], %s2854_s26 }
  0x81   : > { %3009 = vmatprep.subr.bf16.mxu0 %v3008_v41  ;;  %3073 = vmatprep.subr.bf16.mxu1 %v3072_v42  ;;  %v545_v41 = vld [vmem:[#allocation4 + $0x428] sm:$0xff]  ;;  %v3110_v30 = vpack.c.bf16 %v602_v24, %v594_v23  ;;  %v616_v32 = vld [vmem:[#allocation4 + $0x660] sm:$0xff]  ;;  %v627_v39 = vld [vmem:[#allocation4 + $0x6b8] sm:$0xff]  ;;  %s2777_s29 = sshll.u32 %s367_s25, 4  ;;  %s4766_s29 = int_to_ptr.vmem [resolvable:$true] %s2777_s29 }
  0x82   : > { %v553_v42 = vld [vmem:[#allocation4 + $0x468] sm:$0xff]  ;;  %v635_v40 = vld [vmem:[#allocation4 + $0x6f8] sm:$0xff]  ;;  %v626_v47 = vld [vmem:[#allocation4 + $0x6b0] sm:$0xff] }
  0x83   : > { %v634_v48 = vld [vmem:[#allocation4 + $0x6f0] sm:$0xff]  ;;  %v643_v50 = vld [vmem:[#allocation4 + $0x738] sm:$0xff] }
  0x84   : > { %3011 = vmatpush1.bf16.msra.mxu0 %v3010_v0  ;;  %3075 = vmatpush1.bf16.msra.mxu1 %v3074_v49  ;;  %v3032_v0 = vpack.c.bf16 %v553_v42, %v545_v41  ;;  %v3096_v49 = vpack.c.bf16 %v555_v44, %v547_v43  ;;  %v3050_v41 = vpack.c.bf16 %v616_v32, %v608_v31  ;;  %v624_v43 = vld [vmem:[#allocation4 + $0x6a0] sm:$0xff]  ;;  %v651_v51 = vld [vmem:[#allocation4 + $0x778] sm:$0xff]  ;;  %v642_v58 = vld [vmem:[#allocation4 + $0x730] sm:$0xff] }
  0x85   : > { %3013 = vmatprep.subr.bf16.mxu0 %v3012_v52  ;;  %3077 = vmatprep.subr.bf16.mxu1 %v3076_v53  ;;  %v561_v52 = vld [vmem:[#allocation4 + $0x4a8] sm:$0xff]  ;;  %v3114_v42 = vpack.c.bf16 %v618_v36, %v610_v35  ;;  %v632_v44 = vld [vmem:[#allocation4 + $0x6e0] sm:$0xff]  ;;  %v650_v59 = vld [vmem:[#allocation4 + $0x770] sm:$0xff] }
  0x86   : > { %v569_v53 = vld [vmem:[#allocation4 + $0x4e8] sm:$0xff]  ;;  %v659_v61 = vld [vmem:[#allocation4 + $0x7b8] sm:$0xff]  ;;  %v658_v7 = vld [vmem:[#allocation4 + $0x7b0] sm:$0xff] }
  0x87   : > { %v667_v62 = vld [vmem:[#allocation4 + $0x7f8] sm:$0xff]  ;;  %v666_v8 = vld [vmem:[#allocation4 + $0x7f0] sm:$0xff]  ;;  %v405_v36 = vld [vmem:[%s4810_s2] sm:$0xf] }
  0x88   : > { %3015 = vmatpush1.bf16.msra.mxu0 %v3014_v60  ;;  %3079 = vmatpush1.bf16.msra.mxu1 %v3078_v3  ;;  %v3036_v60 = vpack.c.bf16 %v569_v53, %v561_v52  ;;  %v3100_v3 = vpack.c.bf16 %v571_v55, %v563_v54  ;;  %v3054_v52 = vpack.c.bf16 %v632_v44, %v624_v43  ;;  %v640_v54 = vld [vmem:[#allocation4 + $0x720] sm:$0xff] }
  0x89   : > { %3017 = vmatprep.subr.bf16.mxu0 %v3016_v63  ;;  %3081 = vmatprep.subr.bf16.mxu1 %v3080_v1  ;;  %v577_v63 = vld [vmem:[#allocation4 + $0x528] sm:$0xff]  ;;  %v3118_v53 = vpack.c.bf16 %v634_v48, %v626_v47  ;;  %v648_v55 = vld [vmem:[#allocation4 + $0x760] sm:$0xff] }
  0x8a   : > { %v585_v1 = vld [vmem:[#allocation4 + $0x568] sm:$0xff] }
  0x8c   : > { %3019 = vmatpush1.bf16.msra.mxu0 %v3018_v9  ;;  %3083 = vmatpush1.bf16.msra.mxu1 %v3082_v10  ;;  %v3040_v9 = vpack.c.bf16 %v585_v1, %v577_v63  ;;  %v3104_v10 = vpack.c.bf16 %v587_v4, %v579_v2  ;;  %v3058_v63 = vpack.c.bf16 %v648_v55, %v640_v54  ;;  %v656_v2 = vld [vmem:[#allocation4 + $0x7a0] sm:$0xff] }
  0x8d   : > { %3021 = vmatprep.subr.bf16.mxu0 %v3020_v13  ;;  %3085 = vmatprep.subr.bf16.mxu1 %v3084_v14  ;;  %v593_v13 = vld [vmem:[#allocation4 + $0x5a8] sm:$0xff]  ;;  %v3122_v1 = vpack.c.bf16 %v650_v59, %v642_v58 }
  0x8e   : > { %v601_v14 = vld [vmem:[#allocation4 + $0x5e8] sm:$0xff] }
  0x90   : > { %3023 = vmatpush1.bf16.msra.mxu0 %v3022_v21  ;;  %3087 = vmatpush1.bf16.msra.mxu1 %v3086_v22  ;;  %v3044_v21 = vpack.c.bf16 %v601_v14, %v593_v13  ;;  %v3108_v22 = vpack.c.bf16 %v603_v16, %v595_v15  ;;  %v387_v13 = vunpack.c.l.s4 %v3406_v12  ;;  %v389_v14 = vlaneseq }
  0x91   : > { %3025 = vmatprep.subr.bf16.mxu0 %v3024_v25  ;;  %3089 = vmatprep.subr.bf16.mxu1 %v3088_v26  ;;  %v609_v25 = vld [vmem:[#allocation4 + $0x628] sm:$0xff] }
  0x92   : > { %v617_v26 = vld [vmem:[#allocation4 + $0x668] sm:$0xff]  ;;  %v388_v15 = vunpack.c.0.s8 %v387_v13  ;;  %v390_v16 = vshrl.u32 %v389_v14, 7 }
  0x94   : > { %3027 = vmatpush1.bf16.msra.mxu0 %v3026_v33  ;;  %3091 = vmatpush1.bf16.msra.mxu1 %v3090_v34  ;;  %v3048_v33 = vpack.c.bf16 %v617_v26, %v609_v25  ;;  %v3112_v34 = vpack.c.bf16 %v619_v28, %v611_v27  ;;  %v3407_v27 = vmov 0   ;;  %v4839_v28 = vmov 0.0  }
  0x95   : > { %3029 = vmatprep.subr.bf16.mxu0 %v3028_v37  ;;  %3093 = vmatprep.subr.bf16.mxu1 %v3092_v38  ;;  %v625_v37 = vld [vmem:[#allocation4 + $0x6a8] sm:$0xff]  ;;  %1617 = vst [vmem:[#allocation2 + $0x118] sm:$0xf0] %v4839_v28  ;;  %1614 = vst [vmem:[#allocation2 + $0x100] sm:$0xf0] %v4839_v28 }
  0x96   : > { %v633_v38 = vld [vmem:[#allocation4 + $0x6e8] sm:$0xff]  ;;  %3299 = vset.pattern.permute.xlu1 %v3407_v27  ;;  %3300 = vset.pattern.permute.xlu0 %v3407_v27  ;;  %1615 = vst [vmem:[#allocation2 + $0x108] sm:$0xf0] %v4839_v28  ;;  %1616 = vst [vmem:[#allocation2 + $0x110] sm:$0xf0] %v4839_v28 }
  0x97   : > { %1618 = vst [vmem:[#allocation2 + $0x120] sm:$0xf0] %v4839_v28  ;;  %1619 = vst [vmem:[#allocation2 + $0x128] sm:$0xf0] %v4839_v28 }
  0x98   : > { %3031 = vmatpush1.bf16.msra.mxu0 %v3030_v45  ;;  %3095 = vmatpush1.bf16.msra.mxu1 %v3094_v46  ;;  %v3052_v45 = vpack.c.bf16 %v633_v38, %v625_v37  ;;  %v3116_v46 = vpack.c.bf16 %v635_v40, %v627_v39  ;;  %1620 = vst [vmem:[#allocation2 + $0x130] sm:$0xf0] %v4839_v28  ;;  %1621 = vst [vmem:[#allocation2 + $0x138] sm:$0xf0] %v4839_v28  ;;  %v409_v39 = vld [vmem:[%s4811_s3] sm:$0xf] }
  0x99   : > { %3033 = vmatprep.subr.bf16.mxu0 %v3032_v0  ;;  %3097 = vmatprep.subr.bf16.mxu1 %v3096_v49  ;;  %v641_v0 = vld [vmem:[#allocation4 + $0x728] sm:$0xff]  ;;  %2371 = vst [vmem:[#allocation3 + $0x240] sm:$0xf0] %v4839_v28  ;;  %2372 = vst [vmem:[#allocation3 + $0x248] sm:$0xf0] %v4839_v28 }
  0x9a   : > { %v649_v49 = vld [vmem:[#allocation4 + $0x768] sm:$0xff]  ;;  %2373 = vst [vmem:[#allocation3 + $0x250] sm:$0xf0] %v4839_v28  ;;  %2374 = vst [vmem:[#allocation3 + $0x258] sm:$0xf0] %v4839_v28 }
  0x9b   : > { %2375 = vst [vmem:[#allocation3 + $0x260] sm:$0xf0] %v4839_v28  ;;  %2376 = vst [vmem:[#allocation3 + $0x268] sm:$0xf0] %v4839_v28 }
  0x9c   : > { %3035 = vmatpush1.bf16.msra.mxu0 %v3034_v56  ;;  %3099 = vmatpush1.bf16.msra.mxu1 %v3098_v57  ;;  %v3056_v56 = vpack.c.bf16 %v649_v49, %v641_v0  ;;  %v3120_v57 = vpack.c.bf16 %v651_v51, %v643_v50  ;;  %2377 = vst [vmem:[#allocation3 + $0x270] sm:$0xf0] %v4839_v28  ;;  %2378 = vst [vmem:[#allocation3 + $0x278] sm:$0xf0] %v4839_v28 }
  0x9d   : > { %3037 = vmatprep.subr.bf16.mxu0 %v3036_v60  ;;  %3101 = vmatprep.subr.bf16.mxu1 %v3100_v3  ;;  %v657_v60 = vld [vmem:[#allocation4 + $0x7a8] sm:$0xff] }
  0x9e   : > { %v665_v3 = vld [vmem:[#allocation4 + $0x7e8] sm:$0xff] }
  0x9f   : > { %v3060_v4 = vpack.c.bf16 %v665_v3, %v657_v60 }
  0xa0   : > { %3039 = vmatpush1.bf16.msra.mxu0 %v3038_v5  ;;  %3103 = vmatpush1.bf16.msra.mxu1 %v3102_v6  ;;  %v3124_v5 = vpack.c.bf16 %v667_v62, %v659_v61  ;;  %v664_v6 = vld [vmem:[#allocation4 + $0x7e0] sm:$0xff] }
  0xa1   : > { %3041 = vmatprep.subr.bf16.mxu0 %v3040_v9  ;;  %3105 = vmatprep.subr.bf16.mxu1 %v3104_v10  ;;  %v3062_v9 = vpack.c.bf16 %v664_v6, %v656_v2  ;;  %v3126_v10 = vpack.c.bf16 %v666_v8, %v658_v7  ;;  %v3647_v8 = vand.u32 127, %v389_v14 }
  0xa3   : > { %vm4824_vm1 = vcmp.lt.s32.totalorder %v3647_v8, 96  ;;  %vm4823_vm2 = vcmp.lt.s32.totalorder %v3647_v8, 32  ;;  %vm4825_vm4 = vcmp.lt.s32.totalorder %v3647_v8, 127  ;;  %vm4826_vm5 = vcmp.lt.s32.totalorder %v3647_v8, 1 }
  0xa4   : > { %3043 = vmatpush1.bf16.msra.mxu0 %v3042_v17  ;;  %3107 = vmatpush1.bf16.msra.mxu1 %v3106_v18  ;;  %v391_v17 = vsub.s32 %v388_v15, %v390_v16 }
  0xa5   : > { %3045 = vmatprep.subr.bf16.mxu0 %v3044_v21  ;;  %3109 = vmatprep.subr.bf16.mxu1 %v3108_v22 }
  0xa8   : > { %3047 = vmatpush1.bf16.msra.mxu0 %v3046_v29  ;;  %3111 = vmatpush1.bf16.msra.mxu1 %v3110_v30 }
  0xa9   : > { %3049 = vmatprep.subr.bf16.mxu0 %v3048_v33  ;;  %3113 = vmatprep.subr.bf16.mxu1 %v3112_v34 }
  0xac   : > { %3051 = vmatpush1.bf16.msra.mxu0 %v3050_v41  ;;  %3115 = vmatpush1.bf16.msra.mxu1 %v3114_v42 }
  0xad   : > { %3053 = vmatprep.subr.bf16.mxu0 %v3052_v45  ;;  %3117 = vmatprep.subr.bf16.mxu1 %v3116_v46 }
  0xb0   : > { %3055 = vmatpush1.bf16.msra.mxu0 %v3054_v52  ;;  %3119 = vmatpush1.bf16.msra.mxu1 %v3118_v53 }
  0xb1   : > { %3057 = vmatprep.subr.bf16.mxu0 %v3056_v56  ;;  %3121 = vmatprep.subr.bf16.mxu1 %v3120_v57 }
  0xb4   : > { %3059 = vmatpush1.bf16.msra.mxu0 %v3058_v63  ;;  %3123 = vmatpush1.bf16.msra.mxu1 %v3122_v1 }
  0xb5   : > { %3061 = vmatprep.subr.bf16.mxu0 %v3060_v4  ;;  %3125 = vmatprep.subr.bf16.mxu1 %v3124_v5 }
  0xb8   : > { %3063 = vmatpush1.bf16.msra.mxu0 %v3062_v9  ;;  %3127 = vmatpush1.bf16.msra.mxu1 %v3126_v10 }
  0xbb   : > { %875 = vmatmul.mubr.f32.vlgmr.msra.gmra.mrb[2].mxu0 %v3306_v11  ;;  %946 = vmatmul.mubr.f32.vlgmr.msra.gmra.mrb[2].mxu1 %v3306_v11 }
  0xbc   : > { %1808 = vmatprep.mubr.f32.mxu1 %v4839_v28  ;;  %1737 = vmatprep.mubr.f32.mxu0 %v4839_v28 }
  0xcf   : > { %v382_v18 = vpop.xlane.xlu0 %381 }
  0xd0   : > { %v384_v19 = vmul.f32 0.00390625, %v382_v18 }
  0xd2   : > { %v392_v20 = vrot.slane %v384_v19, %v391_v17 }
  0xd4   : > { %v394_v21 = vsub.f32 %v3306_v11, %v392_v20 }
  0xd6   : > { %v395_v22 = vmul.f32 %v394_v21, %v394_v21 }
  0xd8   : > { %v397_v23 = vcombine.high %v395_v22, %v395_v22  ;;  %v399_v24 = vsel %vm377_vm0, %v395_v22, 0.0 }
  0xda   : > { %v400_v25 = vsel %vm377_vm0, %v397_v23, 0.0 }
  0xdb   : > { %v401_v26 = vadd.f32 %v400_v25, %v399_v24 }
  0xdd   : > { %402 = vadd.xlane.f32.xlu0 %v401_v26  ;;  %v3673_v26 = vadd.s32 896, %v3647_v8 }
  0xdf   : > { %vm4822_vm3 = vcmp.ge.s32.totalorder %v3673_v26, 992 }
 0x14e   : > { %v805_v29 = vpop.f32.mrb[0].mxu1  ;;  %v734_v30 = vpop.f32.mrb[0].mxu0 }
 0x14f   : > { %2365 = vst [vmem:[#allocation3 + $0x250] sm:$0xf] %v805_v29  ;;  %v807_v31 = vpop.f32.mrb[1].mxu1  ;;  %2363 = vst [vmem:[#allocation3 + $0x240] sm:$0xf] %v734_v30  ;;  %v736_v32 = vpop.f32.mrb[1].mxu0 }
 0x150   : > { %2366 = vst [vmem:[#allocation3 + $0x258] sm:$0xf] %v807_v31  ;;  %2364 = vst [vmem:[#allocation3 + $0x248] sm:$0xf] %v736_v32 }
 0x16a   : > { %v403_v33 = vpop.xlane.xlu0 %402 }
 0x16b   : > { %v404_v34 = vmul.f32 0.00390625, %v403_v33 }
 0x16d   : > { %v406_v35 = vadd.f32 1e-05, %v404_v34 }
 0x16f   : > { %3302 = vrsqrt.f32 %v406_v35 }
 0x179   : > { %v3303_v37 = vpop.eup %3302 }
 0x17a   : > { %v408_v38 = vmul.f32 %v3303_v37, %v405_v36 }
 0x17c   : > { %954 = vperm.xlu1 %3299, %v408_v38   ;;  %v410_v40 = vmul.f32 %v408_v38, %v384_v19 }
 0x17e   : > { %v411_v41 = vsub.f32 %v409_v39, %v410_v40 }
 0x180   : > { %967 = vperm.xlu1 %3299, %v411_v41  }
 0x18e   : > { %v876_v42 = vpop.f32.mrb[2].mxu0  ;;  %v947_v43 = vpop.f32.mrb[2].mxu1 }
 0x18f   : > { %2367 = vst [vmem:[#allocation3 + $0x260] sm:$0xf] %v876_v42  ;;  %2369 = vst [vmem:[#allocation3 + $0x270] sm:$0xf] %v947_v43  ;;  %v878_v44 = vpop.f32.mrb[3].mxu0  ;;  %v949_v45 = vpop.f32.mrb[3].mxu1 }
 0x190   : > { %2368 = vst [vmem:[#allocation3 + $0x268] sm:$0xf] %v878_v44  ;;  %2370 = vst [vmem:[#allocation3 + $0x278] sm:$0xf] %v949_v45 }
 0x1fb   : > { %v955_v46 = vpop.permute.xlu1 %954 }
 0x1fc   : > { %v958_v47 = vmul.f32 %v955_v46, %v736_v32  ;;  %v957_v48 = vmul.f32 %v955_v46, %v734_v30  ;;  %v959_v0 = vmul.f32 %v955_v46, %v805_v29  ;;  %v964_v49 = vmul.f32 %v955_v46, %v949_v45 }
 0x1fd   : > { %v961_v51 = vmul.f32 %v955_v46, %v876_v42  ;;  %v962_v52 = vmul.f32 %v955_v46, %v878_v44  ;;  %v963_v53 = vmul.f32 %v955_v46, %v947_v43  ;;  %v960_v54 = vmul.f32 %v955_v46, %v807_v31 }
 0x1ff   : > { %v968_v50 = vpop.permute.xlu1 %967 }
 0x200   : > { %v971_v55 = vadd.f32 %v968_v50, %v958_v47  ;;  %v970_v56 = vadd.f32 %v968_v50, %v957_v48  ;;  %v972_v57 = vadd.f32 %v968_v50, %v959_v0  ;;  %v977_v58 = vadd.f32 %v968_v50, %v964_v49 }
 0x201   : > { %v974_v59 = vadd.f32 %v968_v50, %v961_v51  ;;  %v975_v60 = vadd.f32 %v968_v50, %v962_v52  ;;  %v976_v3 = vadd.f32 %v968_v50, %v963_v53  ;;  %v973_v61 = vadd.f32 %v968_v50, %v960_v54 }
 0x202   : > { %v979_v62 = vmax.f32 %v971_v55, 0.0  ;;  %v978_v63 = vmax.f32 %v970_v56, 0.0  ;;  %v980_v1 = vmax.f32 %v972_v57, 0.0  ;;  %v3604_v2 = vmax.f32 %v977_v58, 0.0 }
 0x203   : > { %v982_v4 = vmax.f32 %v974_v59, 0.0  ;;  %v983_v5 = vmax.f32 %v975_v60, 0.0  ;;  %v3606_v6 = vmax.f32 %v976_v3, 0.0  ;;  %v981_v7 = vmax.f32 %v973_v61, 0.0 }
 0x204   : > { %1125 = vrot.lane.b32.xlu1 %v979_v62, %s3409_s12  ;;  %1455 = vst [vmem:[#allocation2 + $0x88] sm:$0xf] %v979_v62  ;;  %1123 = vrot.lane.b32.xlu0 %v978_v63, %s3409_s12  ;;  %1454 = vst [vmem:[#allocation2 + $0x80] sm:$0xf] %v978_v63  ;;  %v988_v57 = vadd.s32 128, %v3647_v8 }
 0x205   : > { %1456 = vst [vmem:[#allocation2 + $0x90] sm:$0xf] %v980_v1  ;;  %1461 = vst [vmem:[#allocation2 + $0xb8] sm:$0xf] %v3604_v2 }
 0x206   : > { %1458 = vst [vmem:[#allocation2 + $0xa0] sm:$0xf] %v982_v4  ;;  %1459 = vst [vmem:[#allocation2 + $0xa8] sm:$0xf] %v983_v5 }
 0x207   : > { %1460 = vst [vmem:[#allocation2 + $0xb0] sm:$0xf] %v3606_v6  ;;  %1457 = vst [vmem:[#allocation2 + $0x98] sm:$0xf] %v981_v7 }
 0x208   : > { %1148 = vrot.lane.b32.xlu1 %v978_v63, %s3410_s18  ;;  %1127 = vrot.lane.b32.xlu0 %v980_v1, %s3409_s12 }
 0x20c   : > { %1162 = vrot.lane.b32.xlu1 %v3604_v2, %s3410_s18  ;;  %1137 = vrot.lane.b32.xlu0 %v3604_v2, %s3409_s12 }
 0x210   : > { %1150 = vrot.lane.b32.xlu1 %v979_v62, %s3410_s18  ;;  %1156 = vrot.lane.b32.xlu0 %v982_v4, %s3410_s18 }
 0x214   : > { %1152 = vrot.lane.b32.xlu1 %v980_v1, %s3410_s18  ;;  %1133 = vrot.lane.b32.xlu0 %v983_v5, %s3409_s12 }
 0x218   : > { %1160 = vrot.lane.b32.xlu1 %v3606_v6, %s3410_s18  ;;  %1135 = vrot.lane.b32.xlu0 %v3606_v6, %s3409_s12 }
 0x21c   : > { %1129 = vrot.lane.b32.xlu1 %v981_v7, %s3409_s12  ;;  %1370 = vrot.lane.b32.xlu0 %v980_v1, %s3411_s11 }
 0x220   : > { %1154 = vrot.lane.b32.xlu1 %v981_v7, %s3410_s18  ;;  %1392 = vrot.lane.b32.xlu0 %v979_v62, %s3412_s20 }
 0x224   : > { %1131 = vrot.lane.b32.xlu1 %v982_v4, %s3409_s12  ;;  %1404 = vrot.lane.b32.xlu0 %v3604_v2, %s3412_s20 }
 0x228   : > { %1158 = vrot.lane.b32.xlu1 %v983_v5, %s3410_s18  ;;  %1374 = vrot.lane.b32.xlu0 %v982_v4, %s3411_s11 }
 0x22c   : > { %1368 = vrot.lane.b32.xlu1 %v979_v62, %s3411_s11  ;;  %1396 = vrot.lane.b32.xlu0 %v981_v7, %s3412_s20  ;;  %v1006_v62 = vand.u32 31, %v988_v57 }
 0x22e   : > { %vm3757_vm6 = vcmp.eq.s32.totalorder %v1006_v62, 0  ;;  %vm3761_vm7 = vcmp.eq.s32.totalorder %v1006_v62, 31 }
 0x230   : > { %1390 = vrot.lane.b32.xlu1 %v978_v63, %s3412_s20  ;;  %1378 = vrot.lane.b32.xlu0 %v3606_v6, %s3411_s11 }
 0x234   : > { %1366 = vrot.lane.b32.xlu1 %v978_v63, %s3411_s11  ;;  %1400 = vrot.lane.b32.xlu0 %v983_v5, %s3412_s20 }
 0x238   : > { %1372 = vrot.lane.b32.xlu1 %v981_v7, %s3411_s11  ;;  %v2452_v7 = vld [vmem:[#allocation3 + $0x240] sm:$0xff] }
 0x23c   : > { %1394 = vrot.lane.b32.xlu1 %v980_v1, %s3412_s20 }
 0x240   : > { %1376 = vrot.lane.b32.xlu1 %v983_v5, %s3411_s11 }
 0x244   : > { %1398 = vrot.lane.b32.xlu1 %v982_v4, %s3412_s20  ;;  %v999_v4 = vand.u32 31, %v3647_v8 }
 0x246   : > { %vm3781_vm8 = vcmp.eq.s32.totalorder %v999_v4, 0  ;;  %vm3785_vm9 = vcmp.eq.s32.totalorder %v999_v4, 31 }
 0x276   : > { %v1126_v9 = vpop.permute.xlu1 %1125  ;;  %v1124_v10 = vpop.permute.xlu0 %1123 }
 0x277   : > { %v3652_v11 = vsel %vm4824_vm1, %v1124_v10, %v1126_v9 }
 0x278   : > { %v1574_v12 = vrot.slane %v3652_v11, 4 }
 0x27a   : > { %v1149_v13 = vpop.permute.xlu1 %1148  ;;  %v1128_v15 = vpop.permute.xlu0 %1127  ;;  %1590 = vst [vmem:[#allocation2 + $0xc0] sm:$0xf0] %v1574_v12 }
 0x27b   : > { %v3657_v16 = vsel %vm4824_vm1, %v1126_v9, %v1128_v15 }
 0x27c   : > { %v1575_v14 = vrot.slane %v3657_v16, 4 }
 0x27e   : > { %v1163_v17 = vpop.permute.xlu1 %1162  ;;  %v1138_v18 = vpop.permute.xlu0 %1137  ;;  %1591 = vst [vmem:[#allocation2 + $0xc8] sm:$0xf0] %v1575_v14  ;;  %v4866_v14 = vmov 0 }
 0x27f   : > { %v1171_v19 = vsel %vm4823_vm2, %v1163_v17, %v1149_v13  ;;  %v1147_v34 = vsel %vm4824_vm1, %v1138_v18, %v1124_v10  ;;  %v4867_v14 = vsel %vm3781_vm8, 4294967295, %v4866_v14 }
 0x280   : > { %v3666_v20 = vsel %vm4823_vm2, %v3652_v11, %v1171_v19 }
 0x281   : > { %v1310_v21 = vrot.slane %v3666_v20, 4 }
 0x282   : > { %v1151_v22 = vpop.permute.xlu1 %1150  ;;  %v1157_v23 = vpop.permute.xlu0 %1156 }
 0x283   : > { %v1170_v24 = vsel %vm4823_vm2, %v1149_v13, %v1151_v22  ;;  %1326 = vst [vmem:[#allocation2] sm:$0xf0] %v1310_v21  ;;  %v989_v21 = vadd.s32 256, %v3647_v8 }
 0x284   : > { %1222 = vrot.lane.b32.xlu1 %v1170_v24, %s3411_s11  ;;  %v1311_v25 = vrot.slane %v1170_v24, 4 }
 0x286   : > { %1327 = vst [vmem:[#allocation2 + $0x8] sm:$0xf0] %v1311_v25  ;;  %v1153_v27 = vpop.permute.xlu1 %1152  ;;  %v1134_v29 = vpop.permute.xlu0 %1133 }
 0x287   : > { %v1169_v30 = vsel %vm4823_vm2, %v1151_v22, %v1153_v27  ;;  %v990_v22 = vadd.s32 384, %v3647_v8 }
 0x288   : > { %v1312_v31 = vrot.slane %v1169_v30, 4  ;;  %1224 = vrot.lane.b32.xlu0 %v1169_v30, %s3411_s11 }
 0x28a   : > { %1328 = vst [vmem:[#allocation2 + $0x10] sm:$0xf0] %v1312_v31  ;;  %v1161_v32 = vpop.permute.xlu1 %1160  ;;  %v1136_v33 = vpop.permute.xlu0 %1135  ;;  %v1013_v31 = vand.u32 31, %v989_v21 }
 0x28b   : > { %v3683_v35 = vsel %vm4823_vm2, %v1161_v32, %v1163_v17  ;;  %v3687_v36 = vsel %vm4824_vm1, %v1136_v33, %v1138_v18  ;;  %v3691_v37 = vsel %vm4824_vm1, %v1134_v29, %v1136_v33  ;;  %v4868_v17 = vmov 0 }
 0x28c   : > { %1247 = vrot.lane.b32.xlu0 %v1170_v24, %s3412_s20  ;;  %v1317_v38 = vrot.slane %v3683_v35, 4  ;;  %v3698_v39 = vsel %vm4822_vm3, %v3683_v35, %v1147_v34  ;;  %v1580_v40 = vrot.slane %v3687_v36, 4  ;;  %v1579_v41 = vrot.slane %v3691_v37, 4 }
 0x28d   : > { %v1581_v42 = vrot.slane %v3698_v39, 4  ;;  %v4869_v17 = vsel %vm3785_vm9, 4294967295, %v4868_v17  ;;  %vm3811_vm10 = vcmp.eq.s32.totalorder %v1013_v31, 0  ;;  %vm3819_vm12 = vcmp.eq.s32.totalorder %v1013_v31, 31 }
 0x28e   : > { %v1130_v43 = vpop.permute.xlu1 %1129  ;;  %1333 = vst [vmem:[#allocation2 + $0x38] sm:$0xf0] %v1317_v38  ;;  %1596 = vst [vmem:[#allocation2 + $0xf0] sm:$0xf0] %v1580_v40  ;;  %v3710_v46 = vpop.permute.xlu0 %1370  ;;  %v991_v38 = vadd.s32 512, %v3647_v8  ;;  %v992_v40 = vadd.s32 640, %v3647_v8 }
 0x28f   : > { %1595 = vst [vmem:[#allocation2 + $0xe8] sm:$0xf0] %v1579_v41  ;;  %v3705_v44 = vsel %vm4824_vm1, %v1128_v15, %v1130_v43  ;;  %1597 = vst [vmem:[#allocation2 + $0xf8] sm:$0xf0] %v1581_v42 }
 0x290   : > { %1259 = vrot.lane.b32.xlu0 %v3683_v35, %s3412_s20  ;;  %v1576_v45 = vrot.slane %v3705_v44, 4 }
 0x292   : > { %v1155_v47 = vpop.permute.xlu1 %1154  ;;  %1592 = vst [vmem:[#allocation2 + $0xd0] sm:$0xf0] %v1576_v45  ;;  %v3728_v54 = vpop.permute.xlu0 %1392  ;;  %v4876_v45 = vmov 0 }
 0x293   : > { %v1168_v48 = vsel %vm4823_vm2, %v1153_v27, %v1155_v47  ;;  %v3716_v0 = vsel %vm4823_vm2, %v1155_v47, %v1157_v23  ;;  %v1027_v47 = vand.u32 31, %v991_v38 }
 0x294   : > { %1226 = vrot.lane.b32.xlu1 %v1168_v48, %s3411_s11  ;;  %v1313_v49 = vrot.slane %v1168_v48, 4  ;;  %1228 = vrot.lane.b32.xlu0 %v3716_v0, %s3411_s11  ;;  %v1314_v50 = vrot.slane %v3716_v0, 4 }
 0x295   : > { %vm3856_vm14 = vcmp.eq.s32.totalorder %v1027_v47, 0  ;;  %vm3864_vm0 = vcmp.eq.s32.totalorder %v1027_v47, 31 }
 0x296   : > { %1329 = vst [vmem:[#allocation2 + $0x18] sm:$0xf0] %v1313_v49  ;;  %1330 = vst [vmem:[#allocation2 + $0x20] sm:$0xf0] %v1314_v50  ;;  %v1132_v51 = vpop.permute.xlu1 %1131  ;;  %v3748_v63 = vpop.permute.xlu0 %1404 }
 0x297   : > { %v3724_v52 = vsel %vm4824_vm1, %v1132_v51, %v1134_v29  ;;  %v1143_v53 = vsel %vm4824_vm1, %v1130_v43, %v1132_v51  ;;  %v4874_v43 = vmov 0 }
 0x298   : > { %1249 = vrot.lane.b32.xlu1 %v1169_v30, %s3412_s20  ;;  %1251 = vrot.lane.b32.xlu0 %v1168_v48, %s3412_s20  ;;  %v1578_v55 = vrot.slane %v3724_v52, 4  ;;  %v1577_v56 = vrot.slane %v1143_v53, 4  ;;  %v4875_v43 = vsel %vm3819_vm12, 4294967295, %v4874_v43  ;;  %v1034_v48 = vand.u32 31, %v992_v40 }
 0x29a   : > { %v1159_v58 = vpop.permute.xlu1 %1158  ;;  %1594 = vst [vmem:[#allocation2 + $0xe0] sm:$0xf0] %v1578_v55  ;;  %1593 = vst [vmem:[#allocation2 + $0xd8] sm:$0xf0] %v1577_v56  ;;  %v3771_v13 = vpop.permute.xlu0 %1374  ;;  %vm3860_vm15 = vcmp.eq.s32.totalorder %v1034_v48, 0  ;;  %vm3868_vm3 = vcmp.eq.s32.totalorder %v1034_v48, 31 }
 0x29b   : > { %v3736_v59 = vsel %vm4823_vm2, %v1159_v58, %v1161_v32  ;;  %v3740_v60 = vsel %vm4823_vm2, %v1157_v23, %v1159_v58  ;;  %v1020_v32 = vand.u32 31, %v990_v22 }
 0x29c   : > { %1504 = vrot.lane.b32.xlu1 %v3657_v16, %s3411_s11  ;;  %1506 = vrot.lane.b32.xlu0 %v3705_v44, %s3411_s11  ;;  %v1316_v3 = vrot.slane %v3736_v59, 4  ;;  %v1315_v61 = vrot.slane %v3740_v60, 4 }
 0x29d   : > { %vm3815_vm11 = vcmp.eq.s32.totalorder %v1020_v32, 0  ;;  %vm3823_vm13 = vcmp.eq.s32.totalorder %v1020_v32, 31 }
 0x29e   : > { %v1369_v1 = vpop.permute.xlu1 %1368  ;;  %1332 = vst [vmem:[#allocation2 + $0x30] sm:$0xf0] %v1316_v3  ;;  %1331 = vst [vmem:[#allocation2 + $0x28] sm:$0xf0] %v1315_v61  ;;  %v1397_v33 = vpop.permute.xlu0 %1396  ;;  %v4877_v45 = vsel %vm3823_vm13, 4294967295, %v4876_v45 }
 0x29f   : > { %v1387_v10 = vsel %vm4825_vm4, %v1369_v1, %v3710_v46 }
 0x2a0   : > { %1526 = vrot.lane.b32.xlu1 %v3652_v11, %s3412_s20  ;;  %1528 = vrot.lane.b32.xlu0 %v3657_v16, %s3412_s20 }
 0x2a2   : > { %v1391_v9 = vpop.permute.xlu1 %1390  ;;  %v3838_v55 = vpop.permute.xlu0 %1378 }
 0x2a3   : > { %v1412_v12 = vsel %vm4826_vm5, %v1391_v9, %v3728_v54 }
 0x2a4   : > { %v1415_v15 = vsel %vm3757_vm6, %v1387_v10, %v1412_v12  ;;  %v1463_v16 = vsel %vm3761_vm7, %v1412_v12, %v1387_v10  ;;  %1502 = vrot.lane.b32.xlu1 %v3652_v11, %s3411_s11  ;;  %1510 = vrot.lane.b32.xlu0 %v3724_v52, %s3411_s11  ;;  %v1413_v11 = vsel %vm4826_vm5, %v3748_v63, %v1391_v9  ;;  %v4880_v9 = vmov 0 }
 0x2a5   : > { %v1431_v18 = vrot.slane %v1415_v15, 4  ;;  %v1479_v19 = vrot.slane %v1463_v16, 4  ;;  %v4881_v9 = vsel %vm3860_vm15, 4294967295, %v4880_v9  ;;  %v4884_v10 = vmov 0 }
 0x2a6   : > { %v3791_v23 = vpop.permute.xlu1 %1366  ;;  %v4885_v10 = vsel %vm3868_vm3, 4294967295, %v4884_v10 }
 0x2a7   : > { %1447 = vst [vmem:[#allocation2 + $0x48] sm:$0xf0] %v1431_v18  ;;  %1495 = vst [vmem:[#allocation2 + $0x88] sm:$0xf0] %v1479_v19  ;;  %v1388_v24 = vsel %vm4825_vm4, %v3791_v23, %v1369_v1 }
 0x2a8   : > { %v1414_v25 = vsel %vm3781_vm8, %v1388_v24, %v1413_v11  ;;  %v1462_v27 = vsel %vm3785_vm9, %v1413_v11, %v1388_v24  ;;  %1508 = vrot.lane.b32.xlu1 %v1143_v53, %s3411_s11  ;;  %1532 = vrot.lane.b32.xlu0 %v1143_v53, %s3412_s20 }
 0x2a9   : > { %v1430_v29 = vrot.slane %v1414_v25, 4  ;;  %v1478_v30 = vrot.slane %v1462_v27, 4 }
 0x2aa   : > { %v1373_v34 = vpop.permute.xlu1 %1372 }
 0x2ab   : > { %1446 = vst [vmem:[#allocation2 + $0x40] sm:$0xf0] %v1430_v29  ;;  %1494 = vst [vmem:[#allocation2 + $0x80] sm:$0xf0] %v1478_v30  ;;  %v1385_v49 = vsel %vm4825_vm4, %v1373_v34, %v3771_v13  ;;  %v1386_v50 = vsel %vm4825_vm4, %v3710_v46, %v1373_v34 }
 0x2ac   : > { %1530 = vrot.lane.b32.xlu1 %v3705_v44, %s3412_s20  ;;  %1232 = vrot.lane.b32.xlu0 %v3736_v59, %s3411_s11 }
 0x2ae   : > { %v1395_v44 = vpop.permute.xlu1 %1394 }
 0x2af   : > { %v1410_v51 = vsel %vm4826_vm5, %v1395_v44, %v1397_v33  ;;  %v1411_v53 = vsel %vm4826_vm5, %v3728_v54, %v1395_v44 }
 0x2b0   : > { %v1416_v56 = vsel %vm3811_vm10, %v1386_v50, %v1411_v53  ;;  %v1417_v57 = vsel %vm3815_vm11, %v1385_v49, %v1410_v51  ;;  %v1464_v58 = vsel %vm3819_vm12, %v1411_v53, %v1386_v50  ;;  %v1465_v46 = vsel %vm3823_vm13, %v1410_v51, %v1385_v49  ;;  %1230 = vrot.lane.b32.xlu1 %v3740_v60, %s3411_s11 }
 0x2b1   : > { %v1432_v3 = vrot.slane %v1416_v56, 4  ;;  %v1433_v61 = vrot.slane %v1417_v57, 4  ;;  %v1480_v54 = vrot.slane %v1464_v58, 4  ;;  %v1481_v62 = vrot.slane %v1465_v46, 4  ;;  %1255 = vrot.lane.b32.xlu0 %v3740_v60, %s3412_s20 }
 0x2b2   : > { %v1377_v1 = vpop.permute.xlu1 %1376 }
 0x2b3   : > { %1448 = vst [vmem:[#allocation2 + $0x50] sm:$0xf0] %v1432_v3  ;;  %1449 = vst [vmem:[#allocation2 + $0x58] sm:$0xf0] %v1433_v61  ;;  %v1384_v15 = vsel %vm4825_vm4, %v3771_v13, %v1377_v1 }
 0x2b4   : > { %1496 = vst [vmem:[#allocation2 + $0x90] sm:$0xf0] %v1480_v54  ;;  %1497 = vst [vmem:[#allocation2 + $0x98] sm:$0xf0] %v1481_v62  ;;  %1253 = vrot.lane.b32.xlu1 %v3716_v0, %s3412_s20  ;;  %v3872_v0 = vpop.permute.xlu0 %1400 }
 0x2b5   : > { %1402 = vrot.lane.b32.xlu0 %v3606_v6, %s3412_s20  ;;  %v1383_v6 = vsel %vm4825_vm4, %v1377_v1, %v3838_v55 }
 0x2b6   : > { %v1399_v12 = vpop.permute.xlu1 %1398 }
 0x2b7   : > { %v1408_v16 = vsel %vm4826_vm5, %v1399_v12, %v3872_v0  ;;  %v1409_v18 = vsel %vm4826_vm5, %v1397_v33, %v1399_v12 }
 0x2b8   : > { %v1418_v19 = vsel %vm3856_vm14, %v1384_v15, %v1409_v18  ;;  %v1419_v21 = vsel %vm3860_vm15, %v1383_v6, %v1408_v16  ;;  %v1466_v22 = vsel %vm3864_vm0, %v1409_v18, %v1384_v15  ;;  %v1467_v11 = vsel %vm3868_vm3, %v1408_v16, %v1383_v6  ;;  %1245 = vrot.lane.b32.xlu1 %v3666_v20, %s3412_s20 }
 0x2b9   : > { %v1434_v13 = vrot.slane %v1418_v19, 4  ;;  %v1435_v24 = vrot.slane %v1419_v21, 4  ;;  %v1482_v25 = vrot.slane %v1466_v22, 4  ;;  %v1483_v27 = vrot.slane %v1467_v11, 4  ;;  %1540 = vrot.lane.b32.xlu0 %v3698_v39, %s3412_s20 }
 0x2bb   : > { %1450 = vst [vmem:[#allocation2 + $0x60] sm:$0xf0] %v1434_v13  ;;  %1451 = vst [vmem:[#allocation2 + $0x68] sm:$0xf0] %v1435_v24 }
 0x2bc   : > { %1498 = vst [vmem:[#allocation2 + $0xa0] sm:$0xf0] %v1482_v25  ;;  %1499 = vst [vmem:[#allocation2 + $0xa8] sm:$0xf0] %v1483_v27  ;;  %1220 = vrot.lane.b32.xlu1 %v3666_v20, %s3411_s11 }
 0x2bd   : > { %1257 = vrot.lane.b32.xlu0 %v3736_v59, %s3412_s20 }
 0x2c0   : > { %1380 = vrot.lane.b32.xlu1 %v3604_v2, %s3411_s11  ;;  %v1663_v2 = vld [vmem:[%s4813_s5] sm:$0xff] }
 0x2c1   : > { %1514 = vrot.lane.b32.xlu0 %v3687_v36, %s3411_s11 }
 0x2c4   : > { %1234 = vrot.lane.b32.xlu1 %v3683_v35, %s3411_s11 }
 0x2c5   : > { %1536 = vrot.lane.b32.xlu0 %v3691_v37, %s3412_s20 }
 0x2c8   : > { %1512 = vrot.lane.b32.xlu1 %v3691_v37, %s3411_s11 }
 0x2c9   : > { %1538 = vrot.lane.b32.xlu0 %v3687_v36, %s3412_s20 }
 0x2cc   : > { %1534 = vrot.lane.b32.xlu1 %v3724_v52, %s3412_s20 }
 0x2d0   : > { %1516 = vrot.lane.b32.xlu1 %v3698_v39, %s3411_s11 }
 0x2d4   : > { %1666 = vperm.xlu1 %3299, %v1663_v2  }
 0x2f6   : > { %v3924_v59 = vpop.permute.xlu1 %1222 }
 0x2fa   : > { %v3920_v20 = vpop.permute.xlu0 %1224 }
 0x2fe   : > { %v3922_v35 = vpop.permute.xlu0 %1247 }
 0x302   : > { %v3926_v37 = vpop.permute.xlu0 %1259 }
 0x306   : > { %v1227_v36 = vpop.permute.xlu1 %1226  ;;  %v1229_v29 = vpop.permute.xlu0 %1228 }
 0x307   : > { %v1241_v39 = vsel %vm4825_vm4, %v3920_v20, %v1227_v36  ;;  %v1240_v31 = vsel %vm4825_vm4, %v1227_v36, %v1229_v29 }
 0x30a   : > { %v1250_v30 = vpop.permute.xlu1 %1249  ;;  %v1252_v52 = vpop.permute.xlu0 %1251 }
 0x30b   : > { %v1267_v32 = vsel %vm4826_vm5, %v3922_v35, %v1250_v30  ;;  %v1266_v33 = vsel %vm4826_vm5, %v1250_v30, %v1252_v52 }
 0x30c   : > { %v1288_v34 = vsel %vm3811_vm10, %v1241_v39, %v1267_v32  ;;  %v1352_v38 = vsel %vm3819_vm12, %v1267_v32, %v1241_v39  ;;  %v1289_v40 = vsel %vm3815_vm11, %v1240_v31, %v1266_v33  ;;  %v1353_v44 = vsel %vm3823_vm13, %v1266_v33, %v1240_v31 }
 0x30d   : > { %1296 = vst [vmem:[#allocation2 + $0x10] sm:$0xf] %v1288_v34  ;;  %1360 = vst [vmem:[#allocation2 + $0x50] sm:$0xf] %v1352_v38  ;;  %v1642_v38 = vld [vmem:[#allocation2 + $0x98] sm:$0xff] }
 0x30e   : > { %1297 = vst [vmem:[#allocation2 + $0x18] sm:$0xf] %v1289_v40  ;;  %1361 = vst [vmem:[#allocation2 + $0x58] sm:$0xf] %v1353_v44  ;;  %v3946_v47 = vpop.permute.xlu1 %1504  ;;  %v1507_v48 = vpop.permute.xlu0 %1506 }
 0x30f   : > { %v1523_v51 = vsel %vm4825_vm4, %v3946_v47, %v1507_v48 }
 0x312   : > { %v3948_v49 = vpop.permute.xlu1 %1526  ;;  %v1529_v50 = vpop.permute.xlu0 %1528 }
 0x313   : > { %v1548_v53 = vsel %vm4826_vm5, %v3948_v49, %v1529_v50 }
 0x314   : > { %v1551_v56 = vsel %vm3757_vm6, %v1523_v51, %v1548_v53  ;;  %v1599_v57 = vsel %vm3761_vm7, %v1548_v53, %v1523_v51  ;;  %v1625_v3 = vld [vmem:[#allocation2 + $0x10] sm:$0xff] }
 0x315   : > { %v1626_v58 = vld [vmem:[#allocation2 + $0x18] sm:$0xff]  ;;  %1559 = vst [vmem:[#allocation2 + $0xc8] sm:$0xf] %v1551_v56  ;;  %1607 = vst [vmem:[#allocation2 + $0x108] sm:$0xf] %v1599_v57  ;;  %v1633_v54 = vld [vmem:[#allocation2 + $0x50] sm:$0xff] }
 0x316   : > { %v1634_v46 = vld [vmem:[#allocation2 + $0x58] sm:$0xff]  ;;  %v3960_v62 = vpop.permute.xlu1 %1502  ;;  %v3962_v1 = vpop.permute.xlu0 %1510  ;;  %v3138_v12 = vpack.c.bf16 %v1633_v54, %v1625_v3  ;;  %v1641_v51 = vld [vmem:[#allocation2 + $0x90] sm:$0xff]  ;;  %v993_v57 = vadd.s32 768, %v3647_v8 }
 0x317   : > { %v3136_v61 = vpack.c.bf16 %v1634_v46, %v1626_v58  ;;  %v1242_v46 = vsel %vm4825_vm4, %v3924_v59, %v3920_v20  ;;  %v1524_v54 = vsel %vm4825_vm4, %v3960_v62, %v3946_v47 }
 0x319   : > { %3137 = vmatprep.subr.bf16.mxu1 %v3136_v61 }
 0x31a   : > { %3139 = vmatpush1.bf16.msra.mxu1 %v3138_v12  ;;  %v1509_v6 = vpop.permute.xlu1 %1508  ;;  %v3964_v15 = vpop.permute.xlu0 %1532 }
 0x31b   : > { %v1521_v19 = vsel %vm4825_vm4, %v1509_v6, %v3962_v1  ;;  %v1522_v21 = vsel %vm4825_vm4, %v1507_v48, %v1509_v6 }
 0x31e   : > { %v1531_v16 = vpop.permute.xlu1 %1530  ;;  %v3966_v18 = vpop.permute.xlu0 %1232 }
 0x31f   : > { %v1546_v22 = vsel %vm4826_vm5, %v1531_v16, %v3964_v15  ;;  %v1547_v11 = vsel %vm4826_vm5, %v1529_v50, %v1531_v16  ;;  %v1048_v16 = vand.u32 31, %v3673_v26 }
 0x320   : > { %v1552_v13 = vsel %vm3811_vm10, %v1522_v21, %v1547_v11  ;;  %v1553_v24 = vsel %vm3815_vm11, %v1521_v19, %v1546_v22  ;;  %v1600_v25 = vsel %vm3819_vm12, %v1547_v11, %v1522_v21  ;;  %v1601_v27 = vsel %vm3823_vm13, %v1546_v22, %v1521_v19 }
 0x321   : > { %1560 = vst [vmem:[#allocation2 + $0xd0] sm:$0xf] %v1552_v13  ;;  %1561 = vst [vmem:[#allocation2 + $0xd8] sm:$0xf] %v1553_v24  ;;  %v1041_v21 = vand.u32 31, %v993_v57  ;;  %vm4048_vm1 = vcmp.eq.s32.totalorder %v1048_v16, 0 }
 0x322   : > { %1608 = vst [vmem:[#allocation2 + $0x110] sm:$0xf] %v1600_v25  ;;  %1609 = vst [vmem:[#allocation2 + $0x118] sm:$0xf] %v1601_v27  ;;  %v1231_v2 = vpop.permute.xlu1 %1230  ;;  %vm4052_vm2 = vcmp.eq.s32.totalorder %v1048_v16, 31 }
 0x323   : > { %v3986_v36 = vpop.permute.xlu0 %1255  ;;  %v1238_v39 = vsel %vm4825_vm4, %v1231_v2, %v3966_v18  ;;  %v1239_v31 = vsel %vm4825_vm4, %v1229_v29, %v1231_v2 }
 0x326   : > { %v1254_v30 = vpop.permute.xlu1 %1253 }
 0x327   : > { %v1264_v32 = vsel %vm4826_vm5, %v1254_v30, %v3986_v36  ;;  %v1265_v33 = vsel %vm4826_vm5, %v1252_v52, %v1254_v30  ;;  %v1403_v34 = vpop.permute.xlu0 %1402  ;;  %v2459_v30 = vld [vmem:[#allocation3 + $0x278] sm:$0xff] }
 0x328   : > { %v1290_v40 = vsel %vm3856_vm14, %v1239_v31, %v1265_v33  ;;  %v1291_v44 = vsel %vm3860_vm15, %v1238_v39, %v1264_v32  ;;  %v1354_v48 = vsel %vm3864_vm0, %v1265_v33, %v1239_v31  ;;  %v1355_v29 = vsel %vm3868_vm3, %v1264_v32, %v1238_v39  ;;  %v1650_v50 = vld [vmem:[#allocation2 + $0xd8] sm:$0xff]  ;;  %v1649_v53 = vld [vmem:[#allocation2 + $0xd0] sm:$0xff] }
 0x329   : > { %1298 = vst [vmem:[#allocation2 + $0x20] sm:$0xf] %v1290_v40  ;;  %1299 = vst [vmem:[#allocation2 + $0x28] sm:$0xf] %v1291_v44  ;;  %v3140_v52 = vpack.c.bf16 %v1650_v50, %v1642_v38  ;;  %v3142_v56 = vpack.c.bf16 %v1649_v53, %v1641_v51  ;;  %v1657_v25 = vld [vmem:[#allocation2 + $0x110] sm:$0xff]  ;;  %v4893_v31 = vmov 0 }
 0x32a   : > { %1362 = vst [vmem:[#allocation2 + $0x60] sm:$0xf] %v1354_v48  ;;  %1363 = vst [vmem:[#allocation2 + $0x68] sm:$0xf] %v1355_v29  ;;  %v1246_v58 = vpop.permute.xlu1 %1245 }
 0x32b   : > { %v1268_v3 = vsel %vm4826_vm5, %v1246_v58, %v3922_v35  ;;  %v4014_v61 = vpop.permute.xlu0 %1540  ;;  %3141 = vmatprep.subr.bf16.mxu1 %v3140_v52  ;;  %v1658_v35 = vld [vmem:[#allocation2 + $0x118] sm:$0xff]  ;;  %v1269_v11 = vsel %vm4826_vm5, %v3926_v37, %v1246_v58 }
 0x32c   : > { %v1287_v12 = vsel %vm3757_vm6, %v1242_v46, %v1268_v3  ;;  %v1351_v6 = vsel %vm3761_vm7, %v1268_v3, %v1242_v46  ;;  %v1549_v20 = vsel %vm4826_vm5, %v4014_v61, %v3948_v49  ;;  %3143 = vmatpush1.bf16.msra.mxu1 %v3142_v56  ;;  %v4036_v49 = vld [vmem:[%s4812_s4] sm:$0xff]  ;;  %vm4058_vm5 = vcmp.eq.s32.totalorder %v1041_v21, 0 }
 0x32d   : > { %1295 = vst [vmem:[#allocation2 + $0x8] sm:$0xf] %v1287_v12  ;;  %1359 = vst [vmem:[#allocation2 + $0x48] sm:$0xf] %v1351_v6  ;;  %v1550_v47 = vsel %vm3781_vm8, %v1524_v54, %v1549_v20  ;;  %v1598_v19 = vsel %vm3785_vm9, %v1549_v20, %v1524_v54  ;;  %1752 = vmatprep.subr.mxu1 %v1658_v35  ;;  %v1648_v12 = vld [vmem:[#allocation2 + $0xc8] sm:$0xff] }
 0x32e   : > { %1558 = vst [vmem:[#allocation2 + $0xc0] sm:$0xf] %v1550_v47  ;;  %1606 = vst [vmem:[#allocation2 + $0x100] sm:$0xf] %v1598_v19  ;;  %v1221_v22 = vpop.permute.xlu1 %1220  ;;  %v1640_v19 = vld [vmem:[#allocation2 + $0x88] sm:$0xff] }
 0x32f   : > { %v1243_v13 = vsel %vm4825_vm4, %v1221_v22, %v3924_v59  ;;  %v1258_v24 = vpop.permute.xlu0 %1257  ;;  %vm4890_vm4 = vcmask 326656   ;;  %v4891_v59 = vmov 0 }
 0x330   : > { %v1286_v27 = vsel %vm3781_vm8, %v1243_v13, %v1269_v11  ;;  %v1350_v2 = vsel %vm3785_vm9, %v1269_v11, %v1243_v13  ;;  %1753 = vmatpush1.msra.mxu1 %v1657_v25  ;;  %v4892_v59 = vsel %vm4058_vm5, 4294967295, %v4891_v59  ;;  %vm4062_vm8 = vcmp.eq.s32.totalorder %v1041_v21, 31  ;;  %v1639_v13 = vld [vmem:[#allocation2 + $0x80] sm:$0xff] }
 0x331   : > { %1294 = vst [vmem:[#allocation2] sm:$0xf] %v1286_v27  ;;  %1358 = vst [vmem:[#allocation2 + $0x40] sm:$0xf] %v1350_v2  ;;  %2858 = vmatmul.mubr.msk.f32.vlgmr.msra.gmra.mrb[4].mxu1 %vm4890_vm4, %v4036_v49  ;;  %v4894_v31 = vsel %vm4062_vm8, 4294967295, %v4893_v31  ;;  %vm4895_vm9 = vcmp.lt.s32.totalorder %v3647_v8, 1 }
 0x332   : > { %v1381_v32 = vpop.permute.xlu1 %1380  ;;  %1950 = vmatprep.mubr.f32.mxu1 %v4839_v28  ;;  %v1406_v33 = vsel %vm4895_vm9, %v1403_v34, %v3748_v63  ;;  %vm4896_vm13 = vmmov %vm4895_vm9  ;;  %vm4897_vm4 = vcmp.lt.s32.totalorder %v3647_v8, 127  ;;  %v1262_v58 = vsel %vm4895_vm9, %v1258_v24, %v3926_v37  ;;  %v1656_v27 = vld [vmem:[#allocation2 + $0x108] sm:$0xff] }
 0x333   : > { %v1407_v38 = vsel %vm4896_vm13, %v3872_v0, %v1403_v34  ;;  %v1382_v40 = vsel %vm4897_vm4, %v3838_v55, %v1381_v32  ;;  %vm4898_vm12 = vmmov %vm4897_vm4  ;;  %v4079_v48 = vpop.permute.xlu0 %1514  ;;  %v1628_v2 = vld [vmem:[#allocation2 + $0x28] sm:$0xff] }
 0x334   : > { %v1389_v44 = vsel %vm4898_vm12, %v1381_v32, %v3791_v23  ;;  %v1420_v29 = vsel %vm4058_vm5, %v1382_v40, %v1407_v38  ;;  %v1468_v50 = vsel %vm4062_vm8, %v1407_v38, %v1382_v40  ;;  %v1624_v34 = vld [vmem:[#allocation2 + $0x8] sm:$0xff]  ;;  %vm4899_vm12 = vmmov %vm4895_vm9 }
 0x335   : > { %v1421_v63 = vsel %vm4048_vm1, %v1389_v44, %v1406_v33  ;;  %v1469_v0 = vsel %vm4052_vm2, %v1406_v33, %v1389_v44  ;;  %v1632_v55 = vld [vmem:[#allocation2 + $0x48] sm:$0xff]  ;;  %v1436_v51 = vrot.slane %v1420_v29, 4  ;;  %v1484_v52 = vrot.slane %v1468_v50, 4  ;;  %vm4900_vm13 = vmmov %vm4897_vm4  ;;  %v1647_v11 = vld [vmem:[#allocation2 + $0xc0] sm:$0xff] }
 0x336   : > { %v1437_v53 = vrot.slane %v1421_v63, 4  ;;  %v1485_v23 = vrot.slane %v1469_v0, 4  ;;  %v1235_v56 = vpop.permute.xlu1 %1234  ;;  %v3128_v57 = vpack.c.bf16 %v1632_v55, %v1624_v34  ;;  %v1263_v46 = vsel %vm4899_vm12, %v3986_v36, %v1258_v24  ;;  %vm4901_vm9 = vmmov %vm4897_vm4  ;;  %v1636_v29 = vld [vmem:[#allocation2 + $0x68] sm:$0xff]  ;;  %v1627_v63 = vld [vmem:[#allocation2 + $0x20] sm:$0xff] }
 0x337   : > { %1452 = vst [vmem:[#allocation2 + $0x70] sm:$0xf0] %v1436_v51  ;;  %1500 = vst [vmem:[#allocation2 + $0xb0] sm:$0xf0] %v1484_v52  ;;  %v1237_v3 = vsel %vm4900_vm13, %v3966_v18, %v1235_v56  ;;  %v1244_v54 = vsel %vm4897_vm4, %v1235_v56, %v1221_v22  ;;  %v1537_v18 = vpop.permute.xlu0 %1536  ;;  %v3132_v22 = vpack.c.bf16 %v1648_v12, %v1640_v19  ;;  %vm4903_vm13 = vcmp.lt.s32.totalorder %v3647_v8, 1  ;;  %v1635_v50 = vld [vmem:[#allocation2 + $0x60] sm:$0xff] }
 0x338   : > { %1453 = vst [vmem:[#allocation2 + $0x78] sm:$0xf0] %v1437_v53  ;;  %1501 = vst [vmem:[#allocation2 + $0xb8] sm:$0xf0] %v1485_v23  ;;  %v1292_v6 = vsel %vm4058_vm5, %v1237_v3, %v1263_v46  ;;  %v1293_v37 = vsel %vm4048_vm1, %v1244_v54, %v1262_v58  ;;  %v1356_v36 = vsel %vm4062_vm8, %v1263_v46, %v1237_v3  ;;  %3129 = vmatprep.subr.bf16.mxu0 %v3128_v57  ;;  %v1623_v35 = vld [vmem:[#allocation2] sm:$0xff] }
 0x339   : > { %v1357_v20 = vsel %vm4052_vm2, %v1262_v58, %v1244_v54  ;;  %v1631_v16 = vld [vmem:[#allocation2 + $0x40] sm:$0xff]  ;;  %1300 = vst [vmem:[#allocation2 + $0x30] sm:$0xf] %v1292_v6  ;;  %1301 = vst [vmem:[#allocation2 + $0x38] sm:$0xf] %v1293_v37  ;;  %v3134_v24 = vpack.c.bf16 %v1647_v11, %v1639_v13  ;;  %v3144_v46 = vpack.c.bf16 %v1636_v29, %v1628_v2 }
 0x33a   : > { %1364 = vst [vmem:[#allocation2 + $0x70] sm:$0xf] %v1356_v36  ;;  %1365 = vst [vmem:[#allocation2 + $0x78] sm:$0xf] %v1357_v20  ;;  %v3130_v47 = vpack.c.bf16 %v1631_v16, %v1623_v35  ;;  %v1513_v21 = vpop.permute.xlu1 %1512  ;;  %v1655_v58 = vld [vmem:[#allocation2 + $0x100] sm:$0xff]  ;;  %v3146_v54 = vpack.c.bf16 %v1635_v50, %v1627_v63 }
 0x33b   : > { %v1519_v32 = vsel %vm4901_vm9, %v1513_v21, %v4079_v48  ;;  %vm4902_vm12 = vmmov %vm4897_vm4  ;;  %v1539_v38 = vpop.permute.xlu0 %1538  ;;  %v1643_v16 = vld [vmem:[#allocation2 + $0xa0] sm:$0xff] }
 0x33c   : > { %3131 = vmatpush1.bf16.msra.mxu0 %v3130_v47  ;;  %v1520_v33 = vsel %vm4902_vm12, %v3962_v1, %v1513_v21  ;;  %vm4904_vm4 = vmmov %vm4903_vm13 }
 0x33d   : > { %3133 = vmatprep.subr.bf16.mxu0 %v3132_v22  ;;  %vm4905_vm9 = vmmov %vm4904_vm4 }
 0x33e   : > { %v1535_v25 = vpop.permute.xlu1 %1534  ;;  %v1542_v56 = vsel %vm4905_vm9, %v1539_v38, %v4014_v61  ;;  %vm4906_vm12 = vmmov %vm4904_vm4  ;;  %vm4909_vm9 = vcmask 326656   ;;  %v1645_v22 = vld [vmem:[#allocation2 + $0xb0] sm:$0xff] }
 0x33f   : > { %v1544_v40 = vsel %vm4903_vm13, %v1535_v25, %v1537_v18  ;;  %v1545_v44 = vsel %vm4904_vm4, %v3964_v15, %v1535_v25  ;;  %v1543_v12 = vsel %vm4906_vm12, %v1537_v18, %v1539_v38  ;;  %vm4907_vm13 = vcmp.lt.s32.totalorder %v3647_v8, 127  ;;  %v1646_v21 = vld [vmem:[#allocation2 + $0xb8] sm:$0xff]  ;;  %vm4910_vm12 = vmmov %vm4909_vm9 }
 0x340   : > { %3135 = vmatpush1.bf16.msra.mxu0 %v3134_v24  ;;  %v1554_v0 = vsel %vm3856_vm14, %v1520_v33, %v1545_v44  ;;  %v1555_v34 = vsel %vm3860_vm15, %v1519_v32, %v1544_v40  ;;  %v1602_v1 = vsel %vm3864_vm0, %v1545_v44, %v1520_v33  ;;  %v1603_v55 = vsel %vm3868_vm3, %v1544_v40, %v1519_v32  ;;  %v1630_v51 = vld [vmem:[#allocation2 + $0x38] sm:$0xff]  ;;  %v1629_v15 = vld [vmem:[#allocation2 + $0x30] sm:$0xff]  ;;  %vm4908_vm4 = vmmov %vm4907_vm13 }
 0x341   : > { %1681 = vmatprep.subr.mxu0 %v1656_v27  ;;  %v1638_v53 = vld [vmem:[#allocation2 + $0x78] sm:$0xff]  ;;  %1562 = vst [vmem:[#allocation2 + $0xe0] sm:$0xf] %v1554_v0  ;;  %1563 = vst [vmem:[#allocation2 + $0xe8] sm:$0xf] %v1555_v34  ;;  %v1637_v23 = vld [vmem:[#allocation2 + $0x70] sm:$0xff]  ;;  %vm4948_vm3 = vnez %v4869_v17 }
 0x342   : > { %1610 = vst [vmem:[#allocation2 + $0x120] sm:$0xf] %v1602_v1  ;;  %1611 = vst [vmem:[#allocation2 + $0x128] sm:$0xf] %v1603_v55  ;;  %v3152_v52 = vpack.c.bf16 %v1638_v53, %v1630_v51  ;;  %v1517_v57 = vpop.permute.xlu1 %1516  ;;  %v3154_v3 = vpack.c.bf16 %v1637_v23, %v1629_v15 }
 0x343   : > { %v1518_v6 = vsel %vm4907_vm13, %v4079_v48, %v1517_v57  ;;  %v1525_v37 = vsel %vm4908_vm4, %v1517_v57, %v3960_v62  ;;  %v1644_v62 = vld [vmem:[#allocation2 + $0xa8] sm:$0xff]  ;;  %vm4911_vm13 = vmmov %vm4909_vm9  ;;  %vm4916_vm4 = vcmp.lt.s32.totalorder %v3647_v8, 96 }
 0x344   : > { %1682 = vmatpush1.msra.mxu0 %v1655_v58  ;;  %3153 = vmatprep.subr.bf16.mxu1 %v3152_v52  ;;  %v1556_v61 = vsel %vm4058_vm5, %v1518_v6, %v1543_v12  ;;  %v1557_v36 = vsel %vm4048_vm1, %v1525_v37, %v1542_v56  ;;  %v1604_v20 = vsel %vm4062_vm8, %v1543_v12, %v1518_v6 }
 0x345   : > { %v1605_v35 = vsel %vm4052_vm2, %v1542_v56, %v1525_v37  ;;  %2857 = vmatmul.mubr.msk.f32.vlgmr.msra.gmra.mrb[4].mxu0 %vm4909_vm9, %v4036_v49  ;;  %1564 = vst [vmem:[#allocation2 + $0xf0] sm:$0xf] %v1556_v61  ;;  %1565 = vst [vmem:[#allocation2 + $0xf8] sm:$0xf] %v1557_v36  ;;  %3145 = vmatprep.subr.bf16.mxu0 %v3144_v46 }
 0x346   : > { %1612 = vst [vmem:[#allocation2 + $0x130] sm:$0xf] %v1604_v20  ;;  %1613 = vst [vmem:[#allocation2 + $0x138] sm:$0xf] %v1605_v35  ;;  %3155 = vmatpush1.bf16.msra.mxu1 %v3154_v3  ;;  %3147 = vmatpush1.bf16.msra.mxu0 %v3146_v54 }
 0x347   : > { %1879 = vmatprep.mubr.f32.mxu0 %v4839_v28  ;;  %vm4917_vm9 = vmmov %vm4916_vm4 }
 0x348   : > { %v1652_v48 = vld [vmem:[#allocation2 + $0xe8] sm:$0xff]  ;;  %v1651_v18 = vld [vmem:[#allocation2 + $0xe0] sm:$0xff] }
 0x349   : > { %v3148_v47 = vpack.c.bf16 %v1652_v48, %v1644_v62  ;;  %v3150_v19 = vpack.c.bf16 %v1651_v18, %v1643_v16  ;;  %v1660_v11 = vld [vmem:[#allocation2 + $0x128] sm:$0xff]  ;;  %v1659_v2 = vld [vmem:[#allocation2 + $0x120] sm:$0xff] }
 0x34b   : > { %3149 = vmatprep.subr.bf16.mxu0 %v3148_v47 }
 0x34c   : > { %3151 = vmatpush1.bf16.msra.mxu0 %v3150_v19  ;;  %v1654_v13 = vld [vmem:[#allocation2 + $0xf8] sm:$0xff]  ;;  %v1653_v24 = vld [vmem:[#allocation2 + $0xf0] sm:$0xff] }
 0x34d   : > { %1823 = vmatprep.subr.mxu0 %v1660_v11  ;;  %v3156_v25 = vpack.c.bf16 %v1654_v13, %v1646_v21  ;;  %v3158_v27 = vpack.c.bf16 %v1653_v24, %v1645_v22  ;;  %v1662_v32 = vld [vmem:[#allocation2 + $0x138] sm:$0xff]  ;;  %v1661_v33 = vld [vmem:[#allocation2 + $0x130] sm:$0xff] }
 0x34f   : > { %3157 = vmatprep.subr.bf16.mxu1 %v3156_v25 }
 0x350   : > { %1824 = vmatpush1.msra.mxu0 %v1659_v2  ;;  %3159 = vmatpush1.bf16.msra.mxu1 %v3158_v27 }
 0x351   : > { %2859 = vmatmul.mubr.msk.f32.vlgmr.msra.gmra.mrb[6].mxu0 %vm4910_vm12, %v4036_v49  ;;  %1894 = vmatprep.subr.mxu1 %v1662_v32  ;;  %vm4918_vm12 = vcmp.lt.s32.totalorder %v3647_v8, 32 }
 0x352   : > { %2534 = vmatprep.mubr.f32.mxu0 %v4839_v28 }
 0x353   : > { %v1667_v29 = vpop.permute.xlu1 %1666 }
 0x354   : > { %1895 = vmatpush1.msra.mxu1 %v1661_v33 }
 0x355   : > { %2860 = vmatmul.mubr.msk.f32.vlgmr.msra.gmra.mrb[6].mxu1 %vm4911_vm13, %v4036_v49  ;;  %vm4919_vm13 = vmmov %vm4918_vm12 }
 0x356   : > { %2605 = vmatprep.mubr.f32.mxu1 %v4839_v28 }
 0x404   : > { %v1810_v38 = vpop.f32.mrb[4].mxu1 }
 0x405   : > { %v1812_v40 = vpop.f32.mrb[5].mxu1  ;;  %v1811_v1 = vadd.f32 %v1810_v38, %v1667_v29 }
 0x406   : > { %v1813_v51 = vadd.f32 %v1812_v40, %v1667_v29 }
 0x418   : > { %v1739_v44 = vpop.f32.mrb[4].mxu0 }
 0x419   : > { %v1741_v63 = vpop.f32.mrb[5].mxu0  ;;  %v1740_v50 = vadd.f32 %v1739_v44, %v1667_v29 }
 0x41a   : > { %v1742_v0 = vadd.f32 %v1741_v63, %v1667_v29 }
 0x41c   : > { %v1957_v34 = vadd.f32 %v1742_v0, %v1740_v50 }
 0x41e   : > { %v1958_v55 = vadd.f32 %v1957_v34, %v1811_v1 }
 0x420   : > { %v1959_v52 = vadd.f32 %v1958_v55, %v1813_v51 }
 0x424   : > { %v1881_v53 = vpop.f32.mrb[6].mxu0 }
 0x425   : > { %v1882_v15 = vadd.f32 %v1881_v53, %v1667_v29  ;;  %v1883_v23 = vpop.f32.mrb[7].mxu0  ;;  %v1994_v53 = vld [vmem:[%s4814_s6] sm:$0xff] }
 0x426   : > { %v1884_v56 = vadd.f32 %v1883_v23, %v1667_v29 }
 0x427   : > { %v1960_v57 = vadd.f32 %v1959_v52, %v1882_v15 }
 0x428   : > { %v1952_v49 = vpop.f32.mrb[6].mxu1 }
 0x429   : > { %v1961_v58 = vadd.f32 %v1960_v57, %v1884_v56  ;;  %v1953_v46 = vadd.f32 %v1952_v49, %v1667_v29  ;;  %v1954_v3 = vpop.f32.mrb[7].mxu1  ;;  %v1998_v57 = vld [vmem:[%s4815_s7] sm:$0xff] }
 0x42a   : > { %v1955_v54 = vadd.f32 %v1954_v3, %v1667_v29 }
 0x42b   : > { %v1962_v12 = vadd.f32 %v1961_v58, %v1953_v46 }
 0x42d   : > { %v1963_v6 = vadd.f32 %v1962_v12, %v1955_v54 }
 0x42f   : > { %1964 = vadd.xlane.f32.xlu0 %v1963_v6 }
 0x4bc   : > { %v1965_v37 = vpop.xlane.xlu0 %1964 }
 0x4bd   : > { %v1967_v61 = vmul.f32 0.0009765625, %v1965_v37 }
 0x4bf   : > { %v1968_v36 = vsub.f32 %v1740_v50, %v1967_v61  ;;  %v1969_v20 = vsub.f32 %v1742_v0, %v1967_v61  ;;  %v1970_v35 = vsub.f32 %v1811_v1, %v1967_v61  ;;  %v1971_v62 = vsub.f32 %v1813_v51, %v1967_v61 }
 0x4c0   : > { %v1972_v18 = vsub.f32 %v1882_v15, %v1967_v61  ;;  %v1973_v21 = vsub.f32 %v1884_v56, %v1967_v61  ;;  %v1974_v13 = vsub.f32 %v1953_v46, %v1967_v61  ;;  %v1975_v27 = vsub.f32 %v1955_v54, %v1967_v61 }
 0x4c1   : > { %v1976_v48 = vmul.f32 %v1968_v36, %v1968_v36  ;;  %v1977_v16 = vmul.f32 %v1969_v20, %v1969_v20  ;;  %v1978_v47 = vmul.f32 %v1970_v35, %v1970_v35  ;;  %v1979_v22 = vmul.f32 %v1971_v62, %v1971_v62 }
 0x4c2   : > { %v1980_v24 = vmul.f32 %v1972_v18, %v1972_v18  ;;  %v1981_v2 = vmul.f32 %v1973_v21, %v1973_v21  ;;  %v1982_v33 = vmul.f32 %v1974_v13, %v1974_v13  ;;  %v1983_v40 = vmul.f32 %v1975_v27, %v1975_v27 }
 0x4c3   : > { %v1984_v19 = vadd.f32 %v1977_v16, %v1976_v48 }
 0x4c5   : > { %v1985_v11 = vadd.f32 %v1984_v19, %v1978_v47 }
 0x4c7   : > { %v1986_v25 = vadd.f32 %v1985_v11, %v1979_v22 }
 0x4c9   : > { %v1987_v32 = vadd.f32 %v1986_v25, %v1980_v24 }
 0x4cb   : > { %v1988_v38 = vadd.f32 %v1987_v32, %v1981_v2 }
 0x4cd   : > { %v1989_v44 = vadd.f32 %v1988_v38, %v1982_v33 }
 0x4cf   : > { %v1990_v29 = vadd.f32 %v1989_v44, %v1983_v40 }
 0x4d1   : > { %1991 = vadd.xlane.f32.xlu1 %v1990_v29 }
 0x55e   : > { %v1992_v63 = vpop.xlane.xlu1 %1991 }
 0x55f   : > { %v1993_v34 = vmul.f32 0.0009765625, %v1992_v63 }
 0x561   : > { %v1995_v55 = vadd.f32 1e-05, %v1993_v34 }
 0x563   : > { %3304 = vrsqrt.f32 %v1995_v55 }
 0x56d   : > { %v3305_v52 = vpop.eup %3304 }
 0x56e   : > { %v1997_v23 = vmul.f32 %v3305_v52, %v1994_v53 }
 0x570   : > { %2003 = vperm.xlu0 %3300, %v1997_v23   ;;  %v1999_v49 = vmul.f32 %v1997_v23, %v1967_v61 }
 0x572   : > { %v2000_v58 = vsub.f32 %v1998_v57, %v1999_v49 }
 0x574   : > { %2016 = vperm.xlu1 %3299, %v2000_v58  }
 0x5ef   : > { %v2004_v3 = vpop.permute.xlu0 %2003 }
 0x5f0   : > { %v2008_v12 = vmul.f32 %v2004_v3, %v1811_v1  ;;  %v2006_v6 = vmul.f32 %v2004_v3, %v1740_v50  ;;  %v2010_v37 = vmul.f32 %v2004_v3, %v1882_v15  ;;  %v2007_v36 = vmul.f32 %v2004_v3, %v1742_v0 }
 0x5f1   : > { %v2013_v35 = vmul.f32 %v2004_v3, %v1955_v54  ;;  %v2012_v62 = vmul.f32 %v2004_v3, %v1953_v46  ;;  %v2009_v48 = vmul.f32 %v2004_v3, %v1813_v51  ;;  %v2011_v16 = vmul.f32 %v2004_v3, %v1884_v56 }
 0x5f3   : > { %v2017_v20 = vpop.permute.xlu1 %2016 }
 0x5f4   : > { %v2021_v18 = vadd.f32 %v2017_v20, %v2008_v12  ;;  %v2019_v47 = vadd.f32 %v2017_v20, %v2006_v6  ;;  %v2023_v19 = vadd.f32 %v2017_v20, %v2010_v37  ;;  %v2020_v21 = vadd.f32 %v2017_v20, %v2007_v36 }
 0x5f5   : > { %v2026_v22 = vadd.f32 %v2017_v20, %v2013_v35  ;;  %v2025_v11 = vadd.f32 %v2017_v20, %v2012_v62  ;;  %v2022_v13 = vadd.f32 %v2017_v20, %v2009_v48  ;;  %v2024_v61 = vadd.f32 %v2017_v20, %v2011_v16 }
 0x5f6   : > { %v4161_v24 = vmax.f32 %v2021_v18, 0.0  ;;  %v4163_v25 = vmax.f32 %v2019_v47, 0.0  ;;  %v4165_v50 = vmax.f32 %v2023_v19, 0.0  ;;  %v4167_v0 = vmax.f32 %v2020_v21, 0.0 }
 0x5f7   : > { %v4169_v1 = vmax.f32 %v2026_v22, 0.0  ;;  %v4171_v51 = vmax.f32 %v2025_v11, 0.0  ;;  %v4173_v15 = vmax.f32 %v2022_v13, 0.0  ;;  %v4175_v56 = vmax.f32 %v2024_v61, 0.0 }
 0x5f8   : > { %4912 = vst [vmem:[#allocation10_spill] sm:$0xff] %v4165_v50  ;;  %2063 = vrot.lane.b32.xlu0 %v4161_v24, %s3410_s18  ;;  %2035 = vrot.lane.b32.xlu1 %v4163_v25, %s3409_s12 }
 0x5f9   : > { %4913 = vst [vmem:[#allocation11_spill] sm:$0xff] %v4169_v1  ;;  %4914 = vst [vmem:[#allocation12_spill] sm:$0xff] %v4171_v51 }
 0x5fa   : > { %4915 = vst [vmem:[#allocation13_spill] sm:$0xff] %v4175_v56 }
 0x5fc   : > { %2067 = vrot.lane.b32.xlu0 %v4165_v50, %s3410_s18  ;;  %2037 = vrot.lane.b32.xlu1 %v4167_v0, %s3409_s12 }
 0x600   : > { %2039 = vrot.lane.b32.xlu0 %v4161_v24, %s3409_s12  ;;  %2059 = vrot.lane.b32.xlu1 %v4163_v25, %s3410_s18 }
 0x604   : > { %2043 = vrot.lane.b32.xlu0 %v4165_v50, %s3409_s12  ;;  %2073 = vrot.lane.b32.xlu1 %v4169_v1, %s3410_s18 }
 0x608   : > { %2049 = vrot.lane.b32.xlu0 %v4169_v1, %s3409_s12  ;;  %2061 = vrot.lane.b32.xlu1 %v4167_v0, %s3410_s18 }
 0x60c   : > { %2047 = vrot.lane.b32.xlu0 %v4171_v51, %s3409_s12  ;;  %2065 = vrot.lane.b32.xlu1 %v4173_v15, %s3410_s18 }
 0x610   : > { %2191 = vrot.lane.b32.xlu0 %v4161_v24, %s3411_s11  ;;  %2071 = vrot.lane.b32.xlu1 %v4171_v51, %s3410_s18 }
 0x614   : > { %2195 = vrot.lane.b32.xlu0 %v4165_v50, %s3411_s11  ;;  %2041 = vrot.lane.b32.xlu1 %v4173_v15, %s3409_s12 }
 0x618   : > { %2213 = vrot.lane.b32.xlu0 %v4167_v0, %s3412_s20  ;;  %2045 = vrot.lane.b32.xlu1 %v4175_v56, %s3409_s12  ;;  %s4764_s12 = scalar_lea.hbm %s4818_s10, %s2871_s27 }
 0x61c   : > { %2217 = vrot.lane.b32.xlu0 %v4173_v15, %s3412_s20  ;;  %2069 = vrot.lane.b32.xlu1 %v4175_v56, %s3410_s18  ;;  %s3335_s18 = scalar_lea.vmem %s4766_s29, 1024 }
 0x61d   : > { %p3336_p6 = scmp.ne.s32.totalorder %s4766_s29, %s3335_s18 }
 0x61f   : > { %p3337_p10 = pnand %p3336_p6, %p5002_p9 }
 0x620   : > { %2225 = vrot.lane.b32.xlu0 %v4169_v1, %s3412_s20  ;;  %2189 = vrot.lane.b32.xlu1 %v4167_v0, %s3411_s11 }
 0x621   : > { %p3338_p12 = pneg %p3337_p10 }
 0x624   : > { %2193 = vrot.lane.b32.xlu1 %v4173_v15, %s3411_s11 }
 0x628   : > { %2211 = vrot.lane.b32.xlu1 %v4163_v25, %s3412_s20 }
 0x62c   : > { %2215 = vrot.lane.b32.xlu1 %v4161_v24, %s3412_s20 }
 0x630   : > { %2187 = vrot.lane.b32.xlu1 %v4163_v25, %s3411_s11 }
 0x66a   : > { %v2064_v46 = vpop.permute.xlu0 %2063  ;;  %v2036_v54 = vpop.permute.xlu1 %2035 }
 0x66e   : > { %v2068_v27 = vpop.permute.xlu0 %2067  ;;  %v2038_v2 = vpop.permute.xlu1 %2037 }
 0x66f   : > { %v4231_v32 = vsel %vm4916_vm4, %v2036_v54, %v2038_v2  ;;  %vm4920_vm4 = vmmov %vm4918_vm12 }
 0x670   : > { %vm4921_vm8 = vmmov %vm4920_vm4 }
 0x672   : > { %v2040_v33 = vpop.permute.xlu0 %2039  ;;  %v2060_v38 = vpop.permute.xlu1 %2059 }
 0x673   : > { %v4235_v40 = vsel %vm4917_vm9, %v2038_v2, %v2040_v33 }
 0x676   : > { %v2044_v44 = vpop.permute.xlu0 %2043  ;;  %v2074_v29 = vpop.permute.xlu1 %2073 }
 0x677   : > { %v2082_v63 = vsel %vm4918_vm12, %v2074_v29, %v2060_v38  ;;  %vm4923_vm12 = vmmov %vm4920_vm4 }
 0x678   : > { %v4242_v34 = vsel %vm4919_vm13, %v4231_v32, %v2082_v63  ;;  %vm4924_vm13 = vmmov %vm4920_vm4 }
 0x67a   : > { %v2050_v55 = vpop.permute.xlu0 %2049  ;;  %v2062_v53 = vpop.permute.xlu1 %2061 }
 0x67b   : > { %v4246_v52 = vsel %vm4920_vm4, %v2060_v38, %v2062_v53  ;;  %v4250_v23 = vsel %vm4921_vm8, %v2062_v53, %v2064_v46  ;;  %vm4926_vm8 = vmmov %vm4917_vm9 }
 0x67c   : > { %2101 = vrot.lane.b32.xlu1 %v4246_v52, %s3411_s11  ;;  %2103 = vrot.lane.b32.xlu0 %v4250_v23, %s3411_s11  ;;  %v2058_v37 = vsel %vm4926_vm8, %v2050_v55, %v2036_v54 }
 0x67e   : > { %v2048_v57 = vpop.permute.xlu0 %2047  ;;  %v2066_v49 = vpop.permute.xlu1 %2065 }
 0x67f   : > { %v4258_v58 = vsel %vm4917_vm9, %v2048_v57, %v2050_v55  ;;  %v4262_v3 = vsel %vm4923_vm12, %v2064_v46, %v2066_v49  ;;  %v4266_v12 = vsel %vm4924_vm13, %v2066_v49, %v2068_v27  ;;  %vm4927_vm9 = vcmp.ge.s32.totalorder %v3673_v26, 992  ;;  %vm4929_vm12 = vmmov %vm4926_vm8 }
 0x680   : > { %4922 = vst [vmem:[#allocation14_spill] sm:$0xff] %v4258_v58  ;;  %4925 = vst [vmem:[#allocation15_spill] sm:$0xff] %v4266_v12  ;;  %2105 = vrot.lane.b32.xlu1 %v4262_v3, %s3411_s11  ;;  %2107 = vrot.lane.b32.xlu0 %v4266_v12, %s3411_s11 }
 0x681   : > { %vm4930_vm13 = vmmov %vm4926_vm8 }
 0x682   : > { %v2072_v6 = vpop.permute.xlu1 %2071  ;;  %v2192_v16 = vpop.permute.xlu0 %2191 }
 0x683   : > { %v4276_v36 = vsel %vm4920_vm4, %v2072_v6, %v2074_v29  ;;  %vm4932_vm4 = vmmov %vm4926_vm8 }
 0x684   : > { %2127 = vrot.lane.b32.xlu1 %v4250_v23, %s3412_s20  ;;  %2125 = vrot.lane.b32.xlu0 %v4246_v52, %s3412_s20  ;;  %v4285_v20 = vsel %vm4927_vm9, %v4276_v36, %v2058_v37  ;;  %vm4934_vm9 = vcmp.lt.s32.totalorder %v3647_v8, 32 }
 0x685   : > { %4928 = vst [vmem:[#allocation16_spill] sm:$0xff] %v4285_v20 }
 0x686   : > { %v2042_v35 = vpop.permute.xlu1 %2041  ;;  %v4319_v11 = vpop.permute.xlu0 %2195 }
 0x687   : > { %v4289_v62 = vsel %vm4929_vm12, %v2042_v35, %v2044_v44  ;;  %v4293_v48 = vsel %vm4930_vm13, %v2040_v33, %v2042_v35  ;;  %vm4935_vm12 = vmmov %vm4934_vm9  ;;  %vm4936_vm13 = vcmp.lt.s32.totalorder %v3647_v8, 127 }
 0x688   : > { %2277 = vrot.lane.b32.xlu1 %v4235_v40, %s3411_s11  ;;  %2129 = vrot.lane.b32.xlu0 %v4262_v3, %s3412_s20 }
 0x68a   : > { %v2046_v18 = vpop.permute.xlu1 %2045  ;;  %v2214_v61 = vpop.permute.xlu0 %2213 }
 0x68b   : > { %v4301_v26 = vsel %vm4926_vm8, %v2046_v18, %v2048_v57  ;;  %v4305_v47 = vsel %vm4932_vm4, %v2044_v44, %v2046_v18  ;;  %vm4937_vm8 = vcmp.lt.s32.totalorder %v3647_v8, 1  ;;  %vm4938_vm4 = vmmov %vm4936_vm13 }
 0x68c   : > { %4931 = vst [vmem:[#allocation17_spill] sm:$0xff] %v4301_v26  ;;  %4933 = vst [vmem:[#allocation18_spill] sm:$0xff] %v4305_v47  ;;  %2137 = vrot.lane.b32.xlu0 %v4276_v36, %s3412_s20  ;;  %2281 = vrot.lane.b32.xlu1 %v4289_v62, %s3411_s11 }
 0x68e   : > { %v2070_v19 = vpop.permute.xlu1 %2069  ;;  %v4341_v33 = vpop.permute.xlu0 %2217 }
 0x68f   : > { %v4313_v21 = vsel %vm4934_vm9, %v2070_v19, %v2072_v6  ;;  %v4317_v22 = vsel %vm4935_vm12, %v2068_v27, %v2070_v19  ;;  %vm4939_vm9 = vmmov %vm4938_vm4 }
 0x690   : > { %2279 = vrot.lane.b32.xlu0 %v4293_v48, %s3411_s11  ;;  %2299 = vrot.lane.b32.xlu1 %v4231_v32, %s3412_s20  ;;  %vm4940_vm12 = vmmov %vm4937_vm8 }
 0x692   : > { %v2190_v13 = vpop.permute.xlu1 %2189 }
 0x693   : > { %v4335_v27 = vsel %vm4936_vm13, %v2190_v13, %v2192_v16  ;;  %vm4941_vm13 = vmmov %vm4937_vm8 }
 0x694   : > { %2303 = vrot.lane.b32.xlu1 %v4293_v48, %s3412_s20  ;;  %2283 = vrot.lane.b32.xlu0 %v4305_v47, %s3411_s11 }
 0x696   : > { %v2194_v46 = vpop.permute.xlu1 %2193 }
 0x697   : > { %v4358_v63 = vsel %vm4938_vm4, %v2194_v46, %v4319_v11  ;;  %v4362_v55 = vsel %vm4939_vm9, %v2192_v16, %v2194_v46  ;;  %vm4943_vm4 = vnez %v4877_v45  ;;  %v4389_v16 = vpop.permute.xlu0 %2225  ;;  %vm4945_vm9 = vmmov %vm4940_vm12 }
 0x698   : > { %2275 = vrot.lane.b32.xlu1 %v4231_v32, %s3411_s11  ;;  %2301 = vrot.lane.b32.xlu0 %v4235_v40, %s3412_s20  ;;  %4944 = vst [vmem:[#allocation19_spill] sm:$0xff] %v4389_v16 }
 0x69a   : > { %v2212_v54 = vpop.permute.xlu1 %2211 }
 0x69b   : > { %v4339_v2 = vsel %vm4937_vm8, %v2212_v54, %v2214_v61  ;;  %vm4942_vm8 = vnez %v4875_v43  ;;  %v4396_v19 = vsel %vm4945_vm9, %v4389_v16, %v2212_v54 }
 0x69c   : > { %2305 = vrot.lane.b32.xlu0 %v4289_v62, %s3412_s20  ;;  %2109 = vrot.lane.b32.xlu1 %v4317_v22, %s3411_s11 }
 0x69e   : > { %v2216_v29 = vpop.permute.xlu1 %2215 }
 0x69f   : > { %v2231_v53 = vsel %vm4940_vm12, %v2216_v29, %v4341_v33  ;;  %v4369_v57 = vsel %vm4941_vm13, %v2214_v61, %v2216_v29  ;;  %vm4946_vm12 = vcmp.lt.s32.totalorder %v3647_v8, 127  ;;  %vm4947_vm13 = vnez %v4867_v14 }
 0x6a0   : > { %v2237_v49 = vsel %vm3811_vm10, %v4362_v55, %v4369_v57  ;;  %v2238_v6 = vsel %vm3815_vm11, %v4358_v63, %v2231_v53  ;;  %v2261_v37 = vsel %vm4942_vm8, %v4369_v57, %v4362_v55  ;;  %v2262_v35 = vsel %vm4943_vm4, %v2231_v53, %v4358_v63  ;;  %2123 = vrot.lane.b32.xlu1 %v4242_v34, %s3412_s20  ;;  %vm4949_vm9 = vmmov %vm4946_vm12 }
 0x6a1   : > { %2111 = vrot.lane.b32.xlu0 %v4313_v21, %s3411_s11  ;;  %vm4951_vm5 = vmmov %vm4949_vm9  ;;  %v3188_v16 = vpack.c.bf16 %v2262_v35, %v4173_v15 }
 0x6a2   : > { %v4391_v18 = vpop.permute.xlu1 %2187 }
 0x6a3   : > { %v4401_v61 = vsel %vm4946_vm12, %v4391_v18, %v2190_v13  ;;  %v2460_v13 = vld [vmem:[%s4817_s9] sm:$0xff]  ;;  %vm4950_vm12 = vcmp.lt.s32.totalorder %v3647_v8, 1 }
 0x6a4   : > { %2099 = vrot.lane.b32.xlu1 %v4242_v34, %s3411_s11 }
 0x6a5   : > { %2131 = vrot.lane.b32.xlu0 %v4266_v12, %s3412_s20 }
 0x6a8   : > { %2113 = vrot.lane.b32.xlu1 %v4276_v36, %s3411_s11 }
 0x6a9   : > { %2135 = vrot.lane.b32.xlu0 %v4313_v21, %s3412_s20 }
 0x6ac   : > { %2133 = vrot.lane.b32.xlu1 %v4317_v22, %s3412_s20 }
 0x6ad   : > { %2199 = vrot.lane.b32.xlu0 %v4171_v51, %s3411_s11 }
 0x6b0   : > { %2197 = vrot.lane.b32.xlu1 %v4175_v56, %s3411_s11 }
 0x6b1   : > { %2313 = vrot.lane.b32.xlu0 %v4285_v20, %s3412_s20 }
 0x6b4   : > { %2201 = vrot.lane.b32.xlu1 %v4169_v1, %s3411_s11 }
 0x6b5   : > { %2219 = vrot.lane.b32.xlu0 %v4165_v50, %s3412_s20 }
 0x6b8   : > { %2221 = vrot.lane.b32.xlu1 %v4175_v56, %s3412_s20 }
 0x6b9   : > { %2223 = vrot.lane.b32.xlu0 %v4171_v51, %s3412_s20 }
 0x6bc   : > { %2285 = vrot.lane.b32.xlu1 %v4301_v26, %s3411_s11 }
 0x6bd   : > { %2287 = vrot.lane.b32.xlu0 %v4258_v58, %s3411_s11 }
 0x6c0   : > { %2289 = vrot.lane.b32.xlu1 %v4285_v20, %s3411_s11  ;;  %s3413_s11 = smov [#allocation7]  }
 0x6c1   : > { %2307 = vrot.lane.b32.xlu0 %v4305_v47, %s3412_s20 }
 0x6c4   : > { %2309 = vrot.lane.b32.xlu1 %v4301_v26, %s3412_s20 }
 0x6c5   : > { %2311 = vrot.lane.b32.xlu0 %v4258_v58, %s3412_s20  ;;  %s3339_s20 = sshll.u32 %s3413_s11, 4  ;;  %s3340_s20 = int_to_ptr.vmem [resolvable:$false] %s3339_s20 }
 0x6c6   : > { %s3341_s26 = scalar_lea.vmem %s3340_s20, 2048  ;;  %p3342_p2 = scmp.lt.s32.totalorder %s4766_s29, %s3340_s20 }
 0x6c7   : > { %p3343_p3 = scmp.lt.s32.totalorder %s3341_s26, %s3335_s18 }
 0x6c8   : > { %2463 = vperm.xlu1 %3299, %v2460_v13  }
 0x6c9   : > { %p3344_p4 = por %p3343_p3, %p3342_p2 }
 0x6cb   : > { %p3345_p7 = pnand %p3344_p4, %p3338_p12 }
 0x6ee   : > { %v2104_v54 = vpop.permute.xlu0 %2103  ;;  %v4450_v63 = vpop.permute.xlu1 %2101 }
 0x6f2   : > { %v4452_v55 = vpop.permute.xlu0 %2107  ;;  %v2106_v53 = vpop.permute.xlu1 %2105 }
 0x6f3   : > { %v2119_v44 = vsel %vm4949_vm9, %v2104_v54, %v2106_v53  ;;  %v2118_v58 = vsel %vm4951_vm5, %v2106_v53, %v4452_v55  ;;  %vm4952_vm9 = vmmov %vm4950_vm12 }
 0x6f4   : > { %vm4954_vm15 = vmmov %vm4952_vm9 }
 0x6f6   : > { %v2126_v57 = vpop.permute.xlu0 %2125  ;;  %v2128_v29 = vpop.permute.xlu1 %2127 }
 0x6f7   : > { %v2144_v46 = vsel %vm4950_vm12, %v2126_v57, %v2128_v29  ;;  %vm4953_vm12 = vmmov %vm4951_vm5 }
 0x6f8   : > { %v2149_v28 = vsel %vm3811_vm10, %v2119_v44, %v2144_v46  ;;  %v2173_v13 = vsel %vm4942_vm8, %v2144_v46, %v2119_v44 }
 0x6f9   : > { %v3182_v56 = vpack.c.bf16 %v4250_v23, %v2149_v28 }
 0x6fa   : > { %v4462_v38 = vpop.permute.xlu0 %2129  ;;  %v4464_v47 = vpop.permute.xlu1 %2277 }
 0x6fb   : > { %v2143_v20 = vsel %vm4952_vm9, %v2128_v29, %v4462_v38  ;;  %v3186_v29 = vpack.c.bf16 %v2237_v49, %v2173_v13 }
 0x6fc   : > { %v2150_v26 = vsel %vm3815_vm11, %v2118_v58, %v2143_v20  ;;  %v2174_v50 = vsel %vm4943_vm4, %v2143_v20, %v2118_v58  ;;  %v3190_v20 = vpack.c.bf16 %v2261_v37, %v4161_v24 }
 0x6fd   : > { %v3180_v44 = vpack.c.bf16 %v4262_v3, %v2150_v26  ;;  %v3184_v1 = vpack.c.bf16 %v2238_v6, %v2174_v50 }
 0x6fe   : > { %v4477_v46 = vpop.permute.xlu0 %2137  ;;  %v2282_v51 = vpop.permute.xlu1 %2281 }
 0x6ff   : > { %3181 = vmatprep.subr.bf16.mxu1 %v3180_v44 }
 0x700   : > { %3183 = vmatpush1.bf16.msra.mxu1 %v3182_v56 }
 0x701   : > { %3185 = vmatprep.subr.bf16.mxu1 %v3184_v1 }
 0x702   : > { %v2280_v53 = vpop.permute.xlu0 %2279  ;;  %v4480_v12 = vpop.permute.xlu1 %2299 }
 0x703   : > { %v2295_v50 = vsel %vm4951_vm5, %v2280_v53, %v2282_v51  ;;  %v4493_v1 = vsel %vm4953_vm12, %v4464_v47, %v2280_v53 }
 0x704   : > { %3187 = vmatpush1.bf16.msra.mxu1 %v3186_v29 }
 0x705   : > { %3189 = vmatprep.subr.bf16.mxu1 %v3188_v16 }
 0x706   : > { %v4483_v58 = vpop.permute.xlu0 %2283  ;;  %v2304_v3 = vpop.permute.xlu1 %2303 }
 0x708   : > { %3191 = vmatpush1.bf16.msra.mxu1 %v3190_v20  ;;  %v2455_v20 = vld [vmem:[#allocation3 + $0x258] sm:$0xff] }
 0x70a   : > { %v2302_v26 = vpop.permute.xlu0 %2301  ;;  %v4486_v28 = vpop.permute.xlu1 %2275 }
 0x70b   : > { %v2320_v15 = vsel %vm4952_vm9, %v2302_v26, %v2304_v3  ;;  %v4500_v56 = vsel %vm4954_vm15, %v4480_v12, %v2302_v26  ;;  %vm4955_vm15 = vmmov %vm4951_vm5 }
 0x70c   : > { %v2324_v24 = vsel %vm3757_vm6, %v4493_v1, %v4500_v56  ;;  %v2325_v23 = vsel %vm3811_vm10, %v2295_v50, %v2320_v15  ;;  %v2348_v49 = vsel %vm3761_vm7, %v4500_v56, %v4493_v1  ;;  %v2349_v6 = vsel %vm4942_vm8, %v2320_v15, %v2295_v50  ;;  %vm4956_vm5 = vmmov %vm4952_vm9  ;;  %v2454_v50 = vld [vmem:[#allocation3 + $0x250] sm:$0xff] }
 0x70d   : > { %v2294_v16 = vsel %vm4955_vm15, %v2282_v51, %v4483_v58  ;;  %v3194_v29 = vpack.c.bf16 %v4293_v48, %v2325_v23  ;;  %vm4957_vm10 = vmmov %vm4953_vm12  ;;  %v3198_v23 = vpack.c.bf16 %v2454_v50, %v2349_v6  ;;  %vm2466_vm12 = vcmask 654336  }
 0x70e   : > { %v4514_v37 = vpop.permute.xlu0 %2305  ;;  %v2110_v35 = vpop.permute.xlu1 %2109  ;;  %v2120_v51 = vsel %vm4957_vm10, %v4450_v63, %v2104_v54  ;;  %vm4958_vm8 = vmmov %vm4956_vm5 }
 0x70f   : > { %v2319_v41 = vsel %vm4956_vm5, %v2304_v3, %v4514_v37  ;;  %vm4962_vm15 = vmmov %vm4956_vm5 }
 0x710   : > { %v2326_v13 = vsel %vm3815_vm11, %v2294_v16, %v2319_v41  ;;  %v2350_v44 = vsel %vm4943_vm4, %v2319_v41, %v2294_v16  ;;  %vm4959_vm11 = vmmov %vm4956_vm5 }
 0x711   : > { %v3192_v43 = vpack.c.bf16 %v4289_v62, %v2326_v13  ;;  %v3196_v42 = vpack.c.bf16 %v2455_v20, %v2350_v44  ;;  %vm4960_vm4 = vmmov %vm4957_vm10 }
 0x712   : > { %v2124_v53 = vpop.permute.xlu1 %2123  ;;  %vm4961_vm9 = vmmov %vm4960_vm4 }
 0x713   : > { %v2112_v26 = vpop.permute.xlu0 %2111  ;;  %v2145_v3 = vsel %vm4958_vm8, %v2124_v53, %v2126_v57  ;;  %3193 = vmatprep.subr.bf16.mxu1 %v3192_v43  ;;  %v2146_v54 = vsel %vm4959_vm11, %v4477_v46, %v2124_v53  ;;  %v4547_v41 = vsel %vm4961_vm9, %v4452_v55, %v2110_v35  ;;  %v4963_v53 = vsel %vm3757_vm6, %v4335_v27, %v4339_v2  ;;  %vm4964_vm5 = vmmov %vm4960_vm4 }
 0x714   : > { %v2148_v45 = vsel %vm3757_vm6, %v2120_v51, %v2145_v3  ;;  %v2172_v62 = vsel %vm3761_vm7, %v2145_v3, %v2120_v51  ;;  %3195 = vmatpush1.bf16.msra.mxu1 %v3194_v29  ;;  %vm4965_vm10 = vmmov %vm4958_vm8  ;;  %v4966_v3 = vmov 0.0  }
 0x715   : > { %3197 = vmatprep.subr.bf16.mxu1 %v3196_v42  ;;  %v3160_v48 = vpack.c.bf16 %v4246_v52, %v2148_v45  ;;  %v3164_v29 = vpack.c.bf16 %v4963_v53, %v2172_v62  ;;  %v4967_v62 = vsel %vm4947_vm13, %v4401_v61, %v4396_v19  ;;  %vm4969_vm8 = vmmov %vm4960_vm4  ;;  %v3172_v53 = vpack.c.bf16 %v4235_v40, %v2324_v24  ;;  %v2453_v24 = vld [vmem:[#allocation3 + $0x248] sm:$0xff] }
 0x716   : > { %v2100_v15 = vpop.permute.xlu1 %2099  ;;  %vm4970_vm11 = vmmov %vm4960_vm4 }
 0x717   : > { %v2132_v57 = vpop.permute.xlu0 %2131  ;;  %v2121_v16 = vsel %vm4960_vm4, %v2100_v15, %v4450_v63  ;;  %3161 = vmatprep.subr.bf16.mxu0 %v3160_v48  ;;  %v4561_v63 = vld [vmem:[%s4816_s8] sm:$0xff]  ;;  %vm4971_vm4 = vmmov %vm4965_vm10 }
 0x718   : > { %v4552_v52 = vsel %vm4962_vm15, %v4462_v38, %v2132_v57  ;;  %v2147_v6 = vsel %vm4947_vm13, %v2121_v16, %v2146_v54  ;;  %v2171_v13 = vsel %vm4948_vm3, %v2146_v54, %v2121_v16  ;;  %3199 = vmatpush1.bf16.msra.mxu1 %v3198_v23  ;;  %v2116_v54 = vsel %vm4969_vm8, %v2110_v35, %v2112_v26  ;;  %vm4972_vm9 = vmmov %vm4971_vm4 }
 0x719   : > { %v2151_v55 = vsel %vm3856_vm14, %v4547_v41, %v4552_v52  ;;  %v2175_v38 = vsel %vm3864_vm0, %v4552_v52, %v4547_v41  ;;  %v3162_v44 = vpack.c.bf16 %v4242_v34, %v2147_v6  ;;  %vm4973_vm15 = vnez %v4881_v9  ;;  %vm4978_vm6 = vmmov %vm4970_vm11  ;;  %v4999_v9 = vld [vmem:[#allocation16_spill] sm:$0xff] }
 0x71a   : > { %v2114_v43 = vpop.permute.xlu1 %2113  ;;  %vm4976_vm8 = vnez %v4894_v31  ;;  %v4977_v35 = vsel %vm4948_vm3, %v4396_v19, %v4401_v61  ;;  %v2297_v19 = vsel %vm4970_vm11, %v4486_v28, %v4464_v47  ;;  %v3176_v47 = vpack.c.bf16 %v2453_v24, %v2348_v49  ;;  %v2456_v31 = vld [vmem:[#allocation3 + $0x260] sm:$0xff] }
 0x71b   : > { %v2136_v20 = vpop.permute.xlu0 %2135  ;;  %v4579_v51 = vsel %vm4964_vm5, %v2114_v43, %v2100_v15  ;;  %3163 = vmatpush1.bf16.msra.mxu0 %v3162_v44  ;;  %2862 = vmatmul.mubr.msk.f32.vlgmr.msra.gmra.mrb[8].mxu1 %vm2466_vm12, %v4561_v63  ;;  %v4968_v15 = vsel %vm3761_vm7, %v4339_v2, %v4335_v27  ;;  %v2115_v16 = vsel %vm4970_vm11, %v2112_v26, %v2114_v43  ;;  %vm4983_vm11 = vmmov %vm4971_vm4 }
 0x71c   : > { %v4586_v34 = vsel %vm4965_vm10, %v2136_v20, %v4477_v46  ;;  %3165 = vmatprep.subr.bf16.mxu0 %v3164_v29  ;;  %2747 = vmatprep.mubr.f32.mxu1 %v4966_v3  ;;  %v3166_v46 = vpack.c.bf16 %v4967_v62, %v2171_v13  ;;  %v3168_v23 = vpack.c.bf16 %v4968_v15, %v4167_v0  ;;  %v4984_v62 = vld [vmem:[#allocation19_spill] sm:$0xff] }
 0x71d   : > { %v2154_v42 = vsel %vm4048_vm1, %v4579_v51, %v4586_v34  ;;  %v2178_v45 = vsel %vm4052_vm2, %v4586_v34, %v4579_v51  ;;  %vm4974_vm5 = vnez %v4892_v59  ;;  %vm4975_vm10 = vnez %v4885_v10 }
 0x71e   : > { %v2134_v48 = vpop.permute.xlu1 %2133  ;;  %v3220_v50 = vpack.c.bf16 %v4276_v36, %v2154_v42  ;;  %v3170_v26 = vpack.c.bf16 %v4977_v35, %v4163_v25 }
 0x71f   : > { %v2200_v6 = vpop.permute.xlu0 %2199  ;;  %v2140_v13 = vsel %vm4971_vm4, %v2134_v48, %v2136_v20  ;;  %v2141_v36 = vsel %vm4972_vm9, %v2132_v57, %v2134_v48  ;;  %3167 = vmatpush1.bf16.msra.mxu0 %v3166_v46 }
 0x720   : > { %v2152_v44 = vsel %vm4973_vm15, %v2116_v54, %v2141_v36  ;;  %v2153_v0 = vsel %vm4974_vm5, %v2115_v16, %v2140_v13  ;;  %v2176_v27 = vsel %vm4975_vm10, %v2141_v36, %v2116_v54  ;;  %v2177_v2 = vsel %vm4976_vm8, %v2140_v13, %v2115_v16  ;;  %3221 = vmatprep.subr.bf16.mxu1 %v3220_v50 }
 0x721   : > { %3169 = vmatprep.subr.bf16.mxu0 %v3168_v23  ;;  %v3222_v57 = vpack.c.bf16 %v4313_v21, %v2153_v0  ;;  %v3200_v56 = vpack.c.bf16 %v4317_v22, %v2152_v44 }
 0x722   : > { %v2198_v43 = vpop.permute.xlu1 %2197 }
 0x723   : > { %v4638_v29 = vpop.permute.xlu0 %2313  ;;  %3171 = vmatpush1.bf16.msra.mxu0 %v3170_v26  ;;  %3223 = vmatpush1.bf16.msra.mxu1 %v3222_v57  ;;  %v4987_v26 = vld [vmem:[#allocation11_spill] sm:$0xff] }
 0x724   : > { %v2322_v25 = vsel %vm4971_vm4, %v4638_v29, %v4480_v12  ;;  %3173 = vmatprep.subr.bf16.mxu0 %v3172_v53  ;;  %v2205_v12 = vsel %vm4978_vm6, %v4319_v11, %v2198_v43  ;;  %v4989_v53 = vld [vmem:[#allocation12_spill] sm:$0xff] }
 0x725   : > { %v2323_v5 = vsel %vm4947_vm13, %v2297_v19, %v2322_v25  ;;  %v2347_v40 = vsel %vm4948_vm3, %v2322_v25, %v2297_v19  ;;  %vm4979_vm13 = vmmov %vm4971_vm4 }
 0x726   : > { %v2202_v21 = vpop.permute.xlu1 %2201  ;;  %v3174_v61 = vpack.c.bf16 %v4231_v32, %v2323_v5  ;;  %v3178_v1 = vpack.c.bf16 %v2452_v7, %v2347_v40  ;;  %vm4980_vm3 = vmmov %vm4978_vm6  ;;  %v5000_v7 = vld [vmem:[#allocation14_spill] sm:$0xff] }
 0x727   : > { %v2220_v20 = vpop.permute.xlu0 %2219  ;;  %v2204_v11 = vsel %vm4980_vm3, %v2198_v43, %v2200_v6  ;;  %vm4981_vm7 = vmmov %vm4980_vm3 }
 0x728   : > { %v2230_v14 = vsel %vm4979_vm13, %v4341_v33, %v2220_v20  ;;  %3175 = vmatpush1.bf16.msra.mxu0 %v3174_v61  ;;  %v2203_v49 = vsel %vm4981_vm7, %v2200_v6, %v2202_v21  ;;  %vm4982_vm9 = vmmov %vm4980_vm3  ;;  %v4986_v6 = vld [vmem:[#allocation15_spill] sm:$0xff] }
 0x729   : > { %v2239_v17 = vsel %vm3856_vm14, %v2205_v12, %v2230_v14  ;;  %v2263_v32 = vsel %vm3864_vm0, %v2230_v14, %v2205_v12  ;;  %3177 = vmatprep.subr.bf16.mxu0 %v3176_v47  ;;  %v2210_v33 = vsel %vm4982_vm9, %v2202_v21, %v4391_v18  ;;  %vm4985_vm6 = vmmov %vm4971_vm4  ;;  %v3202_v13 = vpack.c.bf16 %v4986_v6, %v2151_v55 }
 0x72a   : > { %v2222_v51 = vpop.permute.xlu1 %2221  ;;  %v3206_v55 = vpack.c.bf16 %v2239_v17, %v2175_v38  ;;  %vm4990_vm13 = vmmov %vm4980_vm3 }
 0x72b   : > { %v2224_v34 = vpop.permute.xlu0 %2223  ;;  %v2229_v42 = vsel %vm4983_vm11, %v2220_v20, %v2222_v51  ;;  %vm4991_vm3 = vmmov %vm4971_vm4 }
 0x72c   : > { %v2227_v46 = vsel %vm4971_vm4, %v2224_v34, %v4984_v62  ;;  %v2228_v22 = vsel %vm4985_vm6, %v2222_v51, %v2224_v34  ;;  %v2240_v48 = vsel %vm4973_vm15, %v2204_v11, %v2229_v42  ;;  %v2264_v50 = vsel %vm4975_vm10, %v2229_v42, %v2204_v11  ;;  %3179 = vmatpush1.bf16.msra.mxu0 %v3178_v1  ;;  %vm4993_vm9 = vmmov %vm4981_vm7  ;;  %v5001_v51 = vld [vmem:[#allocation18_spill] sm:$0xff]  ;;  %v2458_v11 = vld [vmem:[#allocation3 + $0x270] sm:$0xff] }
 0x72d   : > { %v2242_v18 = vsel %vm4048_vm1, %v2210_v33, %v2227_v46  ;;  %v2266_v15 = vsel %vm4052_vm2, %v2227_v46, %v2210_v33  ;;  %v2241_v23 = vsel %vm4974_vm5, %v2203_v49, %v2228_v22  ;;  %v2265_v54 = vsel %vm4976_vm8, %v2228_v22, %v2203_v49  ;;  %3201 = vmatprep.subr.bf16.mxu0 %v3200_v56  ;;  %vm4994_vm11 = vmmov %vm4981_vm7  ;;  %v2457_v56 = vld [vmem:[#allocation3 + $0x268] sm:$0xff] }
 0x72e   : > { %v2286_v16 = vpop.permute.xlu1 %2285  ;;  %v3224_v36 = vpack.c.bf16 %v2242_v18, %v2178_v45  ;;  %v3204_v44 = vpack.c.bf16 %v2240_v48, %v2176_v27  ;;  %v3226_v0 = vpack.c.bf16 %v2241_v23, %v2177_v2  ;;  %v3228_v57 = vpack.c.bf16 %v2266_v15, %v4987_v26  ;;  %v4988_v27 = vld [vmem:[#allocation13_spill] sm:$0xff] }
 0x72f   : > { %v2288_v35 = vpop.permute.xlu0 %2287  ;;  %2861 = vmatmul.mubr.msk.f32.vlgmr.msra.gmra.mrb[8].mxu0 %vm2466_vm12, %v4561_v63  ;;  %v3208_v2 = vpack.c.bf16 %v2264_v50, %v4988_v27  ;;  %v3230_v19 = vpack.c.bf16 %v2265_v54, %v4989_v53  ;;  %v2293_v25 = vsel %vm4990_vm13, %v4483_v58, %v2286_v16 }
 0x730   : > { %3203 = vmatpush1.bf16.msra.mxu0 %v3202_v13  ;;  %3225 = vmatprep.subr.bf16.mxu1 %v3224_v36  ;;  %v2292_v21 = vsel %vm4981_vm7, %v2286_v16, %v2288_v35 }
 0x731   : > { %3205 = vmatprep.subr.bf16.mxu0 %v3204_v44  ;;  %3227 = vmatpush1.bf16.msra.mxu1 %v3226_v0 }
 0x732   : > { %v2290_v43 = vpop.permute.xlu1 %2289  ;;  %3229 = vmatprep.subr.bf16.mxu1 %v3228_v57  ;;  %2676 = vmatprep.mubr.f32.mxu0 %v4966_v3  ;;  %v4992_v3 = vld [vmem:[#allocation10_spill] sm:$0xff] }
 0x733   : > { %v2308_v45 = vpop.permute.xlu0 %2307  ;;  %v3210_v40 = vpack.c.bf16 %v2263_v32, %v4992_v3  ;;  %v2291_v58 = vsel %vm4993_vm9, %v2288_v35, %v2290_v43 }
 0x734   : > { %v2318_v5 = vsel %vm4991_vm3, %v4514_v37, %v2308_v45  ;;  %3207 = vmatpush1.bf16.msra.mxu0 %v3206_v55  ;;  %v2298_v37 = vsel %vm4994_vm11, %v2290_v43, %v4486_v28 }
 0x735   : > { %v2327_v41 = vsel %vm3856_vm14, %v2293_v25, %v2318_v5  ;;  %v2351_v52 = vsel %vm3864_vm0, %v2318_v5, %v2293_v25  ;;  %3209 = vmatprep.subr.bf16.mxu0 %v3208_v2  ;;  %3231 = vmatpush1.bf16.msra.mxu1 %v3230_v19  ;;  %vm4995_vm14 = vmmov %vm4991_vm3 }
 0x736   : > { %v2310_v38 = vpop.permute.xlu1 %2309  ;;  %vm4996_vm0 = vmmov %vm4991_vm3  ;;  %v3214_v1 = vpack.c.bf16 %v5001_v51, %v2327_v41  ;;  %v3218_v49 = vpack.c.bf16 %v2456_v31, %v2351_v52 }
 0x737   : > { %v2312_v4 = vpop.permute.xlu0 %2311  ;;  %v2317_v60 = vsel %vm4995_vm14, %v2308_v45, %v2310_v38  ;;  %vm4997_vm4 = vmmov %vm4996_vm0 }
 0x738   : > { %v2315_v61 = vsel %vm4996_vm0, %v2312_v4, %v4638_v29  ;;  %v2316_v24 = vsel %vm4997_vm4, %v2310_v38, %v2312_v4  ;;  %v2328_v20 = vsel %vm4973_vm15, %v2292_v21, %v2317_v60  ;;  %v2352_v47 = vsel %vm4975_vm10, %v2317_v60, %v2292_v21  ;;  %3211 = vmatpush1.bf16.msra.mxu0 %v3210_v40  ;;  %v4998_v29 = vld [vmem:[#allocation17_spill] sm:$0xff] }
 0x739   : > { %v2330_v28 = vsel %vm4048_vm1, %v2298_v37, %v2315_v61  ;;  %v2354_v12 = vsel %vm4052_vm2, %v2315_v61, %v2298_v37  ;;  %v2329_v14 = vsel %vm4974_vm5, %v2291_v58, %v2316_v24  ;;  %v2353_v8 = vsel %vm4976_vm8, %v2316_v24, %v2291_v58 }
 0x73a   : > { %v3212_v17 = vpack.c.bf16 %v4998_v29, %v2328_v20  ;;  %v3232_v32 = vpack.c.bf16 %v4999_v9, %v2330_v28  ;;  %v3234_v10 = vpack.c.bf16 %v5000_v7, %v2329_v14  ;;  %v3216_v39 = vpack.c.bf16 %v2457_v56, %v2352_v47 }
 0x73b   : > { %v3236_v59 = vpack.c.bf16 %v2459_v30, %v2354_v12  ;;  %v3238_v33 = vpack.c.bf16 %v2458_v11, %v2353_v8 }
 0x73c   : > { %3213 = vmatprep.subr.bf16.mxu0 %v3212_v17  ;;  %3233 = vmatprep.subr.bf16.mxu1 %v3232_v32 }
 0x73d   : > { %3215 = vmatpush1.bf16.msra.mxu0 %v3214_v1  ;;  %3235 = vmatpush1.bf16.msra.mxu1 %v3234_v10 }
 0x73e   : > { %3217 = vmatprep.subr.bf16.mxu0 %v3216_v39  ;;  %3237 = vmatprep.subr.bf16.mxu1 %v3236_v59 }
 0x741   : > { %3219 = vmatpush1.bf16.msra.mxu0 %v3218_v49  ;;  %3239 = vmatpush1.bf16.msra.mxu1 %v3238_v33 }
 0x744   : > { %2863 = vmatmul.mubr.msk.f32.vlgmr.msra.gmra.mrb[10].mxu0 %vm2466_vm12, %v4561_v63  ;;  %2864 = vmatmul.mubr.msk.f32.vlgmr.msra.gmra.mrb[10].mxu1 %vm2466_vm12, %v4561_v63 }
 0x747   : > { %v2464_v34 = vpop.permute.xlu1 %2463 }
 0x7ee   : > { %v2607_v42 = vpop.f32.mrb[8].mxu1 }
 0x7ef   : > { %v2608_v62 = vadd.f32 %v2607_v42, %v2464_v34  ;;  %v2609_v46 = vpop.f32.mrb[9].mxu1 }
 0x7f0   : > { %v2610_v22 = vadd.f32 %v2609_v46, %v2464_v34 }
 0x7f1   : > { %2756 = vst [vmem:[%s367_s25 + $0x10] sm:$0xff] %v2608_v62 }
 0x7f2   : > { %2757 = vst [vmem:[%s367_s25 + $0x18] sm:$0xff] %v2610_v22 }
 0x802   : > { %v2536_v48 = vpop.f32.mrb[8].mxu0 }
 0x803   : > { %v2537_v50 = vadd.f32 %v2536_v48, %v2464_v34  ;;  %v2538_v18 = vpop.f32.mrb[9].mxu0 }
 0x804   : > { %v2539_v15 = vadd.f32 %v2538_v18, %v2464_v34 }
 0x805   : > { %2754 = vst [vmem:[%s367_s25] sm:$0xff] %v2537_v50 }
 0x806   : > { %2755 = vst [vmem:[%s367_s25 + $0x8] sm:$0xff] %v2539_v15 }
 0x817   : > { %v2678_v63 = vpop.f32.mrb[10].mxu0  ;;  %v2749_v23 = vpop.f32.mrb[10].mxu1 }
 0x818   : > { %v2679_v54 = vadd.f32 %v2678_v63, %v2464_v34  ;;  %v2750_v16 = vadd.f32 %v2749_v23, %v2464_v34  ;;  %v2680_v6 = vpop.f32.mrb[11].mxu0  ;;  %v2751_v13 = vpop.f32.mrb[11].mxu1 }
 0x819   : > { %v2681_v36 = vadd.f32 %v2680_v6, %v2464_v34  ;;  %v2752_v44 = vadd.f32 %v2751_v13, %v2464_v34 }
 0x81a   : > { %2758 = vst [vmem:[%s367_s25 + $0x20] sm:$0xff] %v2679_v54  ;;  %2760 = vst [vmem:[%s367_s25 + $0x30] sm:$0xff] %v2750_v16 }
 0x81b   : > { %2759 = vst [vmem:[%s367_s25 + $0x28] sm:$0xff] %v2681_v36  ;;  %2761 = vst [vmem:[%s367_s25 + $0x38] sm:$0xff] %v2752_v44 }
 0x81c   : > { %3348 = shalt.err (!%p3345_p7)
}
 0x81d   : > { %s3349_s28 = scalar_lea.hbm %s4764_s12, 1024  ;;  %s3353_s30 = scalar_lea.hbm %s4818_s10, 2048 }
 0x81e   : > { %p3350_p8 = scmp.ne.s32.totalorder %s4764_s12, %s3349_s28  ;;  %p3354_p1 = scmp.lt.u32.totalorder %s4764_s12, %s4818_s10 }
 0x81f   : > { %p3355_p0 = scmp.lt.u32.totalorder %s3353_s30, %s3349_s28  ;;  %p3357_p6 = scmp.lt.u32.totalorder %s3349_s28, %s4764_s12 }
 0x820   : > { %p3351_p11 = pnand %p3350_p8, %p5002_p9 }
 0x821   : > { %p3356_p5 = por %p3355_p0, %p3354_p1 }
 0x822   : > { %p3352_p13 = pneg %p3351_p11 }
 0x823   : > { %p3358_p10 = por %p3357_p6, %p3356_p5 }
 0x825   : > { %p3359_p12 = pnand %p3358_p10, %p3352_p13 }
 0x827   : > { %3362 = shalt.err (!%p3359_p12)
}
 0x828   : > { %3244 = dma.vmem_to_hbm [thread:$0]  (%p5002_p9), %s4766_s29, 1024, %s4764_s12, %s2763_s17  }
 0x829 PF: > { %p3256_p2 = scmp.ge.s32.totalorder %s3401_s16, 2  ;;  %s2789_s18 = sand.u32 1, %s3389_s13  }
 0x82a   : > { %p5003_p3 = scmp.ne.s32.totalorder %s4856_s24, 0  ;;  %s2790_s20 = scalar_lea.sflag [#allocation6], %s2789_s18 }
 0x82c   : > { %p3251_p4 = pnand %p3256_p2, %p5003_p3 }
 0x82e   : > { %3384 = dma.done.wait (!%p3251_p4), %s2790_s20, 1024  }
 0x82f   : > { %3386 = vsyncadd (!%p3251_p4), %s2790_s20, 4294966272  ;;  %p21_p7 = scmp.ge.s32.totalorder %s3494_s19, 4   ;;  %s5004_s13 = smov %s3393_s14 }
 0x830   : > { %s5005_s14 = smov %s3397_s15  ;;  %s5006_s15 = smov %s3505_s22 }
 0x831   : > { %s5007_s16 = smov %s3494_s19  ;;  %23 = sbr.rel (!%p21_p7) target bundleno = 4 (0x4), region = 100 }
 0x838   :  { %2795 = vsyncpa [#allocation5], 1 }
 0x839   :  { %2797 = vsyncpa [#allocation5 + $0x1], 1 }
 0x83a   :  { %2798 = vsyncpa [#allocation6], 1 }
 0x83b   :  { %2800 = vsyncpa [#allocation6 + $0x1], 1 }

</bundles_post_ra>
